<compile_context>
chip_gen: v5e
topology: v5e:2x2
jax: 0.10.0
libtpu: 0.0.40
codegen_flags: <defaults>
</compile_context>

<pallas_src>
import jax
import jax.numpy as jnp
from jax import lax
from jax.experimental import pallas as pl
from jax.experimental.pallas import tpu as pltpu

D_MODEL = 320          # hidden size of ViTSelfAttention (fixed by the module)
CLASS_NUM = 5          # synthetic class count for the 1x1 conv head
RES = 8                # spatial resolution of every scale (small test shape)
N_TOK = RES * RES      # tokens per scale
N_SCALES = 3


# ----------------------------------------------------------------------------
# Fused kernel: one grid step per scale (independent -> "parallel").
#   ctx_sum  = Attn(edge, region) + Attn(region, edge)                 (64, 320)
#   out_s    = ctx_sum @ Wc_s + origin_s^T @ Wc_s                      (64, C)
# where Attn(h, c) = softmax((h Wq + bq)(c Wk + bk)^T) (c Wv + bv)
# ----------------------------------------------------------------------------
def fused_boundary_kernel(e_ref, r_ref, o_ref, wqkv_ref, bqkv_ref, wc_ref, out_ref):
    # Assemble edge||region (128, 320) bf16 in-kernel (no XLA concat in the wrapper).
    hc = jnp.concatenate([e_ref[...], r_ref[...]], axis=0)

    wq = wqkv_ref[0]                    # (D, D) bf16
    wk = wqkv_ref[1]
    wv = wqkv_ref[2]
    bq = bqkv_ref[0:1, :]               # (1, D) f32
    bk = bqkv_ref[1:2, :]
    bv = bqkv_ref[2:3, :]

    # Shared projections for both attention directions (M = 2N = 128, f32 accumulation).
    q = jnp.dot(hc, wq, preferred_element_type=jnp.float32) + bq
    k = jnp.dot(hc, wk, preferred_element_type=jnp.float32) + bk
    v = jnp.dot(hc, wv, preferred_element_type=jnp.float32) + bv

    q_e, q_r = q[:N_TOK, :], q[N_TOK:, :]
    k_e, k_r = k[:N_TOK, :], k[N_TOK:, :]
    v_e, v_r = v[:N_TOK, :], v[N_TOK:, :]

    def attn(qh, kc, vc):
        # Contract last dims directly (no materialized k transpose).
        s = lax.dot_general(
            qh.astype(jnp.bfloat16), kc.astype(jnp.bfloat16),
            dimension_numbers=(((1,), (1,)), ((), ())),
            preferred_element_type=jnp.float32)                     # (N, N)
        m = jnp.max(s, axis=-1, keepdims=True)
        p = jnp.exp(s - m)                                          # f32
        denom = jnp.sum(p, axis=-1, keepdims=True)
        ctx = jnp.dot(p.astype(jnp.bfloat16), vc.astype(jnp.bfloat16),
                      preferred_element_type=jnp.float32)           # (N, D)
        return ctx / denom                                          # exact normalization

    ctx_sum = attn(q_e, k_r, v_r) + attn(q_r, k_e, v_e)             # (N, D) f32

    wc = wc_ref[...]                                                # (D, C) bf16
    attn_logits = jnp.dot(ctx_sum.astype(jnp.bfloat16), wc,
                          preferred_element_type=jnp.float32)       # (N, C)
    # Residual (origin) contribution, folded into the conv head with a
    # transposed-LHS matmul: origin_s^T @ Wc_s.  o_ref is (D, N).
    origin_logits = lax.dot_general(
        o_ref[...].astype(jnp.bfloat16), wc,
        dimension_numbers=(((0,), (0,)), ((), ())),
        preferred_element_type=jnp.float32)                         # (N, C)

    out_ref[...] = attn_logits + origin_logits


def boundary_sensitive_pallas(edge, region, origin2d, wqkv, bqkv, wc):
    return pl.pallas_call(
        fused_boundary_kernel,
        out_shape=jax.ShapeDtypeStruct((N_SCALES, N_TOK, CLASS_NUM), jnp.float32),
        grid=(N_SCALES,),
        in_specs=[
            pl.BlockSpec((None, N_TOK, D_MODEL), lambda i: (i, 0, 0)),           # edge (bf16)
            pl.BlockSpec((None, N_TOK, D_MODEL), lambda i: (i, 0, 0)),           # region (bf16)
            pl.BlockSpec((None, D_MODEL, N_TOK), lambda i: (i, 0, 0)),           # origin (f32, (D,N))
            pl.BlockSpec((None, 3, D_MODEL, D_MODEL), lambda i: (i, 0, 0, 0)),   # Wq/Wk/Wv (bf16)
            pl.BlockSpec((None, 3, D_MODEL), lambda i: (i, 0, 0)),               # bq/bk/bv (f32)
            pl.BlockSpec((None, D_MODEL, CLASS_NUM), lambda i: (i, 0, 0)),       # conv W chunk (bf16)
        ],
        # Independent per-scale partials -> scale axis is truly parallel (2 TCs on v7x).
        out_specs=pl.BlockSpec((None, N_TOK, CLASS_NUM), lambda i: (i, 0, 0)),
        compiler_params=pltpu.CompilerParams(
            dimension_semantics=("parallel",)),
    )(edge, region, origin2d, wqkv, bqkv, wc)


# ----------------------------------------------------------------------------
# Parameter construction (deterministic, synthetic), pre-stacked per scale and
# pre-cast to the dtypes the kernel consumes (no per-call convert passes).
# PyTorch Linear weight is (out, in); we store W as (in, out) so y = x @ W + b.
# outc_w[s] corresponds to Conv2d(960, C, 1).weight[:, s*320:(s+1)*320, 0, 0].T
# (the torch.cat(dim=1) ordering [scale16 | scale32 | scale64]).
# ----------------------------------------------------------------------------
def make_params(key):
    scale = 0.02
    k1, k2, k3, k4 = jax.random.split(key, 4)
    return {
        "wqkv": (scale * jax.random.normal(
            k1, (N_SCALES, 3, D_MODEL, D_MODEL), jnp.float32)).astype(jnp.bfloat16),
        "bqkv": scale * jax.random.normal(k2, (N_SCALES, 3, D_MODEL), jnp.float32),
        "outc_w": (scale * jax.random.normal(
            k3, (N_SCALES, D_MODEL, CLASS_NUM), jnp.float32)).astype(jnp.bfloat16),
        "outc_b": scale * jax.random.normal(k4, (1, CLASS_NUM), jnp.float32),
    }


# ----------------------------------------------------------------------------
# Full BoundarySensitive forward.
#   edge, region : (3, N, 320) bf16   (the module's per-scale list, pre-stacked)
#   origin       : (3, 320, res, res) f32 (NCHW per scale, pre-stacked, batch=1)
# Returns logits: (1, class_num, res, res) (NCHW, matching PyTorch)
# ----------------------------------------------------------------------------
@jax.jit
def boundary_sensitive_forward(edge, region, origin, params):
    # Free, contiguous reshape: (3, D, H, W) -> (3, D, H*W). No transpose in XLA.
    origin2d = origin.reshape(N_SCALES, D_MODEL, N_TOK)

    partials = boundary_sensitive_pallas(
        edge, region, origin2d,
        params["wqkv"], params["bqkv"], params["outc_w"])            # (3, N, C)

    logits_flat = jnp.sum(partials, axis=0) + params["outc_b"]       # (N, C)
    # (N, C) -> (res, res, C) -> (1, C, res, res)
    logits = jnp.transpose(logits_flat.reshape(RES, RES, CLASS_NUM), (2, 0, 1))[None]
    return logits


if __name__ == "__main__":
    key = jax.random.PRNGKey(0)
    key, kp = jax.random.split(key)
    params = make_params(kp)

    # The PyTorch module takes 3-element lists; here they are pre-stacked along a
    # leading scale axis so the kernel grid indexes them directly (no XLA stack/concat).
    key, k1, k2, k3 = jax.random.split(key, 4)
    edge = jax.random.normal(k1, (N_SCALES, N_TOK, D_MODEL), jnp.float32).astype(jnp.bfloat16)
    region = jax.random.normal(k2, (N_SCALES, N_TOK, D_MODEL), jnp.float32).astype(jnp.bfloat16)
    origin = jax.random.normal(k3, (N_SCALES, D_MODEL, RES, RES), jnp.float32)

    logits = boundary_sensitive_forward(edge, region, origin, params)
    logits = jax.block_until_ready(logits)
    assert logits.shape == (1, CLASS_NUM, RES, RES), logits.shape
    assert bool(jnp.all(jnp.isfinite(logits)))
    print("KERNEL_OK")
</pallas_src>

<mosaic_0001>
module attributes {stable_mosaic.version = 11 : i64} {
  func.func @fused_boundary_kernel(%arg0: i32, %arg1: memref<1x64x320xbf16, #tpu.memory_space<vmem>>, %arg2: memref<1x64x320xbf16, #tpu.memory_space<vmem>>, %arg3: memref<1x320x64xf32, #tpu.memory_space<vmem>>, %arg4: memref<1x3x320x320xbf16, #tpu.memory_space<vmem>>, %arg5: memref<1x3x320xf32, #tpu.memory_space<vmem>>, %arg6: memref<1x320x5xbf16, #tpu.memory_space<vmem>>, %arg7: memref<1x64x5xf32, #tpu.memory_space<vmem>>) attributes {dimension_semantics = [#tpu.dimension_semantics<parallel>], iteration_bounds = array<i64: 3>, scalar_prefetch = 0 : i64, scratch_operands = 0 : i64, tpu.core_type = #tpu.core_type<tc>, window_params = [{transform_indices = @transform_0, window_bounds = array<i64: 1, 64, 320>}, {transform_indices = @transform_1, window_bounds = array<i64: 1, 64, 320>}, {transform_indices = @transform_2, window_bounds = array<i64: 1, 320, 64>}, {transform_indices = @transform_3, window_bounds = array<i64: 1, 3, 320, 320>}, {transform_indices = @transform_4, window_bounds = array<i64: 1, 3, 320>}, {transform_indices = @transform_5, window_bounds = array<i64: 1, 320, 5>}, {transform_indices = @transform_6, window_bounds = array<i64: 1, 64, 5>}]} {
    %c0 = arith.constant 0 : index
    %c0_0 = arith.constant 0 : index
    %c0_1 = arith.constant 0 : index
    %0 = vector.load %arg1[%c0, %c0_0, %c0_1] : memref<1x64x320xbf16, #tpu.memory_space<vmem>>, vector<1x64x320xbf16>
    %1 = vector.shape_cast %0 : vector<1x64x320xbf16> to vector<64x320xbf16>
    %c0_2 = arith.constant 0 : index
    %c0_3 = arith.constant 0 : index
    %c0_4 = arith.constant 0 : index
    %2 = vector.load %arg2[%c0_2, %c0_3, %c0_4] : memref<1x64x320xbf16, #tpu.memory_space<vmem>>, vector<1x64x320xbf16>
    %3 = vector.shape_cast %2 : vector<1x64x320xbf16> to vector<64x320xbf16>
    %4 = tpu.concatenate %1, %3 in 0 : vector<64x320xbf16>, vector<64x320xbf16> -> vector<128x320xbf16>
    %c0_5 = arith.constant 0 : index
    %c0_6 = arith.constant 0 : index
    %c0_7 = arith.constant 0 : index
    %c0_8 = arith.constant 0 : index
    %5 = vector.load %arg4[%c0_5, %c0_6, %c0_7, %c0_8] : memref<1x3x320x320xbf16, #tpu.memory_space<vmem>>, vector<1x1x320x320xbf16>
    %6 = vector.shape_cast %5 : vector<1x1x320x320xbf16> to vector<320x320xbf16>
    %c0_9 = arith.constant 0 : index
    %c1 = arith.constant 1 : index
    %c0_10 = arith.constant 0 : index
    %c0_11 = arith.constant 0 : index
    %7 = vector.load %arg4[%c0_9, %c1, %c0_10, %c0_11] : memref<1x3x320x320xbf16, #tpu.memory_space<vmem>>, vector<1x1x320x320xbf16>
    %8 = vector.shape_cast %7 : vector<1x1x320x320xbf16> to vector<320x320xbf16>
    %c0_12 = arith.constant 0 : index
    %c2 = arith.constant 2 : index
    %c0_13 = arith.constant 0 : index
    %c0_14 = arith.constant 0 : index
    %9 = vector.load %arg4[%c0_12, %c2, %c0_13, %c0_14] : memref<1x3x320x320xbf16, #tpu.memory_space<vmem>>, vector<1x1x320x320xbf16>
    %10 = vector.shape_cast %9 : vector<1x1x320x320xbf16> to vector<320x320xbf16>
    %c0_15 = arith.constant 0 : index
    %c0_16 = arith.constant 0 : index
    %c0_17 = arith.constant 0 : index
    %11 = vector.load %arg5[%c0_15, %c0_16, %c0_17] : memref<1x3x320xf32, #tpu.memory_space<vmem>>, vector<1x1x320xf32>
    %12 = vector.shape_cast %11 : vector<1x1x320xf32> to vector<1x320xf32>
    %c0_18 = arith.constant 0 : index
    %c1_19 = arith.constant 1 : index
    %c0_20 = arith.constant 0 : index
    %13 = vector.load %arg5[%c0_18, %c1_19, %c0_20] : memref<1x3x320xf32, #tpu.memory_space<vmem>>, vector<1x1x320xf32>
    %14 = vector.shape_cast %13 : vector<1x1x320xf32> to vector<1x320xf32>
    %c0_21 = arith.constant 0 : index
    %c2_22 = arith.constant 2 : index
    %c0_23 = arith.constant 0 : index
    %15 = vector.load %arg5[%c0_21, %c2_22, %c0_23] : memref<1x3x320xf32, #tpu.memory_space<vmem>>, vector<1x1x320xf32>
    %16 = vector.shape_cast %15 : vector<1x1x320xf32> to vector<1x320xf32>
    %cst = arith.constant dense<0.000000e+00> : vector<128x320xf32>
    %17 = tpu.matmul %4, %6, %cst {dimension_numbers = #tpu.dot_dimension_numbers<[1], [0], [0], [1], [0, 0, 1, 1], [], []>} : vector<128x320xbf16>, vector<320x320xbf16>, vector<128x320xf32> -> vector<128x320xf32>
    %18 = vector.broadcast %12 : vector<1x320xf32> to vector<128x320xf32>
    %19 = arith.addf %17, %18 : vector<128x320xf32>
    %cst_24 = arith.constant dense<0.000000e+00> : vector<128x320xf32>
    %20 = tpu.matmul %4, %8, %cst_24 {dimension_numbers = #tpu.dot_dimension_numbers<[1], [0], [0], [1], [0, 0, 1, 1], [], []>} : vector<128x320xbf16>, vector<320x320xbf16>, vector<128x320xf32> -> vector<128x320xf32>
    %21 = vector.broadcast %14 : vector<1x320xf32> to vector<128x320xf32>
    %22 = arith.addf %20, %21 : vector<128x320xf32>
    %cst_25 = arith.constant dense<0.000000e+00> : vector<128x320xf32>
    %23 = tpu.matmul %4, %10, %cst_25 {dimension_numbers = #tpu.dot_dimension_numbers<[1], [0], [0], [1], [0, 0, 1, 1], [], []>} : vector<128x320xbf16>, vector<320x320xbf16>, vector<128x320xf32> -> vector<128x320xf32>
    %24 = vector.broadcast %16 : vector<1x320xf32> to vector<128x320xf32>
    %25 = arith.addf %23, %24 : vector<128x320xf32>
    %26 = vector.extract_strided_slice %19 {offsets = [0, 0], sizes = [64, 320], strides = [1, 1]} : vector<128x320xf32> to vector<64x320xf32>
    %27 = vector.extract_strided_slice %19 {offsets = [64, 0], sizes = [64, 320], strides = [1, 1]} : vector<128x320xf32> to vector<64x320xf32>
    %28 = vector.extract_strided_slice %22 {offsets = [0, 0], sizes = [64, 320], strides = [1, 1]} : vector<128x320xf32> to vector<64x320xf32>
    %29 = vector.extract_strided_slice %22 {offsets = [64, 0], sizes = [64, 320], strides = [1, 1]} : vector<128x320xf32> to vector<64x320xf32>
    %30 = vector.extract_strided_slice %25 {offsets = [0, 0], sizes = [64, 320], strides = [1, 1]} : vector<128x320xf32> to vector<64x320xf32>
    %31 = vector.extract_strided_slice %25 {offsets = [64, 0], sizes = [64, 320], strides = [1, 1]} : vector<128x320xf32> to vector<64x320xf32>
    %32 = arith.truncf %26 : vector<64x320xf32> to vector<64x320xbf16>
    %33 = arith.truncf %29 : vector<64x320xf32> to vector<64x320xbf16>
    %cst_26 = arith.constant dense<0.000000e+00> : vector<64x64xf32>
    %34 = tpu.matmul %32, %33, %cst_26 {dimension_numbers = #tpu.dot_dimension_numbers<[1], [1], [0], [0], [0, 0, 1, 0], [], []>} : vector<64x320xbf16>, vector<64x320xbf16>, vector<64x64xf32> -> vector<64x64xf32>
    %cst_27 = arith.constant dense<0xFF800000> : vector<64xf32>
    %35 = vector.multi_reduction <maximumf>, %34, %cst_27 [1] : vector<64x64xf32> to vector<64xf32>
    %36 = vector.shape_cast %35 : vector<64xf32> to vector<64x1xf32>
    %37 = vector.broadcast %36 : vector<64x1xf32> to vector<64x64xf32>
    %38 = arith.subf %34, %37 : vector<64x64xf32>
    %39 = math.exp %38 : vector<64x64xf32>
    %cst_28 = arith.constant dense<0.000000e+00> : vector<64xf32>
    %40 = vector.multi_reduction <add>, %39, %cst_28 [1] : vector<64x64xf32> to vector<64xf32>
    %41 = vector.shape_cast %40 : vector<64xf32> to vector<64x1xf32>
    %42 = arith.truncf %39 : vector<64x64xf32> to vector<64x64xbf16>
    %43 = arith.truncf %31 : vector<64x320xf32> to vector<64x320xbf16>
    %cst_29 = arith.constant dense<0.000000e+00> : vector<64x320xf32>
    %44 = tpu.matmul %42, %43, %cst_29 {dimension_numbers = #tpu.dot_dimension_numbers<[1], [0], [0], [1], [0, 0, 1, 1], [], []>} : vector<64x64xbf16>, vector<64x320xbf16>, vector<64x320xf32> -> vector<64x320xf32>
    %45 = vector.broadcast %41 : vector<64x1xf32> to vector<64x320xf32>
    %46 = arith.divf %44, %45 : vector<64x320xf32>
    %47 = arith.truncf %27 : vector<64x320xf32> to vector<64x320xbf16>
    %48 = arith.truncf %28 : vector<64x320xf32> to vector<64x320xbf16>
    %cst_30 = arith.constant dense<0.000000e+00> : vector<64x64xf32>
    %49 = tpu.matmul %47, %48, %cst_30 {dimension_numbers = #tpu.dot_dimension_numbers<[1], [1], [0], [0], [0, 0, 1, 0], [], []>} : vector<64x320xbf16>, vector<64x320xbf16>, vector<64x64xf32> -> vector<64x64xf32>
    %cst_31 = arith.constant dense<0xFF800000> : vector<64xf32>
    %50 = vector.multi_reduction <maximumf>, %49, %cst_31 [1] : vector<64x64xf32> to vector<64xf32>
    %51 = vector.shape_cast %50 : vector<64xf32> to vector<64x1xf32>
    %52 = vector.broadcast %51 : vector<64x1xf32> to vector<64x64xf32>
    %53 = arith.subf %49, %52 : vector<64x64xf32>
    %54 = math.exp %53 : vector<64x64xf32>
    %cst_32 = arith.constant dense<0.000000e+00> : vector<64xf32>
    %55 = vector.multi_reduction <add>, %54, %cst_32 [1] : vector<64x64xf32> to vector<64xf32>
    %56 = vector.shape_cast %55 : vector<64xf32> to vector<64x1xf32>
    %57 = arith.truncf %54 : vector<64x64xf32> to vector<64x64xbf16>
    %58 = arith.truncf %30 : vector<64x320xf32> to vector<64x320xbf16>
    %cst_33 = arith.constant dense<0.000000e+00> : vector<64x320xf32>
    %59 = tpu.matmul %57, %58, %cst_33 {dimension_numbers = #tpu.dot_dimension_numbers<[1], [0], [0], [1], [0, 0, 1, 1], [], []>} : vector<64x64xbf16>, vector<64x320xbf16>, vector<64x320xf32> -> vector<64x320xf32>
    %60 = vector.broadcast %56 : vector<64x1xf32> to vector<64x320xf32>
    %61 = arith.divf %59, %60 : vector<64x320xf32>
    %62 = arith.addf %46, %61 : vector<64x320xf32>
    %c0_34 = arith.constant 0 : index
    %c0_35 = arith.constant 0 : index
    %c0_36 = arith.constant 0 : index
    %63 = vector.load %arg6[%c0_34, %c0_35, %c0_36] : memref<1x320x5xbf16, #tpu.memory_space<vmem>>, vector<1x320x5xbf16>
    %64 = vector.shape_cast %63 : vector<1x320x5xbf16> to vector<320x5xbf16>
    %65 = arith.truncf %62 : vector<64x320xf32> to vector<64x320xbf16>
    %cst_37 = arith.constant dense<0.000000e+00> : vector<64x5xf32>
    %66 = tpu.matmul %65, %64, %cst_37 {dimension_numbers = #tpu.dot_dimension_numbers<[1], [0], [0], [1], [0, 0, 1, 1], [], []>} : vector<64x320xbf16>, vector<320x5xbf16>, vector<64x5xf32> -> vector<64x5xf32>
    %c0_38 = arith.constant 0 : index
    %c0_39 = arith.constant 0 : index
    %c0_40 = arith.constant 0 : index
    %67 = vector.load %arg3[%c0_38, %c0_39, %c0_40] : memref<1x320x64xf32, #tpu.memory_space<vmem>>, vector<1x320x64xf32>
    %68 = vector.shape_cast %67 : vector<1x320x64xf32> to vector<320x64xf32>
    %69 = arith.truncf %68 : vector<320x64xf32> to vector<320x64xbf16>
    %cst_41 = arith.constant dense<0.000000e+00> : vector<64x5xf32>
    %70 = tpu.matmul %69, %64, %cst_41 {dimension_numbers = #tpu.dot_dimension_numbers<[0], [0], [1], [1], [0, 1, 1, 1], [], []>} : vector<320x64xbf16>, vector<320x5xbf16>, vector<64x5xf32> -> vector<64x5xf32>
    %71 = arith.addf %66, %70 : vector<64x5xf32>
    %c0_42 = arith.constant 0 : index
    %c0_43 = arith.constant 0 : index
    %c0_44 = arith.constant 0 : index
    %72 = vector.load %arg7[%c0_42, %c0_43, %c0_44] : memref<1x64x5xf32, #tpu.memory_space<vmem>>, vector<1x64x5xf32>
    %73 = vector.shape_cast %72 : vector<1x64x5xf32> to vector<64x5xf32>
    %74 = vector.shape_cast %71 : vector<64x5xf32> to vector<1x64x5xf32>
    tpu.vector_store %arg7[%c0_42, %c0_43, %c0_44], %74 {strides = array<i32>} : memref<1x64x5xf32, #tpu.memory_space<vmem>>, vector<1x64x5xf32>,
    return
  }
  func.func @transform_0(%arg0: i32) -> (i32, i32, i32) {
    %c0_i32 = arith.constant 0 : i32
    %c0_i32_0 = arith.constant 0 : i32
    %c0_i32_1 = arith.constant 0 : i32
    return %arg0, %c0_i32, %c0_i32_0 : i32, i32, i32
  }
  func.func @transform_1(%arg0: i32) -> (i32, i32, i32) {
    %c0_i32 = arith.constant 0 : i32
    %c0_i32_0 = arith.constant 0 : i32
    %c0_i32_1 = arith.constant 0 : i32
    return %arg0, %c0_i32, %c0_i32_0 : i32, i32, i32
  }
  func.func @transform_2(%arg0: i32) -> (i32, i32, i32) {
    %c0_i32 = arith.constant 0 : i32
    %c0_i32_0 = arith.constant 0 : i32
    %c0_i32_1 = arith.constant 0 : i32
    return %arg0, %c0_i32, %c0_i32_0 : i32, i32, i32
  }
  func.func @transform_3(%arg0: i32) -> (i32, i32, i32, i32) {
    %c0_i32 = arith.constant 0 : i32
    %c0_i32_0 = arith.constant 0 : i32
    %c0_i32_1 = arith.constant 0 : i32
    %c0_i32_2 = arith.constant 0 : i32
    return %arg0, %c0_i32, %c0_i32_0, %c0_i32_1 : i32, i32, i32, i32
  }
  func.func @transform_4(%arg0: i32) -> (i32, i32, i32) {
    %c0_i32 = arith.constant 0 : i32
    %c0_i32_0 = arith.constant 0 : i32
    %c0_i32_1 = arith.constant 0 : i32
    return %arg0, %c0_i32, %c0_i32_0 : i32, i32, i32
  }
  func.func @transform_5(%arg0: i32) -> (i32, i32, i32) {
    %c0_i32 = arith.constant 0 : i32
    %c0_i32_0 = arith.constant 0 : i32
    %c0_i32_1 = arith.constant 0 : i32
    return %arg0, %c0_i32, %c0_i32_0 : i32, i32, i32
  }
  func.func @transform_6(%arg0: i32) -> (i32, i32, i32) {
    %c0_i32 = arith.constant 0 : i32
    %c0_i32_0 = arith.constant 0 : i32
    %c0_i32_1 = arith.constant 0 : i32
    return %arg0, %c0_i32, %c0_i32_0 : i32, i32, i32
  }
}

</mosaic_0001>

<bundles_post_ra>
// kernel: boundary_sensitive_forward.1
= control target key start
LH: loop header
LB: loop body
LE: loop exit
PB: predicated region body
PF: predicated region fallthrough
CT: control target
= control target key end

     0   :  { %s9168_s0 = inlined_call_operand.hbm [shape: bf16[3,64,320], index: 0, kind: input, shape index: {}]   ;;  %s9169_s1 = inlined_call_operand.hbm [shape: bf16[3,64,320], index: 1, kind: input, shape index: {}]   ;;  %s9170_s2 = inlined_call_operand.vmem [shape: f32[3,320,64], index: 2, kind: input, shape index: {}]   ;;  %s9171_s3 = inlined_call_operand.hbm [shape: bf16[3,3,320,320], index: 3, kind: input, shape index: {}]   ;;  %s9172_s4 = inlined_call_operand.hbm [shape: f32[3,3,320], index: 4, kind: input, shape index: {}]   ;;  %s9173_s5 = inlined_call_operand.vmem [shape: bf16[3,320,5], index: 5, kind: input, shape index: {}]   ;;  %s9174_s6 = inlined_call_operand.vmem [shape: f32[3,64,5], index: 6, kind: output, shape index: {}]  }
   0x1   :  { %9261 = sst [smem:[#allocation97_spill]] %s9168_s0 }
   0x2   :  { %9262 = sst [smem:[#allocation98_spill]] %s9169_s1 }
   0x3   :  { %11 = vsyncpa [#allocation3], 0 }
   0x4   :  { %13 = vsyncpa [#allocation3 + $0x1], 0 }
   0x5   :  { %14 = vsyncpa [#allocation5], 0 }
   0x6   :  { %16 = vsyncpa [#allocation5 + $0x1], 0 }
   0x7   :  { %17 = vsyncpa [#allocation8], 0 }
   0x8   :  { %19 = vsyncpa [#allocation8 + $0x1], 0  ;;  %s6535_s21 = smov 0   ;;  %s6537_s22 = smov 0  }
   0x9   :  { %s6539_s23 = smov 0   ;;  %s6541_s24 = smov 0  }
   0xa LB: > { %s6554_s25 = sadd.s32 4294967295, %s6494_s24   ;;  %s6557_s26 = sadd.s32 1, %s6494_s24   ;;  %s6494_s24 = sphi %s6541_s24, %s9531_s24   ;;  %s6490_s23 = sphi %s6539_s23, %s9530_s23   ;;  %s6486_s22 = sphi %s6537_s22, %s9529_s22   ;;  %s6482_s21 = sphi %s6535_s21, %s9528_s21  }
   0xb   : > { %s29_s27 = ssub.s32 %s6494_s24, %s6557_s26  ;;  %s32_s28 = sadd.s32 1, %s6490_s23 }
   0xc   : > { %p30_p0 = scmp.eq.s32.totalorder %s29_s27, 0  ;;  %p39_p1 = scmp.ne.s32.totalorder %s6490_s23, %s6486_s22 }
   0xd   : > { %p40_p2 = scmp.eq.s32.totalorder %s6494_s24, 0  ;;  %p45_p3 = scmp.ne.s32.totalorder %s6486_s22, %s6482_s21 }
   0xe   : > { %s6567_s29 = scalar_select %p30_p0, %s6490_s23, %s32_s28  }
   0xf   : > { %p41_p4 = por %p40_p2, %p39_p1  ;;  %p46_p5 = scmp.eq.s32.totalorder %s6554_s25, 0 }
  0x10   : > { %9263 = sst [smem:[#allocation12_spill]] %s6567_s29  ;;  %p6231_p6 = scmp.lt.s32.totalorder %s6494_s24, 3 }
  0x11   : > { %p6571_p7 = por %p46_p5, %p45_p3  ;;  %s6576_s7 = sand.u32 1, %s6490_s23  }
  0x12   : > { %s6197_s8 = smul.u32 96, %s6576_s7  ;;  %p6579_p8 = pnand %p6231_p6, %p41_p4 }
  0x13   : > { %s6198_s10 = smul.u32 96, %s6494_s24  ;;  %s247_s11 = sand.u32 1, %s6494_s24  }
  0x14   : > { %s9266_s1 = sld [smem:[#allocation98_spill]]  ;;  %s251_s16 = scalar_lea.vmem [#allocation4], %s6197_s8 }
  0x15   : > { %s259_s17 = sshll.u32 %s251_s16, 4  ;;  %s6592_s18 = scalar_lea.sflag [#allocation5], %s247_s11  ;;  %s260_s17 = int_to_ptr.vmem [resolvable:$true] %s259_s17 }
  0x16   : > { %p6336_p10 = pneg %p6579_p8 }
  0x1a   : > { %s256_s14 = scalar_lea.hbm %s9266_s1, %s6198_s10  ;;  %s6339_s28 = scalar_lea.hbm %s9266_s1, 288 }
  0x1b   : > { %s257_s15 = sshll.u32 %s256_s14, 4  ;;  %s258_s15 = int_to_ptr.hbm [resolvable:$true] %s257_s15 }
  0x1c   : > { %s6332_s19 = sshra.s32 %s258_s15, 4  ;;  %s6333_s19 = int_to_ptr.hbm [resolvable:$true] %s6332_s19 }
  0x1d   : > { %s6334_s20 = scalar_lea.hbm %s6333_s19, 96  ;;  %p6340_p13 = scmp.lt.s32.totalorder %s6333_s19, %s9266_s1 }
  0x1e   : > { %p6335_p9 = scmp.ne.s32.totalorder %s6333_s19, %s6334_s20  ;;  %p6341_p0 = scmp.lt.s32.totalorder %s6339_s28, %s6334_s20 }
  0x20   : > { %p6337_p11 = pnand %p6336_p10, %p6335_p9  ;;  %p6342_p1 = por %p6341_p0, %p6340_p13 }
  0x22   : > { %p6338_p12 = pneg %p6337_p11 }
  0x24   : > { %p6343_p2 = pnand %p6342_p1, %p6338_p12 }
  0x26   : > { %6346 = shalt.err (!%p6343_p2)
}
  0x27   : > { %s9175_s11 = smov 192   ;;  %s9177_s14 = smov 12  }
  0x28   : > { %6224 = dma.hbm_to_vmem [thread:$0]  (!%p6579_p8), %s258_s15, 1536, %s260_s17, %s6592_s18, %s9175_s11, %s9175_s11, %s9177_s14  }
  0x29   : > { %p4755_p3 = scmp.ge.s32.totalorder %s6494_s24, 1  ;;  %p325_p4 = scmp.lt.s32.totalorder %s6494_s24, 4 }
  0x2a   : > { %s9268_s0 = sld [smem:[#allocation97_spill]]  ;;  %s229_s28 = scalar_lea.vmem [#allocation2], %s6197_s8 }
  0x2b   : > { %p6613_p5 = pnand %p4755_p3, %p325_p4  ;;  %s237_s12 = sshll.u32 %s229_s28, 4  ;;  %s238_s12 = int_to_ptr.vmem [resolvable:$true] %s237_s12 }
  0x2c   : > { %s226_s13 = scalar_lea.sflag [#allocation3], %s6576_s7 }
  0x30   : > { %s234_s21 = scalar_lea.hbm %s9268_s0, %s6198_s10  ;;  %s6369_s19 = scalar_lea.hbm %s9268_s0, 288 }
  0x31   : > { %s235_s27 = sshll.u32 %s234_s21, 4  ;;  %s236_s27 = int_to_ptr.hbm [resolvable:$true] %s235_s27 }
  0x32   : > { %s6362_s1 = sshra.s32 %s236_s27, 4  ;;  %s6363_s1 = int_to_ptr.hbm [resolvable:$true] %s6362_s1 }
  0x33   : > { %s6364_s15 = scalar_lea.hbm %s6363_s1, 96  ;;  %p6370_p12 = scmp.lt.s32.totalorder %s6363_s1, %s9268_s0 }
  0x34   : > { %p6365_p6 = scmp.ne.s32.totalorder %s6363_s1, %s6364_s15  ;;  %p6371_p13 = scmp.lt.s32.totalorder %s6369_s19, %s6364_s15 }
  0x36   : > { %p6367_p9 = pnand %p6365_p6, %p6336_p10  ;;  %p6372_p0 = por %p6371_p13, %p6370_p12 }
  0x38   : > { %p6368_p11 = pneg %p6367_p9 }
  0x3a   : > { %p6373_p1 = pnand %p6372_p0, %p6368_p11 }
  0x3c   : > { %6376 = shalt.err (!%p6373_p1)
}
  0x3d   : > { %s9269_s8 = smov 192   ;;  %s6201_s11 = smul.u32 1440, %s6576_s7 }
  0x3e   : > { %6221 = dma.hbm_to_vmem [thread:$0]  (!%p6579_p8), %s236_s27, 1536, %s238_s12, %s226_s13, %s9269_s8, %s9269_s8, %s9177_s14  }
  0x3f   : > { %s6202_s21 = smul.u32 1440, %s6494_s24  ;;  %s281_s15 = scalar_lea.vmem [#allocation6], %s6201_s11 }
  0x40   : > { %s6203_s28 = smul.u32 12, %s6576_s7  ;;  %s289_s19 = sshll.u32 %s281_s15, 4  ;;  %s290_s19 = int_to_ptr.vmem [resolvable:$true] %s289_s19 }
  0x41   : > { %s286_s1 = scalar_lea.hbm %s9171_s3, %s6202_s21  ;;  %s6399_s13 = scalar_lea.hbm %s9171_s3, 4320 }
  0x42   : > { %s287_s20 = sshll.u32 %s286_s1, 4  ;;  %s288_s20 = int_to_ptr.hbm [resolvable:$true] %s287_s20 }
  0x43   : > { %s6392_s0 = sshra.s32 %s288_s20, 4  ;;  %s6393_s0 = int_to_ptr.hbm [resolvable:$true] %s6392_s0 }
  0x44   : > { %s6394_s29 = scalar_lea.hbm %s6393_s0, 1440  ;;  %p6400_p6 = scmp.lt.s32.totalorder %s6393_s0, %s9171_s3 }
  0x45   : > { %p6395_p2 = scmp.ne.s32.totalorder %s6393_s0, %s6394_s29  ;;  %p6401_p9 = scmp.lt.s32.totalorder %s6399_s13, %s6394_s29 }
  0x47   : > { %p6397_p3 = pnand %p6395_p2, %p6336_p10  ;;  %p6402_p11 = por %p6401_p9, %p6400_p6 }
  0x49   : > { %p6398_p4 = pneg %p6397_p3 }
  0x4b   : > { %p6403_p12 = pnand %p6402_p11, %p6398_p4 }
  0x4d   : > { %6406 = shalt.err (!%p6403_p12)
}
  0x4e   : > { %s9270_s11 = smov 12   ;;  %s6204_s21 = smul.u32 12, %s6494_s24 }
  0x4f   : > { %6227 = dma.hbm_to_vmem [thread:$0]  (!%p6579_p8), %s288_s20, 23040, %s290_s19, %s6592_s18, %s9269_s8, %s9269_s8, %s9270_s11  }
  0x50   : > { %s303_s10 = scalar_lea.vmem [#allocation7], %s6203_s28  ;;  %s308_s0 = scalar_lea.hbm %s9172_s4, %s6204_s21 }
  0x51   : > { %s312_s1 = sshll.u32 %s303_s10, 4  ;;  %s310_s29 = sshll.u32 %s308_s0, 4  ;;  %s313_s1 = int_to_ptr.vmem [resolvable:$true] %s312_s1  ;;  %s311_s29 = int_to_ptr.hbm [resolvable:$true] %s310_s29 }
  0x52   : > { %s300_s27 = scalar_lea.sflag [#allocation8], %s6576_s7  ;;  %s6422_s12 = sshra.s32 %s311_s29, 4  ;;  %s6423_s12 = int_to_ptr.hbm [resolvable:$true] %s6422_s12 }
  0x53   : > { %s6424_s13 = scalar_lea.hbm %s6423_s12, 12  ;;  %s6429_s8 = scalar_lea.hbm %s9172_s4, 36 }
  0x54   : > { %p6425_p13 = scmp.ne.s32.totalorder %s6423_s12, %s6424_s13  ;;  %p6430_p2 = scmp.lt.s32.totalorder %s6423_s12, %s9172_s4 }
  0x55   : > { %p6431_p3 = scmp.lt.s32.totalorder %s6429_s8, %s6424_s13 }
  0x56   : > { %p6427_p0 = pnand %p6425_p13, %p6336_p10 }
  0x57   : > { %p6432_p4 = por %p6431_p3, %p6430_p2 }
  0x58   : > { %p6428_p1 = pneg %p6427_p0 }
  0x5a   : > { %p6433_p6 = pnand %p6432_p4, %p6428_p1 }
  0x5c   : > { %6436 = shalt.err (!%p6433_p6)
}
  0x5d   : > { %6230 = dma.hbm_to_vmem [thread:$0]  (!%p6579_p8), %s311_s29, 192, %s313_s1, %s300_s27  }
  0x5e   : > { %329 = sbr.rel (%p6613_p5) target bundleno = 2074 (0x81a), region = 44 }
  0x63   : > { %s331_s7 = sand.u32 1, %s6486_s22  }
  0x64   : > { %s6205_s20 = smul.u32 96, %s331_s7  ;;  %s332_s17 = scalar_lea.sflag [#allocation3], %s331_s7 }
  0x66   : > { %s6679_s11 = scalar_lea.vmem [#allocation2], %s6205_s20 }
  0x67   : > { %6469 = dma.done.wait (%p6571_p7), %s332_s17, 1536  }
  0x68   : > { %6471 = vsyncadd (%p6571_p7), %s332_s17, 4294965760  ;;  %s341_s21 = sand.u32 1, %s6554_s25   ;;  %s6686_s10 = scalar_lea.vmem [#allocation4], %s6205_s20 }
  0x69   : > { %s342_s9 = scalar_lea.sflag [#allocation5], %s341_s21 }
  0x6a   : > { %6473 = dma.done.wait (%p6571_p7), %s342_s9, 24576  }
  0x6b   : > { %6475 = vsyncadd (%p6571_p7), %s342_s9, 4294942720  ;;  %s6206_s16 = smul.u32 1440, %s331_s7  ;;  %s362_s14 = scalar_lea.sflag [#allocation8], %s331_s7 }
  0x6c   : > { %s6207_s1 = smul.u32 12, %s331_s7 }
  0x6d   : > { %s6692_s15 = scalar_lea.vmem [#allocation6], %s6206_s16 }
  0x6e   : > { %s6694_s0 = scalar_lea.vmem [#allocation7], %s6207_s1 }
  0x6f   : > { %6477 = dma.done.wait (%p6571_p7), %s362_s14, 192  }
  0x70   : > { %6479 = vsyncadd (%p6571_p7), %s362_s14, 4294967104  ;;  %v5104_v0 = vld [vmem:[%s6692_s15 + $0xa8] sm:$0xf]  ;;  %v5979_v1 = vld [vmem:[%s6692_s15 + $0xb0] sm:$0xf0]  ;;  %vm1162_vm0 = vcmask 523264  }
  0x71   : > { %v5248_v2 = vld [vmem:[%s6692_s15 + $0x1c8] sm:$0xf]  ;;  %v5105_v3 = vor.u32 %v5979_v1, %v5104_v0  ;;  %v6015_v4 = vld [vmem:[%s6692_s15 + $0x1d0] sm:$0xf0]  ;;  %v5978_v5 = vld [vmem:[%s6692_s15 + $0xac] sm:$0xf] }
  0x72   : > { %v5106_v6 = vld [vmem:[%s6692_s15 + $0xb4] sm:$0xf0]  ;;  %v5249_v7 = vor.u32 %v6015_v4, %v5248_v2  ;;  %v5200_v9 = vld [vmem:[%s6692_s15 + $0x168] sm:$0xf]  ;;  %v6003_v10 = vld [vmem:[%s6692_s15 + $0x170] sm:$0xf0] }
  0x73   : > { %v5109_v8 = vor.u32 %v5978_v5, %v5106_v6  ;;  %v5092_v11 = vld [vmem:[%s6692_s15 + $0x90] sm:$0xf]  ;;  %1187 = vmatpush.bf16.msra.mxu0 %v5105_v3  ;;  %v5201_v12 = vor.u32 %v6003_v10, %v5200_v9  ;;  %v5976_v13 = vld [vmem:[%s6692_s15 + $0x98] sm:$0xf0]  ;;  %v5975_v18 = vld [vmem:[%s6692_s15 + $0x94] sm:$0xf] }
  0x74   : > { %v5236_v14 = vld [vmem:[%s6692_s15 + $0x1b0] sm:$0xf]  ;;  %v6012_v15 = vld [vmem:[%s6692_s15 + $0x1b8] sm:$0xf0]  ;;  %1289 = vmatpush.bf16.msra.mxu2 %v5249_v7  ;;  %v5093_v16 = vor.u32 %v5976_v13, %v5092_v11  ;;  %v5094_v19 = vld [vmem:[%s6692_s15 + $0x9c] sm:$0xf0] }
  0x75   : > { %1334 = vmatpush.bf16.msra.mxu3 %v5109_v8  ;;  %v5237_v17 = vor.u32 %v6012_v15, %v5236_v14  ;;  %v5188_v20 = vld [vmem:[%s6692_s15 + $0x150] sm:$0xf]  ;;  %1236 = vmatpush.bf16.msra.mxu1 %v5201_v12  ;;  %v5097_v21 = vor.u32 %v5975_v18, %v5094_v19  ;;  %v6000_v22 = vld [vmem:[%s6692_s15 + $0x158] sm:$0xf0]  ;;  %v5080_v23 = vld [vmem:[%s6692_s15 + $0x78] sm:$0xf] }
  0x76   : > { %v5973_v24 = vld [vmem:[%s6692_s15 + $0x80] sm:$0xf0]  ;;  %v5189_v25 = vor.u32 %v6000_v22, %v5188_v20  ;;  %v5224_v26 = vld [vmem:[%s6692_s15 + $0x198] sm:$0xf]  ;;  %v5972_v28 = vld [vmem:[%s6692_s15 + $0x7c] sm:$0xf] }
  0x77   : > { %v6009_v27 = vld [vmem:[%s6692_s15 + $0x1a0] sm:$0xf0]  ;;  %1188 = vmatpush.bf16.msra.mxu0 %v5093_v16  ;;  %v5081_v29 = vor.u32 %v5973_v24, %v5080_v23  ;;  %v5082_v30 = vld [vmem:[%s6692_s15 + $0x84] sm:$0xf0]  ;;  %v5176_v31 = vld [vmem:[%s6692_s15 + $0x138] sm:$0xf] }
  0x78   : > { %v5997_v32 = vld [vmem:[%s6692_s15 + $0x140] sm:$0xf0]  ;;  %1290 = vmatpush.bf16.msra.mxu2 %v5237_v17  ;;  %v5225_v33 = vor.u32 %v6009_v27, %v5224_v26  ;;  %v5085_v34 = vor.u32 %v5972_v28, %v5082_v30  ;;  %v5068_v35 = vld [vmem:[%s6692_s15 + $0x60] sm:$0xf]  ;;  %v5970_v36 = vld [vmem:[%s6692_s15 + $0x68] sm:$0xf0] }
  0x79   : > { %1335 = vmatpush.bf16.msra.mxu3 %v5097_v21  ;;  %v5212_v37 = vld [vmem:[%s6692_s15 + $0x180] sm:$0xf]  ;;  %1237 = vmatpush.bf16.msra.mxu1 %v5189_v25  ;;  %v5177_v38 = vor.u32 %v5997_v32, %v5176_v31  ;;  %v6006_v39 = vld [vmem:[%s6692_s15 + $0x188] sm:$0xf0]  ;;  %v5969_v40 = vld [vmem:[%s6692_s15 + $0x64] sm:$0xf]  ;;  %v5069_v44 = vor.u32 %v5970_v36, %v5068_v35 }
  0x7a   : > { %v5070_v41 = vld [vmem:[%s6692_s15 + $0x6c] sm:$0xf0]  ;;  %v5164_v42 = vld [vmem:[%s6692_s15 + $0x120] sm:$0xf]  ;;  %v5994_v43 = vld [vmem:[%s6692_s15 + $0x128] sm:$0xf0]  ;;  %v5213_v46 = vor.u32 %v6006_v39, %v5212_v37 }
  0x7b   : > { %1189 = vmatpush.bf16.msra.mxu0 %v5081_v29  ;;  %v4770_v45 = vld [vmem:[%s6679_s11 + $0x8] sm:$0xf]  ;;  %v5073_v47 = vor.u32 %v5969_v40, %v5070_v41  ;;  %v5935_v48 = vld [vmem:[%s6679_s11 + $0x10] sm:$0xf0]  ;;  %v5165_v51 = vor.u32 %v5994_v43, %v5164_v42  ;;  %v5966_v52 = vld [vmem:[%s6692_s15 + $0x4c] sm:$0xf] }
  0x7c   : > { %1291 = vmatpush.bf16.msra.mxu2 %v5225_v33  ;;  %v5056_v49 = vld [vmem:[%s6692_s15 + $0x48] sm:$0xf]  ;;  %v5967_v50 = vld [vmem:[%s6692_s15 + $0x50] sm:$0xf0]  ;;  %v5058_v53 = vld [vmem:[%s6692_s15 + $0x54] sm:$0xf0]  ;;  %v6740_v56 = vor.u32 %v5935_v48, %v4770_v45 }
  0x7d   : > { %1336 = vmatpush.bf16.msra.mxu3 %v5085_v34  ;;  %1238 = vmatpush.bf16.msra.mxu1 %v5177_v38  ;;  %v5152_v54 = vld [vmem:[%s6692_s15 + $0x108] sm:$0xf]  ;;  %v5991_v55 = vld [vmem:[%s6692_s15 + $0x110] sm:$0xf0]  ;;  %v5057_v57 = vor.u32 %v5967_v50, %v5056_v49  ;;  %v5061_v58 = vor.u32 %v5966_v52, %v5058_v53  ;;  %v5044_v59 = vld [vmem:[%s6692_s15 + $0x30] sm:$0xf] }
  0x7e   : > { %9271 = vst [vmem:[#allocation13_spill] sm:$0xff] %v6740_v56  ;;  %v5964_v60 = vld [vmem:[%s6692_s15 + $0x38] sm:$0xf0]  ;;  %v5963_v61 = vld [vmem:[%s6692_s15 + $0x34] sm:$0xf]  ;;  %v5153_v62 = vor.u32 %v5991_v55, %v5152_v54  ;;  %p420_p7 = scmp.lt.s32.totalorder %s6554_s25, 2 }
  0x7f   : > { %1190 = vmatpush.bf16.msra.mxu0 %v5069_v44  ;;  %v5046_v63 = vld [vmem:[%s6692_s15 + $0x3c] sm:$0xf0]  ;;  %v6002_v0 = vld [vmem:[%s6692_s15 + $0x16c] sm:$0xf]  ;;  %v5202_v1 = vld [vmem:[%s6692_s15 + $0x174] sm:$0xf0]  ;;  %v5045_v5 = vor.u32 %v5964_v60, %v5044_v59 }
  0x80   : > { %1292 = vmatpush.bf16.msra.mxu2 %v5213_v46  ;;  %v5140_v2 = vld [vmem:[%s6692_s15 + $0xf0] sm:$0xf]  ;;  %v5988_v3 = vld [vmem:[%s6692_s15 + $0xf8] sm:$0xf0]  ;;  %v5205_v4 = vor.u32 %v6002_v0, %v5202_v1  ;;  %v5049_v6 = vor.u32 %v5963_v61, %v5046_v63  ;;  %v5032_v7 = vld [vmem:[%s6692_s15 + $0x18] sm:$0xf] }
  0x81   : > { %1337 = vmatpush.bf16.msra.mxu3 %v5073_v47  ;;  %1239 = vmatpush.bf16.msra.mxu1 %v5165_v51  ;;  %v5961_v8 = vld [vmem:[%s6692_s15 + $0x20] sm:$0xf0]  ;;  %v5141_v9 = vor.u32 %v5988_v3, %v5140_v2  ;;  %v5960_v10 = vld [vmem:[%s6692_s15 + $0x1c] sm:$0xf]  ;;  %v5034_v11 = vld [vmem:[%s6692_s15 + $0x24] sm:$0xf0] }
  0x82   : > { %v5128_v12 = vld [vmem:[%s6692_s15 + $0xd8] sm:$0xf]  ;;  %v5985_v13 = vld [vmem:[%s6692_s15 + $0xe0] sm:$0xf0]  ;;  %v5999_v14 = vld [vmem:[%s6692_s15 + $0x154] sm:$0xf]  ;;  %v5033_v16 = vor.u32 %v5961_v8, %v5032_v7  ;;  %v5037_v18 = vor.u32 %v5960_v10, %v5034_v11 }
  0x83   : > { %5258 = vmatmul.msk.bf16.vlgmr.msra.gmra.mxu2 %vm1162_vm0, %v6740_v56  ;;  %1191 = vmatpush.bf16.msra.mxu0 %v5057_v57  ;;  %v5190_v15 = vld [vmem:[%s6692_s15 + $0x15c] sm:$0xf0]  ;;  %v5958_v20 = vld [vmem:[%s6692_s15 + $0x8] sm:$0xf0]  ;;  %v5996_v21 = vld [vmem:[%s6692_s15 + $0x13c] sm:$0xf]  ;;  %v5129_v22 = vor.u32 %v5985_v13, %v5128_v12 }
  0x84   : > { %1383 = vmatpush.bf16.msrb.mxu2 %v5205_v4  ;;  %v5193_v17 = vor.u32 %v5999_v14, %v5190_v15  ;;  %v5020_v19 = vld [vmem:[%s6692_s15] sm:$0xf]  ;;  %v5957_v23 = vld [vmem:[%s6692_s15 + $0x4] sm:$0xf]  ;;  %v5022_v24 = vld [vmem:[%s6692_s15 + $0xc] sm:$0xf0] }
  0x85   : > { %1338 = vmatpush.bf16.msra.mxu3 %v5061_v58  ;;  %1240 = vmatpush.bf16.msra.mxu1 %v5153_v62  ;;  %v5178_v25 = vld [vmem:[%s6692_s15 + $0x144] sm:$0xf0]  ;;  %v5116_v26 = vld [vmem:[%s6692_s15 + $0xc0] sm:$0xf]  ;;  %v5982_v27 = vld [vmem:[%s6692_s15 + $0xc8] sm:$0xf0]  ;;  %v5021_v29 = vor.u32 %v5958_v20, %v5020_v19  ;;  %v5025_v32 = vor.u32 %v5957_v23, %v5022_v24 }
  0x86   : > { %v5181_v28 = vor.u32 %v5996_v21, %v5178_v25  ;;  %v4762_v30 = vld [vmem:[%s6679_s11] sm:$0xf]  ;;  %v5934_v31 = vld [vmem:[%s6679_s11 + $0x8] sm:$0xf0]  ;;  %v5117_v35 = vor.u32 %v5982_v27, %v5116_v26  ;;  %v5933_v36 = vld [vmem:[%s6679_s11 + $0x4] sm:$0xf] }
  0x87   : > { %1192 = vmatpush.bf16.msra.mxu0 %v5045_v5  ;;  %v4782_v33 = vld [vmem:[%s6679_s11 + $0x20] sm:$0xf]  ;;  %v5938_v34 = vld [vmem:[%s6679_s11 + $0x28] sm:$0xf0]  ;;  %v4764_v37 = vld [vmem:[%s6679_s11 + $0xc] sm:$0xf0]  ;;  %v6774_v38 = vor.u32 %v5934_v31, %v4762_v30 }
  0x88   : > { %1384 = vmatpush.bf16.msrb.mxu2 %v5193_v17  ;;  %v6776_v39 = vor.u32 %v5938_v34, %v4782_v33  ;;  %v6778_v40 = vor.u32 %v5933_v36, %v4764_v37  ;;  %v5993_v41 = vld [vmem:[%s6692_s15 + $0x124] sm:$0xf]  ;;  %v5166_v42 = vld [vmem:[%s6692_s15 + $0x12c] sm:$0xf0]  ;;  %v4774_v44 = vld [vmem:[%s6679_s11 + $0x18] sm:$0xf] }
  0x89   : > { %1339 = vmatpush.bf16.msra.mxu3 %v5049_v6  ;;  %1241 = vmatpush.bf16.msra.mxu1 %v5141_v9  ;;  %v5169_v43 = vor.u32 %v5993_v41, %v5166_v42  ;;  %v5937_v45 = vld [vmem:[%s6679_s11 + $0x20] sm:$0xf0]  ;;  %v4794_v46 = vld [vmem:[%s6679_s11 + $0x38] sm:$0xf]  ;;  %v5936_v48 = vld [vmem:[%s6679_s11 + $0x1c] sm:$0xf] }
  0x8a   : > { %v5941_v47 = vld [vmem:[%s6679_s11 + $0x40] sm:$0xf0]  ;;  %v4776_v49 = vld [vmem:[%s6679_s11 + $0x24] sm:$0xf0]  ;;  %v6793_v50 = vor.u32 %v5937_v45, %v4774_v44  ;;  %v5208_v53 = vld [vmem:[%s6692_s15 + $0x170] sm:$0xf] }
  0x8b   : > { %1193 = vmatpush.bf16.msra.mxu0 %v5033_v16  ;;  %v6795_v51 = vor.u32 %v5941_v47, %v4794_v46  ;;  %v6797_v52 = vor.u32 %v5936_v48, %v4776_v49  ;;  %v6004_v54 = vld [vmem:[%s6692_s15 + $0x178] sm:$0xf0]  ;;  %v5990_v55 = vld [vmem:[%s6692_s15 + $0x10c] sm:$0xf]  ;;  %v5154_v58 = vld [vmem:[%s6692_s15 + $0x114] sm:$0xf0] }
  0x8c   : > { %1385 = vmatpush.bf16.msrb.mxu2 %v5181_v28  ;;  %v5209_v57 = vor.u32 %v6004_v54, %v5208_v53  ;;  %v5157_v59 = vor.u32 %v5990_v55, %v5154_v58  ;;  %v4786_v60 = vld [vmem:[%s6679_s11 + $0x30] sm:$0xf]  ;;  %v5940_v61 = vld [vmem:[%s6679_s11 + $0x38] sm:$0xf0]  ;;  %v5939_v0 = vld [vmem:[%s6679_s11 + $0x34] sm:$0xf] }
  0x8d   : > { %1340 = vmatpush.bf16.msra.mxu3 %v5037_v18  ;;  %1242 = vmatpush.bf16.msra.mxu1 %v5129_v22  ;;  %v4806_v62 = vld [vmem:[%s6679_s11 + $0x50] sm:$0xf]  ;;  %v5944_v63 = vld [vmem:[%s6679_s11 + $0x58] sm:$0xf0]  ;;  %v4788_v1 = vld [vmem:[%s6679_s11 + $0x3c] sm:$0xf0]  ;;  %v6814_v2 = vor.u32 %v5940_v61, %v4786_v60 }
  0x8e   : > { %v6816_v3 = vor.u32 %v5944_v63, %v4806_v62  ;;  %v6818_v4 = vor.u32 %v5939_v0, %v4788_v1  ;;  %v5196_v5 = vld [vmem:[%s6692_s15 + $0x158] sm:$0xf]  ;;  %v6001_v6 = vld [vmem:[%s6692_s15 + $0x160] sm:$0xf0]  ;;  %v5987_v7 = vld [vmem:[%s6692_s15 + $0xf4] sm:$0xf] }
  0x8f   : > { %1194 = vmatpush.bf16.msra.mxu0 %v5021_v29  ;;  %v5197_v8 = vor.u32 %v6001_v6, %v5196_v5  ;;  %v5142_v9 = vld [vmem:[%s6692_s15 + $0xfc] sm:$0xf0]  ;;  %v4798_v11 = vld [vmem:[%s6679_s11 + $0x48] sm:$0xf]  ;;  %v5943_v12 = vld [vmem:[%s6679_s11 + $0x50] sm:$0xf0] }
  0x90   : > { %1386 = vmatpush.bf16.msrb.mxu2 %v5169_v43  ;;  %v5145_v10 = vor.u32 %v5987_v7, %v5142_v9  ;;  %v4818_v13 = vld [vmem:[%s6686_s10 + $0x8] sm:$0xf]  ;;  %v5947_v14 = vld [vmem:[%s6686_s10 + $0x10] sm:$0xf0]  ;;  %v5942_v15 = vld [vmem:[%s6679_s11 + $0x4c] sm:$0xf]  ;;  %v6835_v17 = vor.u32 %v5943_v12, %v4798_v11 }
  0x91   : > { %1341 = vmatpush.bf16.msra.mxu3 %v5025_v32  ;;  %1243 = vmatpush.bf16.msra.mxu1 %v5117_v35  ;;  %v4800_v16 = vld [vmem:[%s6679_s11 + $0x54] sm:$0xf0]  ;;  %v6837_v18 = vor.u32 %v5947_v14, %v4818_v13  ;;  %v5184_v20 = vld [vmem:[%s6692_s15 + $0x140] sm:$0xf]  ;;  %v5998_v21 = vld [vmem:[%s6692_s15 + $0x148] sm:$0xf0] }
  0x92   : > { %1195 = vmatmul.bf16.vlgmr.msra.gmra.mxu0 %v6774_v38  ;;  %v6839_v19 = vor.u32 %v5942_v15, %v4800_v16  ;;  %v5984_v22 = vld [vmem:[%s6692_s15 + $0xdc] sm:$0xf]  ;;  %v5185_v23 = vor.u32 %v5998_v21, %v5184_v20  ;;  %v5130_v24 = vld [vmem:[%s6692_s15 + $0xe4] sm:$0xf0]  ;;  %v4810_v26 = vld [vmem:[%s6686_s10] sm:$0xf] }
  0x93   : > { %5259 = vmatmul.msk.bf16.gmra.mxu2 %vm1162_vm0, %v6776_v39  ;;  %v5133_v25 = vor.u32 %v5984_v22, %v5130_v24  ;;  %v5946_v27 = vld [vmem:[%s6686_s10 + $0x8] sm:$0xf0]  ;;  %v4830_v28 = vld [vmem:[%s6686_s10 + $0x20] sm:$0xf]  ;;  %v5945_v30 = vld [vmem:[%s6686_s10 + $0x4] sm:$0xf] }
  0x94   : > { %1342 = vmatmul.bf16.vlgmr.msra.gmra.mxu3 %v6774_v38  ;;  %1244 = vmatmul.bf16.vlgmr.msra.gmra.mxu1 %v6778_v40  ;;  %v5950_v29 = vld [vmem:[%s6686_s10 + $0x28] sm:$0xf0]  ;;  %v4812_v31 = vld [vmem:[%s6686_s10 + $0xc] sm:$0xf0]  ;;  %v6856_v32 = vor.u32 %v5946_v27, %v4810_v26  ;;  %v5250_v36 = vld [vmem:[%s6692_s15 + $0x1d4] sm:$0xf0] }
  0x95   : > { %1530 = vmatpush.bf16.msra.mxu3 %v5209_v57  ;;  %1387 = vmatpush.bf16.msrb.mxu2 %v5157_v59  ;;  %v6858_v33 = vor.u32 %v5950_v29, %v4830_v28  ;;  %v6860_v34 = vor.u32 %v5945_v30, %v4812_v31  ;;  %v6014_v35 = vld [vmem:[%s6692_s15 + $0x1cc] sm:$0xf]  ;;  %v5112_v37 = vld [vmem:[%s6692_s15 + $0xb0] sm:$0xf]  ;;  %v5980_v42 = vld [vmem:[%s6692_s15 + $0xb8] sm:$0xf0] }
  0x96   : > { %v5253_v41 = vor.u32 %v6014_v35, %v5250_v36  ;;  %v5100_v43 = vld [vmem:[%s6692_s15 + $0x98] sm:$0xf]  ;;  %v5977_v44 = vld [vmem:[%s6692_s15 + $0xa0] sm:$0xf0]  ;;  %v5113_v45 = vor.u32 %v5980_v42, %v5112_v37  ;;  %v5172_v46 = vld [vmem:[%s6692_s15 + $0x128] sm:$0xf] }
  0x97   : > { %9272 = vst [vmem:[#allocation14_spill] sm:$0xff] %v6858_v33  ;;  %v5995_v47 = vld [vmem:[%s6692_s15 + $0x130] sm:$0xf0]  ;;  %v5981_v48 = vld [vmem:[%s6692_s15 + $0xc4] sm:$0xf]  ;;  %v5101_v54 = vor.u32 %v5977_v44, %v5100_v43  ;;  %s9533_s25 = smov (!%p420_p7, %s6554_s25), 2 }
  0x98   : > { %1436 = vmatpush.bf16.msrb.mxu0 %v5253_v41  ;;  %v5173_v49 = vor.u32 %v5995_v47, %v5172_v46  ;;  %v5118_v53 = vld [vmem:[%s6692_s15 + $0xcc] sm:$0xf0]  ;;  %1481 = vmatpush.bf16.msra.mxu1 %v5113_v45  ;;  %v5088_v57 = vld [vmem:[%s6692_s15 + $0x80] sm:$0xf]  ;;  %v5974_v58 = vld [vmem:[%s6692_s15 + $0x88] sm:$0xf0] }
  0x99   : > { %1531 = vmatpush.bf16.msra.mxu3 %v5197_v8  ;;  %1388 = vmatpush.bf16.msrb.mxu2 %v5145_v10  ;;  %v5121_v55 = vor.u32 %v5981_v48, %v5118_v53  ;;  %v4822_v59 = vld [vmem:[%s6686_s10 + $0x18] sm:$0xf]  ;;  %v5949_v60 = vld [vmem:[%s6686_s10 + $0x20] sm:$0xf0]  ;;  %v5089_v61 = vor.u32 %v5974_v58, %v5088_v57  ;;  %v5948_v0 = vld [vmem:[%s6686_s10 + $0x1c] sm:$0xf] }
  0x9a   : > { %v4842_v62 = vld [vmem:[%s6686_s10 + $0x38] sm:$0xf]  ;;  %v5953_v63 = vld [vmem:[%s6686_s10 + $0x40] sm:$0xf0]  ;;  %v4824_v1 = vld [vmem:[%s6686_s10 + $0x24] sm:$0xf0]  ;;  %v6885_v5 = vor.u32 %v5949_v60, %v4822_v59 }
  0x9b   : > { %v5076_v6 = vld [vmem:[%s6692_s15 + $0x68] sm:$0xf]  ;;  %v5971_v7 = vld [vmem:[%s6692_s15 + $0x70] sm:$0xf0]  ;;  %v6889_v8 = vor.u32 %v5953_v63, %v4842_v62  ;;  %v6891_v9 = vor.u32 %v5948_v0, %v4824_v1  ;;  %v5160_v11 = vld [vmem:[%s6692_s15 + $0x110] sm:$0xf] }
  0x9c   : > { %1482 = vmatpush.bf16.msra.mxu1 %v5101_v54  ;;  %v5077_v10 = vor.u32 %v5971_v7, %v5076_v6  ;;  %v5992_v12 = vld [vmem:[%s6692_s15 + $0x118] sm:$0xf0]  ;;  %v5064_v14 = vld [vmem:[%s6692_s15 + $0x50] sm:$0xf]  ;;  %v6011_v20 = vld [vmem:[%s6692_s15 + $0x1b4] sm:$0xf] }
  0x9d   : > { %1532 = vmatpush.bf16.msra.mxu3 %v5185_v23  ;;  %1389 = vmatpush.bf16.msrb.mxu2 %v5133_v25  ;;  %9273 = vst [vmem:[#allocation15_spill] sm:$0xff] %v6889_v8  ;;  %v5161_v13 = vor.u32 %v5992_v12, %v5160_v11  ;;  %v5968_v15 = vld [vmem:[%s6692_s15 + $0x58] sm:$0xf0]  ;;  %v5238_v21 = vld [vmem:[%s6692_s15 + $0x1bc] sm:$0xf0]  ;;  %s6208_s30 = smul.u32 320, %s9533_s25 }
  0x9e   : > { %9274 = vst [vmem:[#allocation16_spill] sm:$0xff] %v6891_v9  ;;  %v5065_v16 = vor.u32 %v5968_v15, %v5064_v14  ;;  %v5148_v22 = vld [vmem:[%s6692_s15 + $0xf8] sm:$0xf]  ;;  %v5241_v23 = vor.u32 %v6011_v20, %v5238_v21  ;;  %v5989_v24 = vld [vmem:[%s6692_s15 + $0x100] sm:$0xf0]  ;;  %s6209_s13 = smul.u32 160, %s9533_s25 }
  0x9f   : > { %v5052_v25 = vld [vmem:[%s6692_s15 + $0x38] sm:$0xf]  ;;  %v5965_v26 = vld [vmem:[%s6692_s15 + $0x40] sm:$0xf0]  ;;  %v5149_v27 = vor.u32 %v5989_v24, %v5148_v22  ;;  %v6008_v28 = vld [vmem:[%s6692_s15 + $0x19c] sm:$0xf]  ;;  %s8552_s12 = scalar_lea.vmem %s9170_s2, %s6208_s30 }
  0xa0   : > { %1483 = vmatpush.bf16.msra.mxu1 %v5089_v61  ;;  %v5226_v29 = vld [vmem:[%s6692_s15 + $0x1a4] sm:$0xf0]  ;;  %v5136_v30 = vld [vmem:[%s6692_s15 + $0xe0] sm:$0xf]  ;;  %1437 = vmatpush.bf16.msrb.mxu0 %v5241_v23  ;;  %v5986_v35 = vld [vmem:[%s6692_s15 + $0xe8] sm:$0xf0]  ;;  %v5053_v36 = vor.u32 %v5965_v26, %v5052_v25  ;;  %s8603_s8 = scalar_lea.vmem %s9173_s5, %s6209_s13 }
  0xa1   : > { %1533 = vmatpush.bf16.msra.mxu3 %v5173_v49  ;;  %1390 = vmatpush.bf16.msrb.mxu2 %v5121_v55  ;;  %v5229_v31 = vor.u32 %v6008_v28, %v5226_v29  ;;  %v5137_v37 = vor.u32 %v5986_v35, %v5136_v30  ;;  %v4834_v41 = vld [vmem:[%s6686_s10 + $0x30] sm:$0xf]  ;;  %v5952_v42 = vld [vmem:[%s6686_s10 + $0x38] sm:$0xf0]  ;;  %v5040_v44 = vld [vmem:[%s6692_s15 + $0x20] sm:$0xf] }
  0xa2   : > { %1200 = vmatmul.bf16.gmra.mxu0 %v6793_v50  ;;  %v4854_v43 = vld [vmem:[%s6686_s10 + $0x50] sm:$0xf]  ;;  %v5962_v45 = vld [vmem:[%s6692_s15 + $0x28] sm:$0xf0]  ;;  %v5956_v46 = vld [vmem:[%s6686_s10 + $0x58] sm:$0xf0]  ;;  %v6923_v57 = vor.u32 %v5952_v42, %v4834_v41 }
  0xa3   : > { %5260 = vmatmul.msk.bf16.gmra.mxu2 %vm1162_vm0, %v6795_v51  ;;  %v5951_v47 = vld [vmem:[%s6686_s10 + $0x34] sm:$0xf]  ;;  %v4836_v48 = vld [vmem:[%s6686_s10 + $0x3c] sm:$0xf0]  ;;  %v5041_v49 = vor.u32 %v5962_v45, %v5040_v44  ;;  %v6005_v53 = vld [vmem:[%s6692_s15 + $0x184] sm:$0xf]  ;;  %v6928_v62 = vor.u32 %v5956_v46, %v4854_v43 }
  0xa4   : > { %1347 = vmatmul.bf16.gmra.mxu3 %v6793_v50  ;;  %1249 = vmatmul.bf16.gmra.mxu1 %v6797_v52  ;;  %v5214_v54 = vld [vmem:[%s6692_s15 + $0x18c] sm:$0xf0]  ;;  %v5124_v55 = vld [vmem:[%s6692_s15 + $0xc8] sm:$0xf]  ;;  %v6016_v59 = vld [vmem:[%s6692_s15 + $0x1d8] sm:$0xf0]  ;;  %v6931_v6 = vor.u32 %v5951_v47, %v4836_v48 }
  0xa5   : > { %1534 = vmatpush.bf16.msra.mxu3 %v5161_v13  ;;  %1484 = vmatpush.bf16.msra.mxu1 %v5077_v10  ;;  %v5256_v58 = vld [vmem:[%s6692_s15 + $0x1d0] sm:$0xf]  ;;  %v5217_v60 = vor.u32 %v6005_v53, %v5214_v54  ;;  %v5983_v61 = vld [vmem:[%s6692_s15 + $0xd0] sm:$0xf0]  ;;  %v5028_v1 = vld [vmem:[%s6692_s15 + $0x8] sm:$0xf] }
  0xa6   : > { %1438 = vmatpush.bf16.msrb.mxu0 %v5229_v31  ;;  %v5257_v63 = vor.u32 %v6016_v59, %v5256_v58  ;;  %v5125_v0 = vor.u32 %v5983_v61, %v5124_v55  ;;  %9275 = vst [vmem:[#allocation17_spill] sm:$0xff] %v6931_v6  ;;  %v5959_v7 = vld [vmem:[%s6692_s15 + $0x10] sm:$0xf0]  ;;  %v4846_v11 = vld [vmem:[%s6686_s10 + $0x48] sm:$0xf]  ;;  %s5932_s28 = sshll.u32 %s9533_s25, 6 }
  0xa7   : > { %v5029_v10 = vor.u32 %v5959_v7, %v5028_v1  ;;  %v5955_v12 = vld [vmem:[%s6686_s10 + $0x50] sm:$0xf0]  ;;  %v5954_v13 = vld [vmem:[%s6686_s10 + $0x4c] sm:$0xf]  ;;  %v4848_v14 = vld [vmem:[%s6686_s10 + $0x54] sm:$0xf0]  ;;  %s9133_s20 = scalar_lea.vmem %s9174_s6, %s5932_s28 }
  0xa8   : > { %1583 = vmatpush.bf16.msra.mxu2 %v5257_v63  ;;  %v6943_v15 = vor.u32 %v5955_v12, %v4846_v11  ;;  %v6952_v21 = vld [vmem:[%s6694_s0] ss:$4 sm:$0x7]  ;;  %v5244_v25 = vld [vmem:[%s6692_s15 + $0x1b8] sm:$0xf] }
  0xa9   : > { %1485 = vmatpush.bf16.msra.mxu1 %v5065_v16  ;;  %1535 = vmatpush.bf16.msra.mxu3 %v5149_v27  ;;  %v6945_v16 = vor.u32 %v5954_v13, %v4848_v14  ;;  %v6955_v22 = vperm.slane %v6952_v21, 0  ;;  %v6013_v26 = vld [vmem:[%s6692_s15 + $0x1c0] sm:$0xf0]  ;;  %v5512_v7 = vld [vmem:[%s6692_s15 + $0x3a8] sm:$0xf] }
  0xaa   : > { %1439 = vmatpush.bf16.msrb.mxu0 %v5217_v60  ;;  %v5245_v28 = vor.u32 %v6013_v26, %v5244_v25  ;;  %v5488_v14 = vld [vmem:[%s6692_s15 + $0x378] sm:$0xf] }
  0xac   : > { %1584 = vmatpush.bf16.msra.mxu2 %v5245_v28 }
  0xad   : > { %1486 = vmatpush.bf16.msra.mxu1 %v5053_v36  ;;  %1536 = vmatpush.bf16.msra.mxu3 %v5137_v37 }
  0xb1   : > { %1487 = vmatpush.bf16.msra.mxu1 %v5041_v49  ;;  %1537 = vmatpush.bf16.msra.mxu3 %v5125_v0 }
  0xb2   : > { %1205 = vmatmul.bf16.gmra.mxu0 %v6814_v2 }
  0xb3   : > { %5261 = vmatmul.msk.bf16.gmra.mxu2 %vm1162_vm0, %v6816_v3 }
  0xb4   : > { %1352 = vmatmul.bf16.gmra.mxu3 %v6814_v2  ;;  %1254 = vmatmul.bf16.gmra.mxu1 %v6818_v4 }
  0xb5   : > { %1488 = vmatpush.bf16.msra.mxu1 %v5029_v10  ;;  %v6075_v10 = vld [vmem:[%s6692_s15 + $0x3b0] sm:$0xf0] }
  0xb6   : > { %v5513_v11 = vor.u32 %v6075_v10, %v5512_v7 }
  0xc2   : > { %1210 = vmatmul.bf16.gmra.mxu0 %v6835_v17 }
  0xc3   : > { %5262 = vmatmul.msk.bf16.gmra.mxu2 %vm1162_vm0, %v6837_v18 }
  0xc4   : > { %1357 = vmatmul.bf16.gmra.mxu3 %v6835_v17  ;;  %1259 = vmatmul.bf16.gmra.mxu1 %v6839_v19 }
  0xd2   : > { %1215 = vmatmul.bf16.gmra.mxu0 %v6856_v32 }
  0xd3   : > { %5263 = vmatmul.msk.bf16.gmra.mxu2 %vm1162_vm0, %v6858_v33 }
  0xd4   : > { %1362 = vmatmul.bf16.gmra.mxu3 %v6856_v32  ;;  %1264 = vmatmul.bf16.gmra.mxu1 %v6860_v34 }
  0xe2   : > { %1220 = vmatmul.bf16.gmra.mxu0 %v6885_v5 }
  0xe3   : > { %5264 = vmatmul.msk.bf16.gmra.mxu2 %vm1162_vm0, %v6889_v8 }
  0xe4   : > { %1367 = vmatmul.bf16.gmra.mxu3 %v6885_v5  ;;  %1269 = vmatmul.bf16.gmra.mxu1 %v6891_v9 }
  0xf2   : > { %1225 = vmatmul.bf16.gmra.mxu0 %v6923_v57 }
  0xf3   : > { %5265 = vmatmul.msk.bf16.gmra.mxu2 %vm1162_vm0, %v6928_v62 }
  0xf4   : > { %1372 = vmatmul.bf16.gmra.mxu3 %v6923_v57  ;;  %1274 = vmatmul.bf16.gmra.mxu1 %v6931_v6 }
 0x102   : > { %1230 = vmatmul.bf16.gmra.mxu0 %v6943_v15 }
 0x103   : > { %1391 = vmatmul.bf16.vlgmr.msrb.gmra.mxu2 %v6778_v40 }
 0x104   : > { %1377 = vmatmul.bf16.gmra.mxu3 %v6943_v15  ;;  %1279 = vmatmul.bf16.gmra.mxu1 %v6945_v16 }
 0x106   : > { %v1294_v20 = vpop.f32.mrf.mxu2 }
 0x10e   : > { %v1296_v23 = vpop.f32.mrf.mxu2 }
 0x10f   : > { %v1196_v24 = vpop.f32.mrf.mxu0 }
 0x110   : > { %v1197_v27 = vadd.f32 %v1196_v24, %v6955_v22  ;;  %v6010_v24 = vld [vmem:[%s6692_s15 + $0x1a8] sm:$0xf0] }
 0x111   : > { %v1245_v29 = vpop.f32.mrf.mxu1 }
 0x112   : > { %v1246_v30 = vadd.f32 %v1245_v29, %v1197_v27  ;;  %5266 = vmatmul.msk.bf16.vlgmr.msrb.gmra.mxu0 %vm1162_vm0, %v6740_v56 }
 0x113   : > { %1396 = vmatmul.bf16.gmra.mxu2 %v6797_v52 }
 0x114   : > { %1538 = vmatmul.bf16.vlgmr.msra.gmra.mxu3 %v6778_v40  ;;  %v6964_v31 = vadd.f32 %v1294_v20, %v1246_v30  ;;  %1489 = vmatmul.bf16.vlgmr.msra.gmra.mxu1 %v6774_v38 }
 0x115   : > { %2057 = vmatpush.bf16.msra.mxu3 %v5513_v11 }
 0x116   : > { %9276 = vst [vmem:[#allocation18_spill] sm:$0xff] %v6964_v31  ;;  %v1299_v35 = vpop.f32.mrf.mxu2  ;;  %v5640_v31 = vld [vmem:[%s6692_s15 + $0x470] sm:$0xf] }
 0x117   : > { %v6967_v36 = vpop.f32.mrf.mxu3  ;;  %v1198_v37 = vpop.f32.mrf.mxu0 }
 0x118   : > { %v1199_v41 = vadd.f32 %v1198_v37, %v6955_v22 }
 0x119   : > { %v1247_v42 = vpop.f32.mrf.mxu1 }
 0x11a   : > { %v1248_v43 = vadd.f32 %v1247_v42, %v1199_v41 }
 0x11c   : > { %v6970_v44 = vadd.f32 %v1296_v23, %v1248_v43  ;;  %v5232_v23 = vld [vmem:[%s6692_s15 + $0x1a0] sm:$0xf] }
 0x11d   : > { %v5233_v26 = vor.u32 %v6010_v24, %v5232_v23  ;;  %v5500_v24 = vld [vmem:[%s6692_s15 + $0x390] sm:$0xf] }
 0x11e   : > { %9277 = vst [vmem:[#allocation19_spill] sm:$0xff] %v6970_v44  ;;  %v1301_v46 = vpop.f32.mrf.mxu2  ;;  %v6100_v44 = vld [vmem:[%s6692_s15 + $0x478] sm:$0xf0] }
 0x11f   : > { %v6974_v47 = vpop.f32.mrf.mxu3  ;;  %v1201_v48 = vpop.f32.mrf.mxu0  ;;  %1585 = vmatpush.bf16.msra.mxu2 %v5233_v26 }
 0x120   : > { %v1202_v49 = vadd.f32 %v1201_v48, %v6955_v22 }
 0x121   : > { %v1250_v53 = vpop.f32.mrf.mxu1 }
 0x122   : > { %v1251_v54 = vadd.f32 %v1250_v53, %v1202_v49  ;;  %5267 = vmatmul.msk.bf16.gmra.mxu0 %vm1162_vm0, %v6776_v39  ;;  %v5332_v53 = vld [vmem:[%s6692_s15 + $0x240] sm:$0xf] }
 0x123   : > { %1401 = vmatmul.bf16.gmra.mxu2 %v6818_v4 }
 0x124   : > { %1543 = vmatmul.bf16.gmra.mxu3 %v6797_v52  ;;  %v6981_v55 = vadd.f32 %v1299_v35, %v1251_v54  ;;  %1494 = vmatmul.bf16.gmra.mxu1 %v6793_v50 }
 0x126   : > { %9278 = vst [vmem:[#allocation20_spill] sm:$0xff] %v6981_v55  ;;  %v1304_v58 = vpop.f32.mrf.mxu2  ;;  %v6064_v55 = vld [vmem:[%s6692_s15 + $0x358] sm:$0xf0] }
 0x127   : > { %v6984_v59 = vpop.f32.mrf.mxu3  ;;  %v1203_v60 = vpop.f32.mrf.mxu0 }
 0x128   : > { %v1204_v61 = vadd.f32 %v1203_v60, %v6955_v22 }
 0x129   : > { %v1252_v63 = vpop.f32.mrf.mxu1 }
 0x12a   : > { %v1253_v0 = vadd.f32 %v1252_v63, %v1204_v61 }
 0x12c   : > { %v6987_v1 = vadd.f32 %v1301_v46, %v1253_v0 }
 0x12e   : > { %9279 = vst [vmem:[#allocation21_spill] sm:$0xff] %v6987_v1  ;;  %v1306_v12 = vpop.f32.mrf.mxu2  ;;  %v5562_v1 = vld [vmem:[%s6692_s15 + $0x3e4] sm:$0xf0] }
 0x12f   : > { %v6991_v13 = vpop.f32.mrf.mxu3  ;;  %v1206_v20 = vpop.f32.mrf.mxu0 }
 0x130   : > { %v1207_v25 = vadd.f32 %v1206_v20, %v6955_v22 }
 0x131   : > { %v1255_v27 = vpop.f32.mrf.mxu1 }
 0x132   : > { %v1256_v28 = vadd.f32 %v1255_v27, %v1207_v25  ;;  %5268 = vmatmul.msk.bf16.gmra.mxu0 %vm1162_vm0, %v6795_v51  ;;  %v6072_v25 = vld [vmem:[%s6692_s15 + $0x398] sm:$0xf0] }
 0x133   : > { %1406 = vmatmul.bf16.gmra.mxu2 %v6839_v19  ;;  %v5501_v26 = vor.u32 %v6072_v25, %v5500_v24  ;;  %v5356_v25 = vld [vmem:[%s6692_s15 + $0x270] sm:$0xf] }
 0x134   : > { %1548 = vmatmul.bf16.gmra.mxu3 %v6818_v4  ;;  %v7002_v29 = vadd.f32 %v1304_v58, %v1256_v28  ;;  %1499 = vmatmul.bf16.gmra.mxu1 %v6814_v2 }
 0x135   : > { %2058 = vmatpush.bf16.msra.mxu3 %v5501_v26  ;;  %v6036_v26 = vld [vmem:[%s6692_s15 + $0x278] sm:$0xf0] }
 0x136   : > { %9280 = vst [vmem:[#allocation22_spill] sm:$0xff] %v7002_v29  ;;  %v1309_v30 = vpop.f32.mrf.mxu2 }
 0x137   : > { %v7005_v35 = vpop.f32.mrf.mxu3  ;;  %v1208_v37 = vpop.f32.mrf.mxu0 }
 0x138   : > { %v1209_v41 = vadd.f32 %v1208_v37, %v6955_v22 }
 0x139   : > { %v1257_v42 = vpop.f32.mrf.mxu1 }
 0x13a   : > { %v1258_v43 = vadd.f32 %v1257_v42, %v1209_v41  ;;  %v5220_v41 = vld [vmem:[%s6692_s15 + $0x188] sm:$0xf]  ;;  %v6007_v42 = vld [vmem:[%s6692_s15 + $0x190] sm:$0xf0] }
 0x13c   : > { %v7008_v46 = vadd.f32 %v1306_v12, %v1258_v43 }
 0x13e   : > { %9281 = vst [vmem:[#allocation23_spill] sm:$0xff] %v7008_v46  ;;  %v1311_v48 = vpop.f32.mrf.mxu2 }
 0x13f   : > { %v7010_v49 = vpop.f32.mrf.mxu3  ;;  %v1211_v54 = vpop.f32.mrf.mxu0 }
 0x140   : > { %v1212_v58 = vadd.f32 %v1211_v54, %v6955_v22  ;;  %v5221_v54 = vor.u32 %v6007_v42, %v5220_v41  ;;  %v5357_v42 = vor.u32 %v6036_v26, %v5356_v25 }
 0x141   : > { %v1260_v60 = vpop.f32.mrf.mxu1 }
 0x142   : > { %v1261_v61 = vadd.f32 %v1260_v60, %v1212_v58  ;;  %5269 = vmatmul.msk.bf16.gmra.mxu0 %vm1162_vm0, %v6816_v3  ;;  %v5368_v58 = vld [vmem:[%s6692_s15 + $0x288] sm:$0xf]  ;;  %v6039_v60 = vld [vmem:[%s6692_s15 + $0x290] sm:$0xf0]  ;;  %1586 = vmatpush.bf16.msra.mxu2 %v5221_v54  ;;  %v5452_v54 = vld [vmem:[%s6692_s15 + $0x330] sm:$0xf] }
 0x143   : > { %1411 = vmatmul.bf16.gmra.mxu2 %v6860_v34 }
 0x144   : > { %1553 = vmatmul.bf16.gmra.mxu3 %v6839_v19  ;;  %v7019_v63 = vadd.f32 %v1309_v30, %v1261_v61  ;;  %1504 = vmatmul.bf16.gmra.mxu1 %v6835_v17  ;;  %v5440_v30 = vld [vmem:[%s6692_s15 + $0x318] sm:$0xf] }
 0x146   : > { %9282 = vst [vmem:[#allocation24_spill] sm:$0xff] %v7019_v63  ;;  %v1314_v0 = vpop.f32.mrf.mxu2  ;;  %v5476_v63 = vld [vmem:[%s6692_s15 + $0x360] sm:$0xf] }
 0x147   : > { %v7022_v7 = vpop.f32.mrf.mxu3  ;;  %v1213_v10 = vpop.f32.mrf.mxu0 }
 0x148   : > { %v1214_v11 = vadd.f32 %v1213_v10, %v6955_v22  ;;  %v5369_v10 = vor.u32 %v6039_v60, %v5368_v58 }
 0x149   : > { %v1262_v12 = vpop.f32.mrf.mxu1 }
 0x14a   : > { %v1263_v20 = vadd.f32 %v1262_v12, %v1214_v11  ;;  %v5464_v11 = vld [vmem:[%s6692_s15 + $0x348] sm:$0xf]  ;;  %v6063_v12 = vld [vmem:[%s6692_s15 + $0x350] sm:$0xf0]  ;;  %1955 = vmatpush.bf16.msra.mxu0 %v5369_v10  ;;  %v6033_v10 = vld [vmem:[%s6692_s15 + $0x260] sm:$0xf0] }
 0x14b   : > { %v5465_v24 = vor.u32 %v6063_v12, %v5464_v11 }
 0x14c   : > { %v7025_v23 = vadd.f32 %v1311_v48, %v1263_v20 }
 0x14d   : > { %2004 = vmatpush.bf16.msra.mxu1 %v5465_v24  ;;  %v6057_v24 = vld [vmem:[%s6692_s15 + $0x320] sm:$0xf0] }
 0x14e   : > { %9283 = vst [vmem:[#allocation25_spill] sm:$0xff] %v7025_v23  ;;  %v1316_v27 = vpop.f32.mrf.mxu2  ;;  %1956 = vmatpush.bf16.msra.mxu0 %v5357_v42  ;;  %v5441_v26 = vor.u32 %v6057_v24, %v5440_v30  ;;  %v6021_v42 = vld [vmem:[%s6692_s15 + $0x200] sm:$0xf0] }
 0x14f   : > { %v7029_v28 = vpop.f32.mrf.mxu3  ;;  %v1216_v37 = vpop.f32.mrf.mxu0 }
 0x150   : > { %v1217_v43 = vadd.f32 %v1216_v37, %v6955_v22 }
 0x151   : > { %v1265_v48 = vpop.f32.mrf.mxu1 }
 0x152   : > { %v1266_v61 = vadd.f32 %v1265_v48, %v1217_v43  ;;  %5270 = vmatmul.msk.bf16.gmra.mxu0 %vm1162_vm0, %v6837_v18 }
 0x153   : > { %1416 = vmatmul.bf16.gmra.mxu2 %v6891_v9 }
 0x154   : > { %1558 = vmatmul.bf16.gmra.mxu3 %v6860_v34  ;;  %v7044_v20 = vadd.f32 %v1314_v0, %v1266_v61  ;;  %1509 = vmatmul.bf16.gmra.mxu1 %v6856_v32  ;;  %v6060_v0 = vld [vmem:[%s6692_s15 + $0x338] sm:$0xf0]  ;;  %v5344_v61 = vld [vmem:[%s6692_s15 + $0x258] sm:$0xf] }
 0x155   : > { %v5453_v58 = vor.u32 %v6060_v0, %v5452_v54  ;;  %v5345_v12 = vor.u32 %v6033_v10, %v5344_v61 }
 0x156   : > { %9284 = vst [vmem:[#allocation26_spill] sm:$0xff] %v7044_v20  ;;  %v1319_v37 = vpop.f32.mrf.mxu2  ;;  %v5392_v20 = vld [vmem:[%s6692_s15 + $0x2b8] sm:$0xf] }
 0x157   : > { %v7049_v41 = vpop.f32.mrf.mxu3  ;;  %v1218_v43 = vpop.f32.mrf.mxu0  ;;  %2005 = vmatpush.bf16.msra.mxu1 %v5453_v58  ;;  %1957 = vmatpush.bf16.msra.mxu0 %v5345_v12  ;;  %v6027_v12 = vld [vmem:[%s6692_s15 + $0x230] sm:$0xf0] }
 0x158   : > { %v1219_v48 = vadd.f32 %v1218_v43, %v6955_v22  ;;  %v6030_v43 = vld [vmem:[%s6692_s15 + $0x248] sm:$0xf0] }
 0x159   : > { %v1267_v60 = vpop.f32.mrf.mxu1 }
 0x15a   : > { %v1268_v11 = vadd.f32 %v1267_v60, %v1219_v48  ;;  %v5333_v48 = vor.u32 %v6030_v43, %v5332_v53  ;;  %v5428_v60 = vld [vmem:[%s6692_s15 + $0x300] sm:$0xf]  ;;  %v6051_v43 = vld [vmem:[%s6692_s15 + $0x2f0] sm:$0xf0] }
 0x15b   : > { %2006 = vmatpush.bf16.msra.mxu1 %v5441_v26  ;;  %v5416_v26 = vld [vmem:[%s6692_s15 + $0x2e8] sm:$0xf] }
 0x15c   : > { %v7058_v25 = vadd.f32 %v1316_v27, %v1268_v11  ;;  %v6054_v27 = vld [vmem:[%s6692_s15 + $0x308] sm:$0xf0]  ;;  %1958 = vmatpush.bf16.msra.mxu0 %v5333_v48  ;;  %v5320_v11 = vld [vmem:[%s6692_s15 + $0x228] sm:$0xf] }
 0x15d   : > { %v5429_v30 = vor.u32 %v6054_v27, %v5428_v60  ;;  %v5321_v53 = vor.u32 %v6027_v12, %v5320_v11  ;;  %v5308_v60 = vld [vmem:[%s6692_s15 + $0x210] sm:$0xf]  ;;  %v6024_v27 = vld [vmem:[%s6692_s15 + $0x218] sm:$0xf0] }
 0x15e   : > { %9285 = vst [vmem:[#allocation27_spill] sm:$0xff] %v7058_v25  ;;  %v1321_v54 = vpop.f32.mrf.mxu2  ;;  %v6048_v12 = vld [vmem:[%s6692_s15 + $0x2d8] sm:$0xf0]  ;;  %v6045_v25 = vld [vmem:[%s6692_s15 + $0x2c0] sm:$0xf0] }
 0x15f   : > { %v7064_v0 = vpop.f32.mrf.mxu3  ;;  %v1221_v58 = vpop.f32.mrf.mxu0  ;;  %2007 = vmatpush.bf16.msra.mxu1 %v5429_v30 }
 0x160   : > { %v1222_v61 = vadd.f32 %v1221_v58, %v6955_v22  ;;  %1959 = vmatpush.bf16.msra.mxu0 %v5321_v53  ;;  %v5417_v58 = vor.u32 %v6051_v43, %v5416_v26  ;;  %v5296_v43 = vld [vmem:[%s6692_s15 + $0x1f8] sm:$0xf] }
 0x161   : > { %v1270_v10 = vpop.f32.mrf.mxu1 }
 0x162   : > { %v1271_v24 = vadd.f32 %v1270_v10, %v1222_v61  ;;  %5271 = vmatmul.msk.bf16.gmra.mxu0 %vm1162_vm0, %v6858_v33  ;;  %v5309_v10 = vor.u32 %v6024_v27, %v5308_v60  ;;  %v6069_v60 = vld [vmem:[%s6692_s15 + $0x380] sm:$0xf0] }
 0x163   : > { %1421 = vmatmul.bf16.gmra.mxu2 %v6931_v6  ;;  %2008 = vmatpush.bf16.msra.mxu1 %v5417_v58  ;;  %v5297_v58 = vor.u32 %v6021_v42, %v5296_v43  ;;  %v5489_v27 = vor.u32 %v6069_v60, %v5488_v14  ;;  %v6066_v14 = vld [vmem:[%s6692_s15 + $0x368] sm:$0xf0]  ;;  %v5380_v60 = vld [vmem:[%s6692_s15 + $0x2a0] sm:$0xf] }
 0x164   : > { %1563 = vmatmul.bf16.gmra.mxu3 %v6891_v9  ;;  %v7077_v48 = vadd.f32 %v1319_v37, %v1271_v24  ;;  %1514 = vmatmul.bf16.gmra.mxu1 %v6885_v5  ;;  %v5404_v37 = vld [vmem:[%s6692_s15 + $0x2d0] sm:$0xf] }
 0x165   : > { %1960 = vmatpush.bf16.msra.mxu0 %v5309_v10  ;;  %v5405_v53 = vor.u32 %v6048_v12, %v5404_v37  ;;  %v5393_v10 = vor.u32 %v6045_v25, %v5392_v20  ;;  %2059 = vmatpush.bf16.msra.mxu3 %v5489_v27  ;;  %v5284_v37 = vld [vmem:[%s6692_s15 + $0x1e0] sm:$0xf]  ;;  %v6018_v12 = vld [vmem:[%s6692_s15 + $0x1e8] sm:$0xf0] }
 0x166   : > { %9286 = vst [vmem:[#allocation28_spill] sm:$0xff] %v7077_v48  ;;  %v1324_v61 = vpop.f32.mrf.mxu2  ;;  %v5285_v42 = vor.u32 %v6018_v12, %v5284_v37  ;;  %v6042_v27 = vld [vmem:[%s6692_s15 + $0x2a8] sm:$0xf0]  ;;  %v5322_v48 = vld [vmem:[%s6692_s15 + $0x234] sm:$0xf0] }
 0x167   : > { %v7082_v30 = vpop.f32.mrf.mxu3  ;;  %v1223_v11 = vpop.f32.mrf.mxu0  ;;  %2009 = vmatpush.bf16.msra.mxu1 %v5405_v53  ;;  %v5381_v29 = vor.u32 %v6042_v27, %v5380_v60  ;;  %v5358_v60 = vld [vmem:[%s6692_s15 + $0x27c] sm:$0xf0] }
 0x168   : > { %v1224_v24 = vadd.f32 %v1223_v11, %v6955_v22 }
 0x169   : > { %v1272_v26 = vpop.f32.mrf.mxu1  ;;  %1961 = vmatpush.bf16.msra.mxu0 %v5297_v58  ;;  %v5477_v58 = vor.u32 %v6066_v14, %v5476_v63 }
 0x16a   : > { %v1273_v45 = vadd.f32 %v1272_v26, %v1224_v24 }
 0x16b   : > { %2010 = vmatpush.bf16.msra.mxu1 %v5393_v10  ;;  %2060 = vmatpush.bf16.msra.mxu3 %v5477_v58  ;;  %v6035_v58 = vld [vmem:[%s6692_s15 + $0x274] sm:$0xf] }
 0x16c   : > { %v7093_v11 = vadd.f32 %v1321_v54, %v1273_v45  ;;  %v6038_v45 = vld [vmem:[%s6692_s15 + $0x28c] sm:$0xf]  ;;  %v5370_v54 = vld [vmem:[%s6692_s15 + $0x294] sm:$0xf0] }
 0x16d   : > { %v5373_v25 = vor.u32 %v6038_v45, %v5370_v54  ;;  %1962 = vmatpush.bf16.msra.mxu0 %v5285_v42 }
 0x16e   : > { %9287 = vst [vmem:[#allocation29_spill] sm:$0xff] %v7093_v11  ;;  %v1326_v24 = vpop.f32.mrf.mxu2 }
 0x16f   : > { %v7098_v53 = vpop.f32.mrf.mxu3  ;;  %v1226_v43 = vpop.f32.mrf.mxu0  ;;  %2102 = vmatpush.bf16.msrb.mxu2 %v5373_v25  ;;  %2011 = vmatpush.bf16.msra.mxu1 %v5381_v29  ;;  %v7128_v25 = vperm.slane %v6952_v21, 1 }
 0x170   : > { %v1227_v20 = vadd.f32 %v1226_v43, %v6955_v22 }
 0x171   : > { %v1275_v23 = vpop.f32.mrf.mxu1 }
 0x172   : > { %v1276_v46 = vadd.f32 %v1275_v23, %v1227_v20  ;;  %5272 = vmatmul.msk.bf16.gmra.mxu0 %vm1162_vm0, %v6889_v8  ;;  %v5361_v20 = vor.u32 %v6035_v58, %v5358_v60 }
 0x173   : > { %1426 = vmatmul.bf16.gmra.mxu2 %v6945_v16 }
 0x174   : > { %1568 = vmatmul.bf16.gmra.mxu3 %v6931_v6  ;;  %v7112_v63 = vadd.f32 %v1324_v61, %v1276_v46  ;;  %1519 = vmatmul.bf16.gmra.mxu1 %v6923_v57 }
 0x175   : > { %2103 = vmatpush.bf16.msrb.mxu2 %v5361_v20 }
 0x176   : > { %9288 = vst [vmem:[#allocation30_spill] sm:$0xff] %v7112_v63  ;;  %v1329_v10 = vpop.f32.mrf.mxu2 }
 0x177   : > { %v7115_v37 = vpop.f32.mrf.mxu3  ;;  %v1228_v12 = vpop.f32.mrf.mxu0 }
 0x178   : > { %v1229_v23 = vadd.f32 %v1228_v12, %v6955_v22 }
 0x179   : > { %v1277_v42 = vpop.f32.mrf.mxu1 }
 0x17a   : > { %v1278_v14 = vadd.f32 %v1277_v42, %v1229_v23  ;;  %v1344_v23 = vadd.f32 %v6967_v36, %v7128_v25 }
 0x17c   : > { %v7118_v43 = vadd.f32 %v1326_v24, %v1278_v14 }
 0x17e   : > { %9289 = vst [vmem:[#allocation31_spill] sm:$0xff] %v7118_v43  ;;  %v1331_v45 = vpop.f32.mrf.mxu2 }
 0x17f   : > { %v7120_v54 = vpop.f32.mrf.mxu3  ;;  %v1231_v61 = vpop.f32.mrf.mxu0 }
 0x180   : > { %v1232_v29 = vadd.f32 %v1231_v61, %v6955_v22 }
 0x181   : > { %v1280_v27 = vpop.f32.mrf.mxu1 }
 0x182   : > { %v1281_v12 = vadd.f32 %v1280_v27, %v1232_v29  ;;  %5273 = vmatmul.msk.bf16.gmra.mxu0 %vm1162_vm0, %v6928_v62 }
 0x183   : > { %5274 = vmatmul.msk.bf16.vlgmr.msra.gmra.mxu2 %vm1162_vm0, %v6740_v56 }
 0x184   : > { %1573 = vmatmul.bf16.gmra.mxu3 %v6945_v16  ;;  %v7135_v24 = vadd.f32 %v1329_v10, %v1281_v12  ;;  %1524 = vmatmul.bf16.gmra.mxu1 %v6943_v15  ;;  %v1346_v10 = vadd.f32 %v6974_v47, %v7128_v25 }
 0x186   : > { %9290 = vst [vmem:[#allocation32_spill] sm:$0xff] %v7135_v24  ;;  %v1392_v14 = vpop.f32.mrf.mxu2 }
 0x187   : > { %v7140_v42 = vpop.f32.mrf.mxu3  ;;  %v1393_v61 = vadd.f32 %v1392_v14, %v1344_v23  ;;  %v1233_v58 = vpop.f32.mrf.mxu0  ;;  %v7152_v23 = vperm.slane %v6952_v21, 2  ;;  %v6032_v14 = vld [vmem:[%s6692_s15 + $0x25c] sm:$0xf]  ;;  %v1349_v21 = vadd.f32 %v6984_v59, %v7128_v25 }
 0x188   : > { %v1234_v60 = vadd.f32 %v1233_v58, %v6955_v22  ;;  %v5346_v22 = vld [vmem:[%s6692_s15 + $0x264] sm:$0xf0] }
 0x189   : > { %v1282_v29 = vpop.f32.mrf.mxu1 }
 0x18a   : > { %v1283_v20 = vadd.f32 %v1282_v29, %v1234_v60 }
 0x18c   : > { %v7143_v27 = vadd.f32 %v1331_v45, %v1283_v20  ;;  %v5349_v45 = vor.u32 %v6032_v14, %v5346_v22 }
 0x18e   : > { %9291 = vst [vmem:[#allocation33_spill] sm:$0xff] %v7143_v27  ;;  %v1394_v46 = vpop.f32.mrf.mxu2  ;;  %2104 = vmatpush.bf16.msrb.mxu2 %v5349_v45 }
 0x18f   : > { %v7147_v12 = vpop.f32.mrf.mxu3  ;;  %v1395_v26 = vadd.f32 %v1394_v46, %v1346_v10  ;;  %v1441_v63 = vpop.f32.mrf.mxu0 }
 0x190   : > { %v7156_v58 = vadd.f32 %v1441_v63, %v1393_v61 }
 0x191   : > { %v1490_v60 = vpop.f32.mrf.mxu1 }
 0x192   : > { %9292 = vst [vmem:[#allocation34_spill] sm:$0xff] %v7156_v58  ;;  %1963 = vmatmul.bf16.vlgmr.msra.gmra.mxu0 %v6774_v38  ;;  %v1491_v47 = vadd.f32 %v1490_v60, %v7152_v23  ;;  %v1351_v60 = vadd.f32 %v6991_v13, %v7128_v25  ;;  %v1354_v13 = vadd.f32 %v7005_v35, %v7128_v25 }
 0x193   : > { %5275 = vmatmul.msk.bf16.gmra.mxu2 %vm1162_vm0, %v6776_v39  ;;  %v1356_v35 = vadd.f32 %v7010_v49, %v7128_v25 }
 0x194   : > { %5522 = vmatmul.msk.bf16.vlgmr.msra.gmra.mxu3 %vm1162_vm0, %v6740_v56  ;;  %2012 = vmatmul.bf16.vlgmr.msra.gmra.mxu1 %v6778_v40 }
 0x196   : > { %v1397_v63 = vpop.f32.mrf.mxu2 }
 0x197   : > { %v1539_v46 = vpop.f32.mrf.mxu3  ;;  %v1398_v61 = vadd.f32 %v1397_v63, %v1349_v21  ;;  %v1443_v20 = vpop.f32.mrf.mxu0  ;;  %v5334_v63 = vld [vmem:[%s6692_s15 + $0x24c] sm:$0xf0] }
 0x198   : > { %v7167_v29 = vadd.f32 %v1539_v46, %v1491_v47  ;;  %v7169_v10 = vadd.f32 %v1443_v20, %v1395_v26  ;;  %v6029_v47 = vld [vmem:[%s6692_s15 + $0x244] sm:$0xf] }
 0x199   : > { %v1492_v14 = vpop.f32.mrf.mxu1  ;;  %v5337_v26 = vor.u32 %v6029_v47, %v5334_v63 }
 0x19a   : > { %9293 = vst [vmem:[#allocation35_spill] sm:$0xff] %v7169_v10  ;;  %v1493_v45 = vadd.f32 %v1492_v14, %v7152_v23 }
 0x19b   : > { %2105 = vmatpush.bf16.msrb.mxu2 %v5337_v26  ;;  %v5376_v26 = vld [vmem:[%s6692_s15 + $0x290] sm:$0xf] }
 0x19e   : > { %v1399_v59 = vpop.f32.mrf.mxu2 }
 0x19f   : > { %v1541_v36 = vpop.f32.mrf.mxu3  ;;  %v1400_v24 = vadd.f32 %v1399_v59, %v1351_v60  ;;  %v1446_v21 = vpop.f32.mrf.mxu0 }
 0x1a0   : > { %v7176_v27 = vadd.f32 %v1541_v36, %v1493_v45  ;;  %v7180_v46 = vadd.f32 %v1446_v21, %v1398_v61 }
 0x1a1   : > { %v1495_v20 = vpop.f32.mrf.mxu1 }
 0x1a2   : > { %9294 = vst [vmem:[#allocation36_spill] sm:$0xff] %v7180_v46  ;;  %1968 = vmatmul.bf16.gmra.mxu0 %v6793_v50  ;;  %v1496_v14 = vadd.f32 %v1495_v20, %v7152_v23  ;;  %v6040_v20 = vld [vmem:[%s6692_s15 + $0x298] sm:$0xf0] }
 0x1a3   : > { %5276 = vmatmul.msk.bf16.gmra.mxu2 %vm1162_vm0, %v6795_v51  ;;  %v5377_v43 = vor.u32 %v6040_v20, %v5376_v26 }
 0x1a4   : > { %5523 = vmatmul.msk.bf16.gmra.mxu3 %vm1162_vm0, %v6776_v39  ;;  %2017 = vmatmul.bf16.gmra.mxu1 %v6797_v52 }
 0x1a5   : > { %2249 = vmatpush.bf16.msra.mxu3 %v5377_v43  ;;  %v1359_v43 = vadd.f32 %v7022_v7, %v7128_v25  ;;  %v1361_v7 = vadd.f32 %v7029_v28, %v7128_v25 }
 0x1a6   : > { %v1402_v36 = vpop.f32.mrf.mxu2 }
 0x1a7   : > { %v1544_v61 = vpop.f32.mrf.mxu3  ;;  %v1403_v45 = vadd.f32 %v1402_v36, %v1354_v13  ;;  %v1448_v59 = vpop.f32.mrf.mxu0 }
 0x1a8   : > { %v7191_v60 = vadd.f32 %v1544_v61, %v1496_v14  ;;  %v7193_v21 = vadd.f32 %v1448_v59, %v1400_v24  ;;  %v6026_v59 = vld [vmem:[%s6692_s15 + $0x22c] sm:$0xf] }
 0x1a9   : > { %v1497_v47 = vpop.f32.mrf.mxu1  ;;  %v5325_v63 = vor.u32 %v6026_v59, %v5322_v48 }
 0x1aa   : > { %9295 = vst [vmem:[#allocation37_spill] sm:$0xff] %v7193_v21  ;;  %v1498_v22 = vadd.f32 %v1497_v47, %v7152_v23 }
 0x1ab   : > { %2106 = vmatpush.bf16.msrb.mxu2 %v5325_v63 }
 0x1ae   : > { %v1404_v14 = vpop.f32.mrf.mxu2 }
 0x1af   : > { %v1546_v13 = vpop.f32.mrf.mxu3  ;;  %v1405_v36 = vadd.f32 %v1404_v14, %v1356_v35  ;;  %v1451_v24 = vpop.f32.mrf.mxu0  ;;  %v5364_v35 = vld [vmem:[%s6692_s15 + $0x278] sm:$0xf]  ;;  %v6037_v14 = vld [vmem:[%s6692_s15 + $0x280] sm:$0xf0] }
 0x1b0   : > { %v7202_v61 = vadd.f32 %v1546_v13, %v1498_v22  ;;  %v7206_v11 = vadd.f32 %v1451_v24, %v1403_v45  ;;  %v5365_v24 = vor.u32 %v6037_v14, %v5364_v35 }
 0x1b1   : > { %v1500_v46 = vpop.f32.mrf.mxu1 }
 0x1b2   : > { %9296 = vst [vmem:[#allocation38_spill] sm:$0xff] %v7206_v11  ;;  %1973 = vmatmul.bf16.gmra.mxu0 %v6814_v2  ;;  %v1501_v49 = vadd.f32 %v1500_v46, %v7152_v23  ;;  %2250 = vmatpush.bf16.msra.mxu3 %v5365_v24 }
 0x1b3   : > { %5277 = vmatmul.msk.bf16.gmra.mxu2 %vm1162_vm0, %v6816_v3 }
 0x1b4   : > { %5524 = vmatmul.msk.bf16.gmra.mxu3 %vm1162_vm0, %v6795_v51  ;;  %2022 = vmatmul.bf16.gmra.mxu1 %v6818_v4 }
 0x1b6   : > { %v1407_v48 = vpop.f32.mrf.mxu2 }
 0x1b7   : > { %v1549_v22 = vpop.f32.mrf.mxu3  ;;  %v1408_v45 = vadd.f32 %v1407_v48, %v1359_v43  ;;  %v1453_v63 = vpop.f32.mrf.mxu0 }
 0x1b8   : > { %v7217_v47 = vadd.f32 %v1549_v22, %v1501_v49  ;;  %v7219_v46 = vadd.f32 %v1453_v63, %v1405_v36  ;;  %v6023_v22 = vld [vmem:[%s6692_s15 + $0x214] sm:$0xf]  ;;  %v5310_v63 = vld [vmem:[%s6692_s15 + $0x21c] sm:$0xf0] }
 0x1b9   : > { %v1502_v26 = vpop.f32.mrf.mxu1  ;;  %v5313_v20 = vor.u32 %v6023_v22, %v5310_v63  ;;  %v1366_v22 = vadd.f32 %v7064_v0, %v7128_v25 }
 0x1ba   : > { %9297 = vst [vmem:[#allocation39_spill] sm:$0xff] %v7219_v46  ;;  %v1503_v13 = vadd.f32 %v1502_v26, %v7152_v23  ;;  %v5340_v46 = vld [vmem:[%s6692_s15 + $0x248] sm:$0xf] }
 0x1bb   : > { %2107 = vmatpush.bf16.msrb.mxu2 %v5313_v20 }
 0x1be   : > { %v1409_v59 = vpop.f32.mrf.mxu2 }
 0x1bf   : > { %v1551_v49 = vpop.f32.mrf.mxu3  ;;  %v1410_v43 = vadd.f32 %v1409_v59, %v1361_v7  ;;  %v1456_v36 = vpop.f32.mrf.mxu0  ;;  %v5352_v59 = vld [vmem:[%s6692_s15 + $0x260] sm:$0xf] }
 0x1c0   : > { %v7228_v48 = vadd.f32 %v1551_v49, %v1503_v13  ;;  %v7232_v21 = vadd.f32 %v1456_v36, %v1408_v45  ;;  %v1364_v45 = vadd.f32 %v7049_v41, %v7128_v25  ;;  %v6034_v49 = vld [vmem:[%s6692_s15 + $0x268] sm:$0xf0] }
 0x1c1   : > { %v1505_v11 = vpop.f32.mrf.mxu1  ;;  %v5353_v36 = vor.u32 %v6034_v49, %v5352_v59  ;;  %v5466_v59 = vld [vmem:[%s6692_s15 + $0x354] sm:$0xf0] }
 0x1c2   : > { %9298 = vst [vmem:[#allocation40_spill] sm:$0xff] %v7232_v21  ;;  %1978 = vmatmul.bf16.gmra.mxu0 %v6835_v17  ;;  %v1506_v28 = vadd.f32 %v1505_v11, %v7152_v23 }
 0x1c3   : > { %5278 = vmatmul.msk.bf16.gmra.mxu2 %vm1162_vm0, %v6837_v18  ;;  %2251 = vmatpush.bf16.msra.mxu3 %v5353_v36 }
 0x1c4   : > { %5525 = vmatmul.msk.bf16.gmra.mxu3 %vm1162_vm0, %v6816_v3  ;;  %2027 = vmatmul.bf16.gmra.mxu1 %v6839_v19 }
 0x1c6   : > { %v1412_v26 = vpop.f32.mrf.mxu2 }
 0x1c7   : > { %v1554_v35 = vpop.f32.mrf.mxu3  ;;  %v1413_v14 = vadd.f32 %v1412_v26, %v1364_v45  ;;  %v1458_v20 = vpop.f32.mrf.mxu0 }
 0x1c8   : > { %v7243_v13 = vadd.f32 %v1554_v35, %v1506_v28  ;;  %v7245_v11 = vadd.f32 %v1458_v20, %v1410_v43  ;;  %v6020_v35 = vld [vmem:[%s6692_s15 + $0x1fc] sm:$0xf]  ;;  %v5298_v20 = vld [vmem:[%s6692_s15 + $0x204] sm:$0xf0] }
 0x1c9   : > { %v1507_v24 = vpop.f32.mrf.mxu1  ;;  %v5301_v21 = vor.u32 %v6020_v35, %v5298_v20 }
 0x1ca   : > { %9299 = vst [vmem:[#allocation41_spill] sm:$0xff] %v7245_v11  ;;  %v1508_v41 = vadd.f32 %v1507_v24, %v7152_v23  ;;  %v6062_v24 = vld [vmem:[%s6692_s15 + $0x34c] sm:$0xf] }
 0x1cb   : > { %2108 = vmatpush.bf16.msrb.mxu2 %v5301_v21  ;;  %v5469_v0 = vor.u32 %v6062_v24, %v5466_v59  ;;  %v5454_v21 = vld [vmem:[%s6692_s15 + $0x33c] sm:$0xf0]  ;;  %v6056_v24 = vld [vmem:[%s6692_s15 + $0x31c] sm:$0xf] }
 0x1cd   : > { %2151 = vmatpush.bf16.msrb.mxu0 %v5469_v0 }
 0x1ce   : > { %v1414_v63 = vpop.f32.mrf.mxu2 }
 0x1cf   : > { %v1556_v28 = vpop.f32.mrf.mxu3  ;;  %v1415_v45 = vadd.f32 %v1414_v63, %v1366_v22  ;;  %v1461_v26 = vpop.f32.mrf.mxu0 }
 0x1d0   : > { %v7254_v43 = vadd.f32 %v1556_v28, %v1508_v41  ;;  %v7258_v7 = vadd.f32 %v1461_v26, %v1413_v14  ;;  %v1369_v14 = vadd.f32 %v7082_v30, %v7128_v25  ;;  %v6059_v41 = vld [vmem:[%s6692_s15 + $0x334] sm:$0xf]  ;;  %v5442_v30 = vld [vmem:[%s6692_s15 + $0x324] sm:$0xf0] }
 0x1d1   : > { %v1510_v11 = vpop.f32.mrf.mxu1  ;;  %v5457_v22 = vor.u32 %v6059_v41, %v5454_v21  ;;  %v5445_v0 = vor.u32 %v6056_v24, %v5442_v30  ;;  %v6031_v41 = vld [vmem:[%s6692_s15 + $0x250] sm:$0xf0]  ;;  %v6017_v21 = vld [vmem:[%s6692_s15 + $0x1e4] sm:$0xf]  ;;  %v5430_v30 = vld [vmem:[%s6692_s15 + $0x30c] sm:$0xf0] }
 0x1d2   : > { %9300 = vst [vmem:[#allocation42_spill] sm:$0xff] %v7258_v7  ;;  %1983 = vmatmul.bf16.gmra.mxu0 %v6856_v32  ;;  %v1511_v49 = vadd.f32 %v1510_v11, %v7152_v23 }
 0x1d3   : > { %5279 = vmatmul.msk.bf16.gmra.mxu2 %vm1162_vm0, %v6858_v33  ;;  %2152 = vmatpush.bf16.msrb.mxu0 %v5457_v22 }
 0x1d4   : > { %5526 = vmatmul.msk.bf16.gmra.mxu3 %vm1162_vm0, %v6837_v18  ;;  %2032 = vmatmul.bf16.gmra.mxu1 %v6860_v34 }
 0x1d6   : > { %v1417_v36 = vpop.f32.mrf.mxu2 }
 0x1d7   : > { %v1559_v11 = vpop.f32.mrf.mxu3  ;;  %v1418_v63 = vadd.f32 %v1417_v36, %v1369_v14  ;;  %v1463_v26 = vpop.f32.mrf.mxu0  ;;  %v5341_v14 = vor.u32 %v6031_v41, %v5340_v46  ;;  %2153 = vmatpush.bf16.msrb.mxu0 %v5445_v0  ;;  %v5286_v36 = vld [vmem:[%s6692_s15 + $0x1ec] sm:$0xf0]  ;;  %v6050_v41 = vld [vmem:[%s6692_s15 + $0x2ec] sm:$0xf] }
 0x1d8   : > { %v7273_v28 = vadd.f32 %v1559_v11, %v1511_v49  ;;  %v7275_v35 = vadd.f32 %v1463_v26, %v1415_v45  ;;  %v1371_v45 = vadd.f32 %v7098_v53, %v7128_v25  ;;  %v6053_v11 = vld [vmem:[%s6692_s15 + $0x304] sm:$0xf]  ;;  %v5289_v24 = vor.u32 %v6017_v21, %v5286_v36  ;;  %v6074_v36 = vld [vmem:[%s6692_s15 + $0x3ac] sm:$0xf] }
 0x1d9   : > { %v1512_v20 = vpop.f32.mrf.mxu1  ;;  %2252 = vmatpush.bf16.msra.mxu3 %v5341_v14  ;;  %v5418_v14 = vld [vmem:[%s6692_s15 + $0x2f4] sm:$0xf0] }
 0x1da   : > { %9301 = vst [vmem:[#allocation43_spill] sm:$0xff] %v7275_v35  ;;  %v1513_v49 = vadd.f32 %v1512_v20, %v7152_v23  ;;  %v5433_v20 = vor.u32 %v6053_v11, %v5430_v30  ;;  %2109 = vmatpush.bf16.msrb.mxu2 %v5289_v24  ;;  %v5328_v35 = vld [vmem:[%s6692_s15 + $0x230] sm:$0xf]  ;;  %v5514_v11 = vld [vmem:[%s6692_s15 + $0x3b4] sm:$0xf0] }
 0x1db   : > { %v6047_v24 = vld [vmem:[%s6692_s15 + $0x2d4] sm:$0xf]  ;;  %v5406_v30 = vld [vmem:[%s6692_s15 + $0x2dc] sm:$0xf0] }
 0x1dc   : > { %2154 = vmatpush.bf16.msrb.mxu0 %v5433_v20 }
 0x1de   : > { %v1419_v22 = vpop.f32.mrf.mxu2 }
 0x1df   : > { %v1561_v26 = vpop.f32.mrf.mxu3  ;;  %v1420_v59 = vadd.f32 %v1419_v22, %v1371_v45  ;;  %v1466_v46 = vpop.f32.mrf.mxu0  ;;  %v5421_v45 = vor.u32 %v6050_v41, %v5418_v14  ;;  %v5517_v22 = vor.u32 %v6074_v36, %v5514_v11  ;;  %v6025_v41 = vld [vmem:[%s6692_s15 + $0x220] sm:$0xf0]  ;;  %v6071_v11 = vld [vmem:[%s6692_s15 + $0x394] sm:$0xf] }
 0x1e0   : > { %v7290_v7 = vadd.f32 %v1561_v26, %v1513_v49  ;;  %v7292_v53 = vadd.f32 %v1466_v46, %v1418_v63  ;;  %v6028_v49 = vld [vmem:[%s6692_s15 + $0x238] sm:$0xf0]  ;;  %v1374_v26 = vadd.f32 %v7115_v37, %v7128_v25  ;;  %v5316_v46 = vld [vmem:[%s6692_s15 + $0x218] sm:$0xf] }
 0x1e1   : > { %v1515_v0 = vpop.f32.mrf.mxu1  ;;  %v5329_v63 = vor.u32 %v6028_v49, %v5328_v35  ;;  %2155 = vmatpush.bf16.msrb.mxu0 %v5421_v45  ;;  %2204 = vmatpush.bf16.msra.mxu1 %v5517_v22  ;;  %v5409_v35 = vor.u32 %v6047_v24, %v5406_v30  ;;  %v5317_v37 = vor.u32 %v6025_v41, %v5316_v46  ;;  %v5502_v45 = vld [vmem:[%s6692_s15 + $0x39c] sm:$0xf0]  ;;  %v6044_v22 = vld [vmem:[%s6692_s15 + $0x2bc] sm:$0xf]  ;;  %v5394_v24 = vld [vmem:[%s6692_s15 + $0x2c4] sm:$0xf0] }
 0x1e2   : > { %9302 = vst [vmem:[#allocation44_spill] sm:$0xff] %v7292_v53  ;;  %1988 = vmatmul.bf16.gmra.mxu0 %v6885_v5  ;;  %v1516_v21 = vadd.f32 %v1515_v0, %v7152_v23  ;;  %v5505_v58 = vor.u32 %v6071_v11, %v5502_v45  ;;  %v5397_v30 = vor.u32 %v6044_v22, %v5394_v24  ;;  %v6022_v46 = vld [vmem:[%s6692_s15 + $0x208] sm:$0xf0]  ;;  %v5490_v41 = vld [vmem:[%s6692_s15 + $0x384] sm:$0xf0] }
 0x1e3   : > { %5280 = vmatmul.msk.bf16.gmra.mxu2 %vm1162_vm0, %v6889_v8  ;;  %2253 = vmatpush.bf16.msra.mxu3 %v5329_v63  ;;  %v5382_v11 = vld [vmem:[%s6692_s15 + $0x2ac] sm:$0xf0]  ;;  %v6019_v24 = vld [vmem:[%s6692_s15 + $0x1f0] sm:$0xf0] }
 0x1e4   : > { %5527 = vmatmul.msk.bf16.gmra.mxu3 %vm1162_vm0, %v6858_v33  ;;  %2037 = vmatmul.bf16.gmra.mxu1 %v6891_v9 }
 0x1e5   : > { %2156 = vmatpush.bf16.msrb.mxu0 %v5409_v35  ;;  %2205 = vmatpush.bf16.msra.mxu1 %v5505_v58  ;;  %v5292_v58 = vld [vmem:[%s6692_s15 + $0x1e8] sm:$0xf] }
 0x1e6   : > { %v1422_v20 = vpop.f32.mrf.mxu2 }
 0x1e7   : > { %v1564_v0 = vpop.f32.mrf.mxu3  ;;  %v1423_v14 = vadd.f32 %v1422_v20, %v1374_v26  ;;  %v1468_v36 = vpop.f32.mrf.mxu0  ;;  %2254 = vmatpush.bf16.msra.mxu3 %v5317_v37  ;;  %v6041_v37 = vld [vmem:[%s6692_s15 + $0x2a4] sm:$0xf] }
 0x1e8   : > { %v7313_v49 = vadd.f32 %v1564_v0, %v1516_v21  ;;  %v7317_v63 = vadd.f32 %v1468_v36, %v1420_v59  ;;  %v5304_v21 = vld [vmem:[%s6692_s15 + $0x200] sm:$0xf]  ;;  %v6068_v0 = vld [vmem:[%s6692_s15 + $0x37c] sm:$0xf]  ;;  %v1376_v36 = vadd.f32 %v7120_v54, %v7128_v25  ;;  %v6065_v26 = vld [vmem:[%s6692_s15 + $0x364] sm:$0xf] }
 0x1e9   : > { %v1517_v10 = vpop.f32.mrf.mxu1  ;;  %v5305_v20 = vor.u32 %v6022_v46, %v5304_v21  ;;  %v5493_v35 = vor.u32 %v6068_v0, %v5490_v41  ;;  %2157 = vmatpush.bf16.msrb.mxu0 %v5397_v30  ;;  %v5293_v41 = vor.u32 %v6019_v24, %v5292_v58  ;;  %v5478_v54 = vld [vmem:[%s6692_s15 + $0x36c] sm:$0xf0] }
 0x1ea   : > { %9303 = vst [vmem:[#allocation45_spill] sm:$0xff] %v7317_v63  ;;  %v1518_v59 = vadd.f32 %v1517_v10, %v7152_v23  ;;  %v5385_v10 = vor.u32 %v6041_v37, %v5382_v11  ;;  %v5481_v30 = vor.u32 %v6065_v26, %v5478_v54  ;;  %v5472_v63 = vld [vmem:[%s6692_s15 + $0x350] sm:$0xf] }
 0x1eb   : > { %2255 = vmatpush.bf16.msra.mxu3 %v5305_v20  ;;  %2206 = vmatpush.bf16.msra.mxu1 %v5493_v35  ;;  %v5473_v35 = vor.u32 %v6064_v55, %v5472_v63 }
 0x1ed   : > { %2158 = vmatpush.bf16.msrb.mxu0 %v5385_v10  ;;  %2298 = vmatpush.bf16.msra.mxu2 %v5473_v35  ;;  %v1381_v10 = vadd.f32 %v7147_v12, %v7128_v25  ;;  %v6061_v35 = vld [vmem:[%s6692_s15 + $0x340] sm:$0xf0] }
 0x1ee   : > { %v1424_v45 = vpop.f32.mrf.mxu2 }
 0x1ef   : > { %v1566_v22 = vpop.f32.mrf.mxu3  ;;  %v1425_v21 = vadd.f32 %v1424_v45, %v1376_v36  ;;  %v1471_v0 = vpop.f32.mrf.mxu0  ;;  %2256 = vmatpush.bf16.msra.mxu3 %v5293_v41  ;;  %2207 = vmatpush.bf16.msra.mxu1 %v5481_v30 }
 0x1f0   : > { %v7334_v46 = vadd.f32 %v1566_v22, %v1518_v59  ;;  %v7338_v53 = vadd.f32 %v1471_v0, %v1423_v14  ;;  %v1379_v14 = vadd.f32 %v7140_v42, %v7128_v25 }
 0x1f1   : > { %v1520_v20 = vpop.f32.mrf.mxu1 }
 0x1f2   : > { %9304 = vst [vmem:[#allocation46_spill] sm:$0xff] %v7338_v53  ;;  %1993 = vmatmul.bf16.gmra.mxu0 %v6923_v57  ;;  %v1521_v36 = vadd.f32 %v1520_v20, %v7152_v23 }
 0x1f3   : > { %5281 = vmatmul.msk.bf16.gmra.mxu2 %vm1162_vm0, %v6928_v62 }
 0x1f4   : > { %5528 = vmatmul.msk.bf16.gmra.mxu3 %vm1162_vm0, %v6889_v8  ;;  %2042 = vmatmul.bf16.gmra.mxu1 %v6931_v6 }
 0x1f6   : > { %v1427_v26 = vpop.f32.mrf.mxu2 }
 0x1f7   : > { %v1569_v59 = vpop.f32.mrf.mxu3  ;;  %v1428_v37 = vadd.f32 %v1427_v26, %v1379_v14  ;;  %v1473_v63 = vpop.f32.mrf.mxu0 }
 0x1f8   : > { %v7351_v55 = vadd.f32 %v1569_v59, %v1521_v36  ;;  %v7353_v11 = vadd.f32 %v1473_v63, %v1425_v21  ;;  %v5460_v21 = vld [vmem:[%s6692_s15 + $0x338] sm:$0xf] }
 0x1f9   : > { %v1522_v58 = vpop.f32.mrf.mxu1  ;;  %v5461_v36 = vor.u32 %v6061_v35, %v5460_v21 }
 0x1fa   : > { %9305 = vst [vmem:[#allocation47_spill] sm:$0xff] %v7353_v11  ;;  %v1523_v22 = vadd.f32 %v1522_v58, %v7152_v23 }
 0x1fb   : > { %2299 = vmatpush.bf16.msra.mxu2 %v5461_v36 }
 0x1fe   : > { %v1429_v42 = vpop.f32.mrf.mxu2 }
 0x1ff   : > { %v1571_v24 = vpop.f32.mrf.mxu3  ;;  %v1430_v0 = vadd.f32 %v1429_v42, %v1381_v10  ;;  %v1476_v54 = vpop.f32.mrf.mxu0 }
 0x200   : > { %v7360_v41 = vadd.f32 %v1571_v24, %v1523_v22  ;;  %v7362_v30 = vadd.f32 %v1476_v54, %v1428_v37  ;;  %v7380_v22 = vld [vmem:[%s6694_s0 + $0x1] ss:$4 sm:$0x7] }
 0x201   : > { %v1525_v20 = vpop.f32.mrf.mxu1  ;;  %v7386_v24 = vperm.slane %v7380_v22, 0 }
 0x202   : > { %9306 = vst [vmem:[#allocation48_spill] sm:$0xff] %v7362_v30  ;;  %1998 = vmatmul.bf16.gmra.mxu0 %v6943_v15  ;;  %v1526_v14 = vadd.f32 %v1525_v20, %v7152_v23 }
 0x203   : > { %2110 = vmatmul.bf16.vlgmr.msrb.gmra.mxu2 %v6774_v38 }
 0x204   : > { %5529 = vmatmul.msk.bf16.gmra.mxu3 %vm1162_vm0, %v6928_v62  ;;  %2047 = vmatmul.bf16.gmra.mxu1 %v6945_v16 }
 0x206   : > { %v1588_v12 = vpop.f32.mrf.mxu2 }
 0x207   : > { %v1574_v25 = vpop.f32.mrf.mxu3  ;;  %v7375_v59 = vadd.f32 %v1588_v12, %v7167_v29  ;;  %v1478_v37 = vpop.f32.mrf.mxu0  ;;  %v6058_v12 = vld [vmem:[%s6692_s15 + $0x328] sm:$0xf0] }
 0x208   : > { %v7372_v26 = vadd.f32 %v1574_v25, %v1526_v14  ;;  %v7377_v63 = vadd.f32 %v1478_v37, %v1430_v0  ;;  %v5448_v25 = vld [vmem:[%s6692_s15 + $0x320] sm:$0xf] }
 0x209   : > { %9307 = vst [vmem:[#allocation49_spill] sm:$0xff] %v7375_v59  ;;  %v1527_v58 = vpop.f32.mrf.mxu1  ;;  %v5449_v37 = vor.u32 %v6058_v12, %v5448_v25  ;;  %v5752_v59 = vld [vmem:[%s6692_s15 + $0x558] sm:$0xf] }
 0x20a   : > { %9308 = vst [vmem:[#allocation50_spill] sm:$0xff] %v7377_v63  ;;  %v1528_v42 = vadd.f32 %v1527_v58, %v7152_v23 }
 0x20b   : > { %2300 = vmatpush.bf16.msra.mxu2 %v5449_v37 }
 0x20e   : > { %v1590_v20 = vpop.f32.mrf.mxu2 }
 0x20f   : > { %v1576_v54 = vpop.f32.mrf.mxu3  ;;  %v7391_v21 = vadd.f32 %v1590_v20, %v7176_v27  ;;  %v1964_v0 = vpop.f32.mrf.mxu0 }
 0x210   : > { %v7388_v29 = vadd.f32 %v1576_v54, %v1528_v42  ;;  %v1965_v35 = vadd.f32 %v1964_v0, %v7386_v24 }
 0x211   : > { %9309 = vst [vmem:[#allocation51_spill] sm:$0xff] %v7391_v21  ;;  %v2013_v14 = vpop.f32.mrf.mxu1  ;;  %v6129_v21 = vld [vmem:[%s6692_s15 + $0x560] sm:$0xf0] }
 0x212   : > { %v2014_v23 = vadd.f32 %v2013_v14, %v1965_v35  ;;  %2159 = vmatmul.bf16.vlgmr.msrb.gmra.mxu0 %v6778_v40 }
 0x213   : > { %2115 = vmatmul.bf16.gmra.mxu2 %v6793_v50 }
 0x214   : > { %2257 = vmatmul.bf16.vlgmr.msra.gmra.mxu3 %v6774_v38  ;;  %5530 = vmatmul.msk.bf16.vlgmr.msra.gmra.mxu1 %vm1162_vm0, %v6740_v56 }
 0x216   : > { %v1593_v27 = vpop.f32.mrf.mxu2 }
 0x217   : > { %v2062_v58 = vpop.f32.mrf.mxu3  ;;  %v7404_v42 = vadd.f32 %v1593_v27, %v7191_v60  ;;  %v1966_v20 = vpop.f32.mrf.mxu0  ;;  %v6123_v60 = vld [vmem:[%s6692_s15 + $0x530] sm:$0xf0] }
 0x218   : > { %v7406_v54 = vadd.f32 %v2062_v58, %v2014_v23  ;;  %v1967_v0 = vadd.f32 %v1966_v20, %v7386_v24  ;;  %v5436_v58 = vld [vmem:[%s6692_s15 + $0x308] sm:$0xf]  ;;  %v6055_v20 = vld [vmem:[%s6692_s15 + $0x310] sm:$0xf0] }
 0x219   : > { %9310 = vst [vmem:[#allocation52_spill] sm:$0xff] %v7404_v42  ;;  %v2015_v35 = vpop.f32.mrf.mxu1 }
 0x21a   : > { %9311 = vst [vmem:[#allocation53_spill] sm:$0xff] %v7406_v54  ;;  %v2016_v14 = vadd.f32 %v2015_v35, %v1967_v0 }
 0x21e   : > { %v1595_v25 = vpop.f32.mrf.mxu2 }
 0x21f   : > { %v2064_v12 = vpop.f32.mrf.mxu3  ;;  %v7410_v10 = vadd.f32 %v1595_v25, %v7202_v61  ;;  %v1969_v45 = vpop.f32.mrf.mxu0  ;;  %v5437_v61 = vor.u32 %v6055_v20, %v5436_v58  ;;  %v5728_v20 = vld [vmem:[%s6692_s15 + $0x528] sm:$0xf] }
 0x220   : > { %v7412_v37 = vadd.f32 %v2064_v12, %v2016_v14  ;;  %v1970_v36 = vadd.f32 %v1969_v45, %v7386_v24  ;;  %v5729_v23 = vor.u32 %v6123_v60, %v5728_v20  ;;  %v6052_v60 = vld [vmem:[%s6692_s15 + $0x2f8] sm:$0xf0] }
 0x221   : > { %9312 = vst [vmem:[#allocation54_spill] sm:$0xff] %v7410_v10  ;;  %v2018_v27 = vpop.f32.mrf.mxu1  ;;  %2301 = vmatpush.bf16.msra.mxu2 %v5437_v61  ;;  %v6081_v10 = vld [vmem:[%s6692_s15 + $0x3e0] sm:$0xf0] }
 0x222   : > { %9313 = vst [vmem:[#allocation55_spill] sm:$0xff] %v7412_v37  ;;  %v2019_v0 = vadd.f32 %v2018_v27, %v1970_v36  ;;  %2164 = vmatmul.bf16.gmra.mxu0 %v6797_v52  ;;  %2772 = vmatpush.bf16.msra.mxu3 %v5729_v23 }
 0x223   : > { %2120 = vmatmul.bf16.gmra.mxu2 %v6814_v2 }
 0x224   : > { %2262 = vmatmul.bf16.gmra.mxu3 %v6793_v50  ;;  %5531 = vmatmul.msk.bf16.gmra.mxu1 %vm1162_vm0, %v6776_v39 }
 0x226   : > { %v1598_v45 = vpop.f32.mrf.mxu2 }
 0x227   : > { %v2067_v35 = vpop.f32.mrf.mxu3  ;;  %v7427_v14 = vadd.f32 %v1598_v45, %v7217_v47  ;;  %v1971_v36 = vpop.f32.mrf.mxu0 }
 0x228   : > { %v7429_v25 = vadd.f32 %v2067_v35, %v2019_v0  ;;  %v1972_v12 = vadd.f32 %v1971_v36, %v7386_v24  ;;  %v6120_v35 = vld [vmem:[%s6692_s15 + $0x518] sm:$0xf0] }
 0x229   : > { %9314 = vst [vmem:[#allocation56_spill] sm:$0xff] %v7427_v14  ;;  %v2020_v27 = vpop.f32.mrf.mxu1  ;;  %v6114_v14 = vld [vmem:[%s6692_s15 + $0x4e8] sm:$0xf0] }
 0x22a   : > { %9315 = vst [vmem:[#allocation57_spill] sm:$0xff] %v7429_v25  ;;  %v2021_v58 = vadd.f32 %v2020_v27, %v1972_v12  ;;  %v5424_v27 = vld [vmem:[%s6692_s15 + $0x2f0] sm:$0xf] }
 0x22e   : > { %v1600_v30 = vpop.f32.mrf.mxu2 }
 0x22f   : > { %v2069_v61 = vpop.f32.mrf.mxu3  ;;  %v7435_v63 = vadd.f32 %v1600_v30, %v7228_v48  ;;  %v1974_v0 = vpop.f32.mrf.mxu0  ;;  %v5425_v48 = vor.u32 %v6052_v60, %v5424_v27  ;;  %v5716_v60 = vld [vmem:[%s6692_s15 + $0x510] sm:$0xf] }
 0x230   : > { %v7437_v47 = vadd.f32 %v2069_v61, %v2021_v58  ;;  %v1975_v45 = vadd.f32 %v1974_v0, %v7386_v24  ;;  %v5717_v36 = vor.u32 %v6120_v35, %v5716_v60  ;;  %v6049_v35 = vld [vmem:[%s6692_s15 + $0x2e0] sm:$0xf0] }
 0x231   : > { %9316 = vst [vmem:[#allocation58_spill] sm:$0xff] %v7435_v63  ;;  %v2023_v12 = vpop.f32.mrf.mxu1  ;;  %2302 = vmatpush.bf16.msra.mxu2 %v5425_v48 }
 0x232   : > { %9317 = vst [vmem:[#allocation59_spill] sm:$0xff] %v7437_v47  ;;  %v2024_v23 = vadd.f32 %v2023_v12, %v1975_v45  ;;  %2169 = vmatmul.bf16.gmra.mxu0 %v6818_v4  ;;  %2773 = vmatpush.bf16.msra.mxu3 %v5717_v36  ;;  %v6092_v47 = vld [vmem:[%s6692_s15 + $0x43c] sm:$0xf] }
 0x233   : > { %2125 = vmatmul.bf16.gmra.mxu2 %v6835_v17 }
 0x234   : > { %2267 = vmatmul.bf16.gmra.mxu3 %v6814_v2  ;;  %5532 = vmatmul.msk.bf16.gmra.mxu1 %vm1162_vm0, %v6795_v51 }
 0x236   : > { %v1603_v30 = vpop.f32.mrf.mxu2 }
 0x237   : > { %v2072_v58 = vpop.f32.mrf.mxu3  ;;  %v7452_v20 = vadd.f32 %v1603_v30, %v7243_v13  ;;  %v1976_v0 = vpop.f32.mrf.mxu0 }
 0x238   : > { %v7454_v61 = vadd.f32 %v2072_v58, %v2024_v23  ;;  %v1977_v45 = vadd.f32 %v1976_v0, %v7386_v24  ;;  %v6117_v58 = vld [vmem:[%s6692_s15 + $0x500] sm:$0xf0] }
 0x239   : > { %9318 = vst [vmem:[#allocation60_spill] sm:$0xff] %v7452_v20  ;;  %v2025_v12 = vpop.f32.mrf.mxu1 }
 0x23a   : > { %9319 = vst [vmem:[#allocation61_spill] sm:$0xff] %v7454_v61  ;;  %v2026_v27 = vadd.f32 %v2025_v12, %v1977_v45  ;;  %v5412_v12 = vld [vmem:[%s6692_s15 + $0x2d8] sm:$0xf]  ;;  %v5610_v61 = vld [vmem:[%s6692_s15 + $0x444] sm:$0xf0] }
 0x23e   : > { %v1605_v53 = vpop.f32.mrf.mxu2 }
 0x23f   : > { %v2074_v48 = vpop.f32.mrf.mxu3  ;;  %v7460_v11 = vadd.f32 %v1605_v53, %v7254_v43  ;;  %v1979_v23 = vpop.f32.mrf.mxu0  ;;  %v5413_v43 = vor.u32 %v6049_v35, %v5412_v12  ;;  %v5704_v35 = vld [vmem:[%s6692_s15 + $0x4f8] sm:$0xf] }
 0x240   : > { %v7462_v13 = vadd.f32 %v2074_v48, %v2026_v27  ;;  %v1980_v30 = vadd.f32 %v1979_v23, %v7386_v24  ;;  %v5705_v0 = vor.u32 %v6117_v58, %v5704_v35 }
 0x241   : > { %9320 = vst [vmem:[#allocation62_spill] sm:$0xff] %v7460_v11  ;;  %v2028_v45 = vpop.f32.mrf.mxu1  ;;  %2303 = vmatpush.bf16.msra.mxu2 %v5413_v43  ;;  %v5692_v11 = vld [vmem:[%s6692_s15 + $0x4e0] sm:$0xf] }
 0x242   : > { %9321 = vst [vmem:[#allocation63_spill] sm:$0xff] %v7462_v13  ;;  %v2029_v36 = vadd.f32 %v2028_v45, %v1980_v30  ;;  %2174 = vmatmul.bf16.gmra.mxu0 %v6839_v19  ;;  %2774 = vmatpush.bf16.msra.mxu3 %v5705_v0 }
 0x243   : > { %2130 = vmatmul.bf16.gmra.mxu2 %v6856_v32 }
 0x244   : > { %2272 = vmatmul.bf16.gmra.mxu3 %v6835_v17  ;;  %5533 = vmatmul.msk.bf16.gmra.mxu1 %vm1162_vm0, %v6816_v3 }
 0x246   : > { %v1608_v53 = vpop.f32.mrf.mxu2 }
 0x247   : > { %v2077_v27 = vpop.f32.mrf.mxu3  ;;  %v7477_v60 = vadd.f32 %v1608_v53, %v7273_v28  ;;  %v1981_v23 = vpop.f32.mrf.mxu0 }
 0x248   : > { %v7479_v48 = vadd.f32 %v2077_v27, %v2029_v36  ;;  %v1982_v30 = vadd.f32 %v1981_v23, %v7386_v24  ;;  %v6099_v23 = vld [vmem:[%s6692_s15 + $0x470] sm:$0xf0] }
 0x249   : > { %9322 = vst [vmem:[#allocation64_spill] sm:$0xff] %v7477_v60  ;;  %v2030_v45 = vpop.f32.mrf.mxu1 }
 0x24a   : > { %9323 = vst [vmem:[#allocation65_spill] sm:$0xff] %v7479_v48  ;;  %v2031_v12 = vadd.f32 %v2030_v45, %v1982_v30  ;;  %v5400_v30 = vld [vmem:[%s6692_s15 + $0x2c0] sm:$0xf]  ;;  %v6046_v45 = vld [vmem:[%s6692_s15 + $0x2c8] sm:$0xf0] }
 0x24b   : > { %v6116_v48 = vld [vmem:[%s6692_s15 + $0x4fc] sm:$0xf] }
 0x24e   : > { %v1610_v20 = vpop.f32.mrf.mxu2 }
 0x24f   : > { %v2079_v43 = vpop.f32.mrf.mxu3  ;;  %v7485_v28 = vadd.f32 %v1610_v20, %v7290_v7  ;;  %v1984_v53 = vpop.f32.mrf.mxu0  ;;  %v5401_v7 = vor.u32 %v6046_v45, %v5400_v30  ;;  %v5520_v20 = vld [vmem:[%s6692_s15 + $0x3b0] sm:$0xf] }
 0x250   : > { %v7487_v36 = vadd.f32 %v2079_v43, %v2031_v12  ;;  %v1985_v27 = vadd.f32 %v1984_v53, %v7386_v24  ;;  %v6076_v12 = vld [vmem:[%s6692_s15 + $0x3b8] sm:$0xf0]  ;;  %v5632_v43 = vld [vmem:[%s6692_s15 + $0x468] sm:$0xf] }
 0x251   : > { %9324 = vst [vmem:[#allocation66_spill] sm:$0xff] %v7485_v28  ;;  %v2033_v0 = vpop.f32.mrf.mxu1  ;;  %2304 = vmatpush.bf16.msra.mxu2 %v5401_v7  ;;  %v5521_v53 = vor.u32 %v6076_v12, %v5520_v20  ;;  %v5620_v7 = vld [vmem:[%s6692_s15 + $0x450] sm:$0xf]  ;;  %v6096_v20 = vld [vmem:[%s6692_s15 + $0x458] sm:$0xf0] }
 0x252   : > { %9325 = vst [vmem:[#allocation67_spill] sm:$0xff] %v7487_v36  ;;  %v2034_v35 = vadd.f32 %v2033_v0, %v1985_v27  ;;  %2179 = vmatmul.bf16.gmra.mxu0 %v6860_v34  ;;  %v5633_v27 = vor.u32 %v6099_v23, %v5632_v43  ;;  %v5621_v28 = vor.u32 %v6096_v20, %v5620_v7  ;;  %v6080_v36 = vld [vmem:[%s6692_s15 + $0x3dc] sm:$0xf] }
 0x253   : > { %2135 = vmatmul.bf16.gmra.mxu2 %v6885_v5  ;;  %2351 = vmatpush.bf16.msra.mxu0 %v5521_v53  ;;  %v5608_v53 = vld [vmem:[%s6692_s15 + $0x438] sm:$0xf] }
 0x254   : > { %2277 = vmatmul.bf16.gmra.mxu3 %v6856_v32  ;;  %5534 = vmatmul.msk.bf16.gmra.mxu1 %vm1162_vm0, %v6837_v18 }
 0x255   : > { %2723 = vmatpush.bf16.msra.mxu1 %v5633_v27  ;;  %v6043_v27 = vld [vmem:[%s6692_s15 + $0x2b0] sm:$0xf0] }
 0x256   : > { %v1613_v0 = vpop.f32.mrf.mxu2 }
 0x257   : > { %v2082_v30 = vpop.f32.mrf.mxu3  ;;  %v7506_v45 = vadd.f32 %v1613_v0, %v7313_v49  ;;  %v1986_v60 = vpop.f32.mrf.mxu0  ;;  %v5693_v49 = vor.u32 %v6114_v14, %v5692_v11  ;;  %v5596_v11 = vld [vmem:[%s6692_s15 + $0x420] sm:$0xf]  ;;  %v6090_v14 = vld [vmem:[%s6692_s15 + $0x428] sm:$0xf0] }
 0x258   : > { %v7508_v58 = vadd.f32 %v2082_v30, %v2034_v35  ;;  %v1987_v12 = vadd.f32 %v1986_v60, %v7386_v24  ;;  %v6093_v35 = vld [vmem:[%s6692_s15 + $0x440] sm:$0xf0]  ;;  %v5388_v30 = vld [vmem:[%s6692_s15 + $0x2a8] sm:$0xf] }
 0x259   : > { %9326 = vst [vmem:[#allocation68_spill] sm:$0xff] %v7506_v45  ;;  %v2035_v23 = vpop.f32.mrf.mxu1  ;;  %2724 = vmatpush.bf16.msra.mxu1 %v5621_v28  ;;  %v5609_v0 = vor.u32 %v6093_v35, %v5608_v53  ;;  %2775 = vmatpush.bf16.msra.mxu3 %v5693_v49  ;;  %v5389_v60 = vor.u32 %v6043_v27, %v5388_v30  ;;  %v6087_v30 = vld [vmem:[%s6692_s15 + $0x410] sm:$0xf0] }
 0x25a   : > { %v2036_v43 = vadd.f32 %v2035_v23, %v1987_v12 }
 0x25b   : > { %2305 = vmatpush.bf16.msra.mxu2 %v5389_v60  ;;  %v5508_v60 = vld [vmem:[%s6692_s15 + $0x398] sm:$0xf] }
 0x25d   : > { %2725 = vmatpush.bf16.msra.mxu1 %v5609_v0  ;;  %v5584_v0 = vld [vmem:[%s6692_s15 + $0x408] sm:$0xf] }
 0x25e   : > { %v1615_v63 = vpop.f32.mrf.mxu2  ;;  %v5585_v27 = vor.u32 %v6087_v30, %v5584_v0  ;;  %v6084_v0 = vld [vmem:[%s6692_s15 + $0x3f8] sm:$0xf0] }
 0x25f   : > { %v2084_v42 = vpop.f32.mrf.mxu3  ;;  %v7520_v7 = vadd.f32 %v1615_v63, %v7334_v46  ;;  %v1989_v12 = vpop.f32.mrf.mxu0  ;;  %v5597_v63 = vor.u32 %v6090_v14, %v5596_v11 }
 0x260   : > { %v7522_v20 = vadd.f32 %v2084_v42, %v2036_v43  ;;  %v1990_v28 = vadd.f32 %v1989_v12, %v7386_v24  ;;  %v5680_v42 = vld [vmem:[%s6692_s15 + $0x4c8] sm:$0xf]  ;;  %v6111_v43 = vld [vmem:[%s6692_s15 + $0x4d0] sm:$0xf0]  ;;  %v6073_v12 = vld [vmem:[%s6692_s15 + $0x3a0] sm:$0xf0] }
 0x261   : > { %9327 = vst [vmem:[#allocation69_spill] sm:$0xff] %v7520_v7  ;;  %v2038_v46 = vpop.f32.mrf.mxu1  ;;  %v5681_v35 = vor.u32 %v6111_v43, %v5680_v42  ;;  %2726 = vmatpush.bf16.msra.mxu1 %v5597_v63  ;;  %v6108_v42 = vld [vmem:[%s6692_s15 + $0x4b8] sm:$0xf0]  ;;  %v5572_v63 = vld [vmem:[%s6692_s15 + $0x3f0] sm:$0xf] }
 0x262   : > { %v2039_v53 = vadd.f32 %v2038_v46, %v1990_v28  ;;  %2184 = vmatmul.bf16.gmra.mxu0 %v6891_v9  ;;  %v5509_v28 = vor.u32 %v6073_v12, %v5508_v60  ;;  %v5668_v46 = vld [vmem:[%s6692_s15 + $0x4b0] sm:$0xf]  ;;  %v5573_v12 = vor.u32 %v6084_v0, %v5572_v63  ;;  %v5560_v7 = vld [vmem:[%s6692_s15 + $0x3d8] sm:$0xf] }
 0x263   : > { %2140 = vmatmul.bf16.gmra.mxu2 %v6923_v57  ;;  %2776 = vmatpush.bf16.msra.mxu3 %v5681_v35  ;;  %v5669_v35 = vor.u32 %v6108_v42, %v5668_v46  ;;  %v6105_v42 = vld [vmem:[%s6692_s15 + $0x4a0] sm:$0xf0] }
 0x264   : > { %2282 = vmatmul.bf16.gmra.mxu3 %v6885_v5  ;;  %5535 = vmatmul.msk.bf16.gmra.mxu1 %vm1162_vm0, %v6858_v33 }
 0x265   : > { %2352 = vmatpush.bf16.msra.mxu0 %v5509_v28  ;;  %2727 = vmatpush.bf16.msra.mxu1 %v5585_v27  ;;  %v5484_v27 = vld [vmem:[%s6692_s15 + $0x368] sm:$0xf]  ;;  %v6067_v28 = vld [vmem:[%s6692_s15 + $0x370] sm:$0xf0] }
 0x266   : > { %v1618_v11 = vpop.f32.mrf.mxu2 }
 0x267   : > { %v2087_v14 = vpop.f32.mrf.mxu3  ;;  %v7545_v43 = vadd.f32 %v1618_v11, %v7351_v55  ;;  %v1991_v49 = vpop.f32.mrf.mxu0  ;;  %2777 = vmatpush.bf16.msra.mxu3 %v5669_v35  ;;  %v5496_v55 = vld [vmem:[%s6692_s15 + $0x380] sm:$0xf]  ;;  %v5656_v11 = vld [vmem:[%s6692_s15 + $0x498] sm:$0xf] }
 0x268   : > { %v7547_v23 = vadd.f32 %v2087_v14, %v2039_v53  ;;  %v1992_v30 = vadd.f32 %v1991_v49, %v7386_v24  ;;  %v6070_v53 = vld [vmem:[%s6692_s15 + $0x388] sm:$0xf0]  ;;  %v5657_v45 = vor.u32 %v6105_v42, %v5656_v11  ;;  %v5561_v49 = vor.u32 %v6081_v10, %v5560_v7  ;;  %v5644_v35 = vld [vmem:[%s6692_s15 + $0x480] sm:$0xf] }
 0x269   : > { %9328 = vst [vmem:[#allocation70_spill] sm:$0xff] %v7545_v43  ;;  %v2040_v60 = vpop.f32.mrf.mxu1  ;;  %v5497_v46 = vor.u32 %v6070_v53, %v5496_v55  ;;  %2728 = vmatpush.bf16.msra.mxu1 %v5573_v12  ;;  %v5548_v42 = vld [vmem:[%s6692_s15 + $0x3c0] sm:$0xf]  ;;  %v6078_v12 = vld [vmem:[%s6692_s15 + $0x3c8] sm:$0xf0] }
 0x26a   : > { %v2041_v14 = vadd.f32 %v2040_v60, %v1992_v30  ;;  %v5485_v30 = vor.u32 %v6067_v28, %v5484_v27  ;;  %v6102_v60 = vld [vmem:[%s6692_s15 + $0x488] sm:$0xf0]  ;;  %v5776_v28 = vld [vmem:[%s6692_s15 + $0x588] sm:$0xf] }
 0x26b   : > { %2353 = vmatpush.bf16.msra.mxu0 %v5497_v46  ;;  %2778 = vmatpush.bf16.msra.mxu3 %v5657_v45  ;;  %v5645_v46 = vor.u32 %v6102_v60, %v5644_v35 }
 0x26d   : > { %2729 = vmatpush.bf16.msra.mxu1 %v5561_v49 }
 0x26e   : > { %v1620_v63 = vpop.f32.mrf.mxu2 }
 0x26f   : > { %v2089_v0 = vpop.f32.mrf.mxu3  ;;  %v7563_v55 = vadd.f32 %v1620_v63, %v7360_v41  ;;  %v1994_v11 = vpop.f32.mrf.mxu0  ;;  %2354 = vmatpush.bf16.msra.mxu0 %v5485_v30  ;;  %v6135_v41 = vld [vmem:[%s6692_s15 + $0x590] sm:$0xf0]  ;;  %2779 = vmatpush.bf16.msra.mxu3 %v5645_v46 }
 0x270   : > { %v7565_v53 = vadd.f32 %v2089_v0, %v2041_v14  ;;  %v1995_v10 = vadd.f32 %v1994_v11, %v7386_v24  ;;  %v5549_v14 = vor.u32 %v6078_v12, %v5548_v42  ;;  %v5777_v35 = vor.u32 %v6135_v41, %v5776_v28 }
 0x271   : > { %9329 = vst [vmem:[#allocation71_spill] sm:$0xff] %v7563_v55  ;;  %v2043_v27 = vpop.f32.mrf.mxu1 }
 0x272   : > { %v2044_v63 = vadd.f32 %v2043_v27, %v1995_v10  ;;  %2189 = vmatmul.bf16.gmra.mxu0 %v6931_v6  ;;  %2825 = vmatpush.bf16.msrb.mxu2 %v5777_v35 }
 0x273   : > { %2145 = vmatmul.bf16.gmra.mxu2 %v6943_v15  ;;  %2730 = vmatpush.bf16.msra.mxu1 %v5549_v14 }
 0x274   : > { %2287 = vmatmul.bf16.gmra.mxu3 %v6923_v57  ;;  %5536 = vmatmul.msk.bf16.gmra.mxu1 %vm1162_vm0, %v6889_v8 }
 0x276   : > { %v1623_v0 = vpop.f32.mrf.mxu2 }
 0x277   : > { %v2092_v30 = vpop.f32.mrf.mxu3  ;;  %v7582_v49 = vadd.f32 %v1623_v0, %v7372_v26  ;;  %v1996_v11 = vpop.f32.mrf.mxu0 }
 0x278   : > { %v7584_v60 = vadd.f32 %v2092_v30, %v2044_v63  ;;  %v1997_v46 = vadd.f32 %v1996_v11, %v7386_v24  ;;  %v5764_v63 = vld [vmem:[%s6692_s15 + $0x570] sm:$0xf] }
 0x279   : > { %9330 = vst [vmem:[#allocation72_spill] sm:$0xff] %v7582_v49  ;;  %v2045_v42 = vpop.f32.mrf.mxu1  ;;  %v6132_v49 = vld [vmem:[%s6692_s15 + $0x578] sm:$0xf0] }
 0x27a   : > { %v2046_v12 = vadd.f32 %v2045_v42, %v1997_v46 }
 0x27e   : > { %v1625_v10 = vpop.f32.mrf.mxu2 }
 0x27f   : > { %v2094_v27 = vpop.f32.mrf.mxu3  ;;  %v7588_v28 = vadd.f32 %v1625_v10, %v7388_v29  ;;  %v1999_v14 = vpop.f32.mrf.mxu0 }
 0x280   : > { %v7590_v41 = vadd.f32 %v2094_v27, %v2046_v12  ;;  %v2000_v35 = vadd.f32 %v1999_v14, %v7386_v24  ;;  %v7606_v27 = vperm.slane %v7380_v22, 1 }
 0x281   : > { %9331 = vst [vmem:[#allocation73_spill] sm:$0xff] %v7588_v28  ;;  %v2048_v0 = vpop.f32.mrf.mxu1 }
 0x282   : > { %v2049_v30 = vadd.f32 %v2048_v0, %v2000_v35  ;;  %2194 = vmatmul.bf16.gmra.mxu0 %v6945_v16 }
 0x283   : > { %2306 = vmatmul.bf16.vlgmr.msra.gmra.mxu2 %v6778_v40 }
 0x284   : > { %2292 = vmatmul.bf16.gmra.mxu3 %v6943_v15  ;;  %5537 = vmatmul.msk.bf16.gmra.mxu1 %vm1162_vm0, %v6928_v62 }
 0x286   : > { %v2111_v11 = vpop.f32.mrf.mxu2 }
 0x287   : > { %v2097_v29 = vpop.f32.mrf.mxu3  ;;  %v2001_v42 = vpop.f32.mrf.mxu0  ;;  %v2112_v35 = vadd.f32 %v2111_v11, %v7606_v27 }
 0x288   : > { %v7602_v46 = vadd.f32 %v2097_v29, %v2049_v30  ;;  %v2002_v12 = vadd.f32 %v2001_v42, %v7386_v24  ;;  %v5765_v30 = vor.u32 %v6132_v49, %v5764_v63 }
 0x289   : > { %v2050_v10 = vpop.f32.mrf.mxu1 }
 0x28a   : > { %v2051_v14 = vadd.f32 %v2050_v10, %v2002_v12  ;;  %2826 = vmatpush.bf16.msrb.mxu2 %v5765_v30  ;;  %v5778_v10 = vld [vmem:[%s6692_s15 + $0x594] sm:$0xf0] }
 0x28e   : > { %v2113_v26 = vpop.f32.mrf.mxu2 }
 0x28f   : > { %v2099_v0 = vpop.f32.mrf.mxu3  ;;  %v2160_v7 = vpop.f32.mrf.mxu0  ;;  %v2114_v22 = vadd.f32 %v2113_v26, %v7606_v27 }
 0x290   : > { %v7609_v45 = vadd.f32 %v2099_v0, %v2051_v14  ;;  %v2161_v28 = vadd.f32 %v2160_v7, %v2112_v35 }
 0x291   : > { %v2209_v24 = vpop.f32.mrf.mxu1 }
 0x292   : > { %v7615_v42 = vadd.f32 %v2209_v24, %v2161_v28  ;;  %5538 = vmatmul.msk.bf16.vlgmr.msra.gmra.mxu0 %vm1162_vm0, %v6740_v56 }
 0x293   : > { %2311 = vmatmul.bf16.gmra.mxu2 %v6797_v52 }
 0x294   : > { %9332 = vst [vmem:[#allocation74_spill] sm:$0xff] %v7615_v42  ;;  %2780 = vmatmul.bf16.vlgmr.msra.gmra.mxu3 %v6778_v40  ;;  %2731 = vmatmul.bf16.vlgmr.msra.gmra.mxu1 %v6774_v38 }
 0x296   : > { %v2116_v7 = vpop.f32.mrf.mxu2 }
 0x297   : > { %v7623_v49 = vpop.f32.mrf.mxu3  ;;  %v2162_v63 = vpop.f32.mrf.mxu0  ;;  %v2117_v14 = vadd.f32 %v2116_v7, %v7606_v27 }
 0x298   : > { %v2163_v11 = vadd.f32 %v2162_v63, %v2114_v22 }
 0x299   : > { %v2211_v12 = vpop.f32.mrf.mxu1 }
 0x29a   : > { %v7625_v28 = vadd.f32 %v2211_v12, %v2163_v11 }
 0x29c   : > { %9333 = vst [vmem:[#allocation75_spill] sm:$0xff] %v7625_v28 }
 0x29e   : > { %v2118_v35 = vpop.f32.mrf.mxu2 }
 0x29f   : > { %v7630_v0 = vpop.f32.mrf.mxu3  ;;  %v2165_v30 = vpop.f32.mrf.mxu0  ;;  %v2119_v22 = vadd.f32 %v2118_v35, %v7606_v27 }
 0x2a0   : > { %v2166_v24 = vadd.f32 %v2165_v30, %v2117_v14 }
 0x2a1   : > { %v2214_v26 = vpop.f32.mrf.mxu1 }
 0x2a2   : > { %v7632_v29 = vadd.f32 %v2214_v26, %v2166_v24  ;;  %5539 = vmatmul.msk.bf16.gmra.mxu0 %vm1162_vm0, %v6776_v39  ;;  %v6134_v26 = vld [vmem:[%s6692_s15 + $0x58c] sm:$0xf] }
 0x2a3   : > { %2316 = vmatmul.bf16.gmra.mxu2 %v6818_v4  ;;  %v5781_v43 = vor.u32 %v6134_v26, %v5778_v10 }
 0x2a4   : > { %9334 = vst [vmem:[#allocation76_spill] sm:$0xff] %v7632_v29  ;;  %2785 = vmatmul.bf16.gmra.mxu3 %v6797_v52  ;;  %2736 = vmatmul.bf16.gmra.mxu1 %v6793_v50 }
 0x2a5   : > { %2972 = vmatpush.bf16.msra.mxu3 %v5781_v43 }
 0x2a6   : > { %v2121_v7 = vpop.f32.mrf.mxu2 }
 0x2a7   : > { %v7640_v63 = vpop.f32.mrf.mxu3  ;;  %v2167_v11 = vpop.f32.mrf.mxu0  ;;  %v2122_v55 = vadd.f32 %v2121_v7, %v7606_v27 }
 0x2a8   : > { %v2168_v12 = vadd.f32 %v2167_v11, %v2119_v22  ;;  %v5753_v22 = vor.u32 %v6129_v21, %v5752_v59 }
 0x2a9   : > { %v2216_v14 = vpop.f32.mrf.mxu1 }
 0x2aa   : > { %v7642_v30 = vadd.f32 %v2216_v14, %v2168_v12  ;;  %2827 = vmatpush.bf16.msrb.mxu2 %v5753_v22 }
 0x2ac   : > { %9335 = vst [vmem:[#allocation77_spill] sm:$0xff] %v7642_v30 }
 0x2ae   : > { %v2123_v42 = vpop.f32.mrf.mxu2 }
 0x2af   : > { %v7649_v35 = vpop.f32.mrf.mxu3  ;;  %v2170_v28 = vpop.f32.mrf.mxu0  ;;  %v2124_v10 = vadd.f32 %v2123_v42, %v7606_v27 }
 0x2b0   : > { %v2171_v54 = vadd.f32 %v2170_v28, %v2122_v55  ;;  %v5766_v28 = vld [vmem:[%s6692_s15 + $0x57c] sm:$0xf0] }
 0x2b1   : > { %v2219_v11 = vpop.f32.mrf.mxu1 }
 0x2b2   : > { %v7653_v12 = vadd.f32 %v2219_v11, %v2171_v54  ;;  %5540 = vmatmul.msk.bf16.gmra.mxu0 %vm1162_vm0, %v6795_v51 }
 0x2b3   : > { %2321 = vmatmul.bf16.gmra.mxu2 %v6839_v19 }
 0x2b4   : > { %9336 = vst [vmem:[#allocation78_spill] sm:$0xff] %v7653_v12  ;;  %2790 = vmatmul.bf16.gmra.mxu3 %v6818_v4  ;;  %2741 = vmatmul.bf16.gmra.mxu1 %v6814_v2 }
 0x2b6   : > { %v2126_v43 = vpop.f32.mrf.mxu2 }
 0x2b7   : > { %v7661_v7 = vpop.f32.mrf.mxu3  ;;  %v2172_v55 = vpop.f32.mrf.mxu0  ;;  %v2127_v14 = vadd.f32 %v2126_v43, %v7606_v27 }
 0x2b8   : > { %v2173_v59 = vadd.f32 %v2172_v55, %v2124_v10 }
 0x2b9   : > { %v2221_v21 = vpop.f32.mrf.mxu1 }
 0x2ba   : > { %v7663_v54 = vadd.f32 %v2221_v21, %v2173_v59 }
 0x2bc   : > { %9337 = vst [vmem:[#allocation79_spill] sm:$0xff] %v7663_v54 }
 0x2be   : > { %v2128_v26 = vpop.f32.mrf.mxu2 }
 0x2bf   : > { %v7668_v22 = vpop.f32.mrf.mxu3  ;;  %v2175_v11 = vpop.f32.mrf.mxu0  ;;  %v2129_v10 = vadd.f32 %v2128_v26, %v7606_v27 }
 0x2c0   : > { %v2176_v24 = vadd.f32 %v2175_v11, %v2127_v14  ;;  %v6098_v11 = vld [vmem:[%s6692_s15 + $0x46c] sm:$0xf] }
 0x2c1   : > { %v2224_v42 = vpop.f32.mrf.mxu1 }
 0x2c2   : > { %v7670_v29 = vadd.f32 %v2224_v42, %v2176_v24  ;;  %5541 = vmatmul.msk.bf16.gmra.mxu0 %vm1162_vm0, %v6816_v3  ;;  %v6131_v42 = vld [vmem:[%s6692_s15 + $0x574] sm:$0xf] }
 0x2c3   : > { %2326 = vmatmul.bf16.gmra.mxu2 %v6860_v34  ;;  %v5769_v30 = vor.u32 %v6131_v42, %v5766_v28  ;;  %v5622_v42 = vld [vmem:[%s6692_s15 + $0x45c] sm:$0xf0] }
 0x2c4   : > { %9338 = vst [vmem:[#allocation80_spill] sm:$0xff] %v7670_v29  ;;  %2795 = vmatmul.bf16.gmra.mxu3 %v6839_v19  ;;  %2746 = vmatmul.bf16.gmra.mxu1 %v6835_v17  ;;  %v5634_v29 = vld [vmem:[%s6692_s15 + $0x474] sm:$0xf0] }
 0x2c5   : > { %2973 = vmatpush.bf16.msra.mxu3 %v5769_v30  ;;  %v5637_v28 = vor.u32 %v6098_v11, %v5634_v29  ;;  %v5730_v30 = vld [vmem:[%s6692_s15 + $0x534] sm:$0xf0] }
 0x2c6   : > { %v2131_v43 = vpop.f32.mrf.mxu2 }
 0x2c7   : > { %v7678_v55 = vpop.f32.mrf.mxu3  ;;  %v2177_v59 = vpop.f32.mrf.mxu0  ;;  %v2132_v26 = vadd.f32 %v2131_v43, %v7606_v27  ;;  %2870 = vmatpush.bf16.msrb.mxu0 %v5637_v28 }
 0x2c8   : > { %v2178_v21 = vadd.f32 %v2177_v59, %v2129_v10  ;;  %v5740_v10 = vld [vmem:[%s6692_s15 + $0x540] sm:$0xf]  ;;  %v6126_v59 = vld [vmem:[%s6692_s15 + $0x548] sm:$0xf0] }
 0x2c9   : > { %v2226_v24 = vpop.f32.mrf.mxu1 }
 0x2ca   : > { %v7680_v14 = vadd.f32 %v2226_v24, %v2178_v21  ;;  %v5741_v24 = vor.u32 %v6126_v59, %v5740_v10 }
 0x2cc   : > { %9339 = vst [vmem:[#allocation81_spill] sm:$0xff] %v7680_v14  ;;  %2828 = vmatpush.bf16.msrb.mxu2 %v5741_v24  ;;  %v5718_v24 = vld [vmem:[%s6692_s15 + $0x51c] sm:$0xf0] }
 0x2ce   : > { %v2133_v12 = vpop.f32.mrf.mxu2 }
 0x2cf   : > { %v7687_v54 = vpop.f32.mrf.mxu3  ;;  %v2180_v37 = vpop.f32.mrf.mxu0 }
 0x2d0   : > { %v2181_v21 = vadd.f32 %v2180_v37, %v2132_v26  ;;  %v6122_v37 = vld [vmem:[%s6692_s15 + $0x52c] sm:$0xf]  ;;  %v2134_v26 = vadd.f32 %v2133_v12, %v7606_v27  ;;  %v5613_v12 = vor.u32 %v6092_v47, %v5610_v61  ;;  %v6113_v61 = vld [vmem:[%s6692_s15 + $0x4e4] sm:$0xf] }
 0x2d1   : > { %v2229_v25 = vpop.f32.mrf.mxu1  ;;  %v5733_v43 = vor.u32 %v6122_v37, %v5730_v30 }
 0x2d2   : > { %v7693_v14 = vadd.f32 %v2229_v25, %v2181_v21  ;;  %5542 = vmatmul.msk.bf16.gmra.mxu0 %vm1162_vm0, %v6837_v18  ;;  %v6095_v25 = vld [vmem:[%s6692_s15 + $0x454] sm:$0xf] }
 0x2d3   : > { %2331 = vmatmul.bf16.gmra.mxu2 %v6891_v9  ;;  %2919 = vmatpush.bf16.msra.mxu1 %v5733_v43  ;;  %v5625_v11 = vor.u32 %v6095_v25, %v5622_v42  ;;  %v6119_v21 = vld [vmem:[%s6692_s15 + $0x514] sm:$0xf]  ;;  %v5706_v43 = vld [vmem:[%s6692_s15 + $0x504] sm:$0xf0]  ;;  %v5586_v25 = vld [vmem:[%s6692_s15 + $0x414] sm:$0xf0] }
 0x2d4   : > { %9340 = vst [vmem:[#allocation82_spill] sm:$0xff] %v7693_v14  ;;  %2800 = vmatmul.bf16.gmra.mxu3 %v6860_v34  ;;  %2751 = vmatmul.bf16.gmra.mxu1 %v6856_v32  ;;  %v5721_v37 = vor.u32 %v6119_v21, %v5718_v24  ;;  %v5709_v42 = vor.u32 %v6116_v48, %v5706_v43  ;;  %v6086_v43 = vld [vmem:[%s6692_s15 + $0x40c] sm:$0xf] }
 0x2d5   : > { %2871 = vmatpush.bf16.msrb.mxu0 %v5625_v11  ;;  %v5598_v11 = vld [vmem:[%s6692_s15 + $0x42c] sm:$0xf0] }
 0x2d6   : > { %v2136_v10 = vpop.f32.mrf.mxu2 }
 0x2d7   : > { %v7705_v29 = vpop.f32.mrf.mxu3  ;;  %v2182_v59 = vpop.f32.mrf.mxu0  ;;  %2920 = vmatpush.bf16.msra.mxu1 %v5721_v37  ;;  %v5694_v37 = vld [vmem:[%s6692_s15 + $0x4ec] sm:$0xf0] }
 0x2d8   : > { %v2183_v28 = vadd.f32 %v2182_v59, %v2134_v26  ;;  %v6089_v26 = vld [vmem:[%s6692_s15 + $0x424] sm:$0xf]  ;;  %v2137_v59 = vadd.f32 %v2136_v10, %v7606_v27  ;;  %v5589_v10 = vor.u32 %v6086_v43, %v5586_v25 }
 0x2d9   : > { %v2231_v30 = vpop.f32.mrf.mxu1  ;;  %2872 = vmatpush.bf16.msrb.mxu0 %v5613_v12  ;;  %v5697_v12 = vor.u32 %v6113_v61, %v5694_v37 }
 0x2da   : > { %v7711_v13 = vadd.f32 %v2231_v30, %v2183_v28  ;;  %v5601_v28 = vor.u32 %v6089_v26, %v5598_v11  ;;  %v5682_v26 = vld [vmem:[%s6692_s15 + $0x4d4] sm:$0xf0] }
 0x2db   : > { %2921 = vmatpush.bf16.msra.mxu1 %v5709_v42  ;;  %v6110_v42 = vld [vmem:[%s6692_s15 + $0x4cc] sm:$0xf] }
 0x2dc   : > { %9341 = vst [vmem:[#allocation83_spill] sm:$0xff] %v7711_v13  ;;  %v5685_v11 = vor.u32 %v6110_v42, %v5682_v26  ;;  %v6128_v42 = vld [vmem:[%s6692_s15 + $0x55c] sm:$0xf]  ;;  %v5754_v26 = vld [vmem:[%s6692_s15 + $0x564] sm:$0xf0] }
 0x2dd   : > { %2873 = vmatpush.bf16.msrb.mxu0 %v5601_v28  ;;  %v5574_v28 = vld [vmem:[%s6692_s15 + $0x3fc] sm:$0xf0] }
 0x2de   : > { %v2138_v21 = vpop.f32.mrf.mxu2 }
 0x2df   : > { %v7720_v24 = vpop.f32.mrf.mxu3  ;;  %v2185_v47 = vpop.f32.mrf.mxu0  ;;  %2922 = vmatpush.bf16.msra.mxu1 %v5697_v12  ;;  %v6107_v12 = vld [vmem:[%s6692_s15 + $0x4b4] sm:$0xf] }
 0x2e0   : > { %v2186_v30 = vadd.f32 %v2185_v47, %v2137_v59  ;;  %v6083_v59 = vld [vmem:[%s6692_s15 + $0x3f4] sm:$0xf]  ;;  %v2139_v47 = vadd.f32 %v2138_v21, %v7606_v27  ;;  %v5757_v21 = vor.u32 %v6128_v42, %v5754_v26  ;;  %v6077_v26 = vld [vmem:[%s6692_s15 + $0x3c4] sm:$0xf] }
 0x2e1   : > { %v2234_v48 = vpop.f32.mrf.mxu1  ;;  %2874 = vmatpush.bf16.msrb.mxu0 %v5589_v10  ;;  %v5577_v37 = vor.u32 %v6083_v59, %v5574_v28  ;;  %v5565_v59 = vor.u32 %v6080_v36, %v5562_v1  ;;  %v6104_v28 = vld [vmem:[%s6692_s15 + $0x49c] sm:$0xf] }
 0x2e2   : > { %v7726_v14 = vadd.f32 %v2234_v48, %v2186_v30  ;;  %5543 = vmatmul.msk.bf16.gmra.mxu0 %vm1162_vm0, %v6858_v33  ;;  %v5670_v48 = vld [vmem:[%s6692_s15 + $0x4bc] sm:$0xf0]  ;;  %2974 = vmatpush.bf16.msra.mxu3 %v5757_v21 }
 0x2e3   : > { %2336 = vmatmul.bf16.gmra.mxu2 %v6931_v6  ;;  %2923 = vmatpush.bf16.msra.mxu1 %v5685_v11  ;;  %v5673_v10 = vor.u32 %v6107_v12, %v5670_v48  ;;  %v6125_v12 = vld [vmem:[%s6692_s15 + $0x544] sm:$0xf]  ;;  %v5742_v48 = vld [vmem:[%s6692_s15 + $0x54c] sm:$0xf0] }
 0x2e4   : > { %9342 = vst [vmem:[#allocation84_spill] sm:$0xff] %v7726_v14  ;;  %2805 = vmatmul.bf16.gmra.mxu3 %v6891_v9  ;;  %2756 = vmatmul.bf16.gmra.mxu1 %v6885_v5  ;;  %v5745_v42 = vor.u32 %v6125_v12, %v5742_v48 }
 0x2e5   : > { %2875 = vmatpush.bf16.msrb.mxu0 %v5577_v37 }
 0x2e6   : > { %v2141_v25 = vpop.f32.mrf.mxu2  ;;  %2975 = vmatpush.bf16.msra.mxu3 %v5745_v42 }
 0x2e7   : > { %v7738_v61 = vpop.f32.mrf.mxu3  ;;  %v2187_v30 = vpop.f32.mrf.mxu0  ;;  %2924 = vmatpush.bf16.msra.mxu1 %v5673_v10 }
 0x2e8   : > { %v2188_v43 = vadd.f32 %v2187_v30, %v2139_v47  ;;  %v5658_v47 = vld [vmem:[%s6692_s15 + $0x4a4] sm:$0xf0] }
 0x2e9   : > { %v2236_v13 = vpop.f32.mrf.mxu1  ;;  %2876 = vmatpush.bf16.msrb.mxu0 %v5565_v59  ;;  %v5661_v30 = vor.u32 %v6104_v28, %v5658_v47  ;;  %v6101_v59 = vld [vmem:[%s6692_s15 + $0x484] sm:$0xf]  ;;  %v5641_v28 = vor.u32 %v6100_v44, %v5640_v31  ;;  %v5646_v47 = vld [vmem:[%s6692_s15 + $0x48c] sm:$0xf0] }
 0x2ea   : > { %v7746_v11 = vadd.f32 %v2236_v13, %v2188_v43  ;;  %v5550_v13 = vld [vmem:[%s6692_s15 + $0x3cc] sm:$0xf0]  ;;  %v2142_v43 = vadd.f32 %v2141_v25, %v7606_v27  ;;  %v5649_v48 = vor.u32 %v6101_v59, %v5646_v47 }
 0x2eb   : > { %2925 = vmatpush.bf16.msra.mxu1 %v5661_v30  ;;  %v5553_v10 = vor.u32 %v6077_v26, %v5550_v13  ;;  %3017 = vmatpush.bf16.msra.mxu2 %v5641_v28  ;;  %v5628_v28 = vld [vmem:[%s6692_s15 + $0x458] sm:$0xf] }
 0x2ec   : > { %9343 = vst [vmem:[#allocation85_spill] sm:$0xff] %v7746_v11 }
 0x2ed   : > { %2877 = vmatpush.bf16.msrb.mxu0 %v5553_v10 }
 0x2ee   : > { %v2143_v1 = vpop.f32.mrf.mxu2 }
 0x2ef   : > { %v7757_v36 = vpop.f32.mrf.mxu3  ;;  %v2190_v21 = vpop.f32.mrf.mxu0  ;;  %2926 = vmatpush.bf16.msra.mxu1 %v5649_v48  ;;  %v2144_v31 = vadd.f32 %v2143_v1, %v7606_v27  ;;  %v6097_v1 = vld [vmem:[%s6692_s15 + $0x460] sm:$0xf0] }
 0x2f0   : > { %v2191_v37 = vadd.f32 %v2190_v21, %v2142_v43  ;;  %v6331_v48 = vld [vmem:[%s6694_s0 + $0x1] ss:$4 sm:$0x7] }
 0x2f1   : > { %v2239_v12 = vpop.f32.mrf.mxu1  ;;  %v7783_v11 = vperm.slane %v6331_v48, 2 }
 0x2f2   : > { %v7763_v14 = vadd.f32 %v2239_v12, %v2191_v37  ;;  %5544 = vmatmul.msk.bf16.gmra.mxu0 %vm1162_vm0, %v6889_v8  ;;  %v5629_v12 = vor.u32 %v6097_v1, %v5628_v28 }
 0x2f3   : > { %2341 = vmatmul.bf16.gmra.mxu2 %v6945_v16 }
 0x2f4   : > { %9344 = vst [vmem:[#allocation86_spill] sm:$0xff] %v7763_v14  ;;  %2810 = vmatmul.bf16.gmra.mxu3 %v6931_v6  ;;  %2761 = vmatmul.bf16.gmra.mxu1 %v6923_v57 }
 0x2f5   : > { %3018 = vmatpush.bf16.msra.mxu2 %v5629_v12 }
 0x2f6   : > { %v2146_v44 = vpop.f32.mrf.mxu2 }
 0x2f7   : > { %v7771_v25 = vpop.f32.mrf.mxu3  ;;  %v2192_v37 = vpop.f32.mrf.mxu0  ;;  %v2147_v43 = vadd.f32 %v2146_v44, %v7606_v27  ;;  %v2259_v44 = vadd.f32 %v7623_v49, %v7783_v11  ;;  %v2261_v49 = vadd.f32 %v7630_v0, %v7783_v11  ;;  %v9347_v0 = vpack.c.bf16 %v7609_v45, %v7602_v46 }
 0x2f8   : > { %v2193_v30 = vadd.f32 %v2192_v37, %v2144_v31 }
 0x2f9   : > { %v2241_v42 = vpop.f32.mrf.mxu1 }
 0x2fa   : > { %v7773_v26 = vadd.f32 %v2241_v42, %v2193_v30 }
 0x2fc   : > { %9345 = vst [vmem:[#allocation87_spill] sm:$0xff] %v7773_v26 }
 0x2fe   : > { %v2148_v10 = vpop.f32.mrf.mxu2 }
 0x2ff   : > { %v7778_v21 = vpop.f32.mrf.mxu3  ;;  %v2195_v59 = vpop.f32.mrf.mxu0  ;;  %v2149_v30 = vadd.f32 %v2148_v10, %v7606_v27 }
 0x300   : > { %v2196_v47 = vadd.f32 %v2195_v59, %v2147_v43 }
 0x301   : > { %v2244_v31 = vpop.f32.mrf.mxu1 }
 0x302   : > { %v7785_v37 = vadd.f32 %v2244_v31, %v2196_v47  ;;  %5545 = vmatmul.msk.bf16.gmra.mxu0 %vm1162_vm0, %v6928_v62  ;;  %v7803_v31 = vld [vmem:[%s6694_s0 + $0x2] ss:$4 sm:$0x7] }
 0x303   : > { %5786 = vmatmul.msk.bf16.vlgmr.msrb.gmra.mxu2 %vm1162_vm0, %v6740_v56 }
 0x304   : > { %2815 = vmatmul.bf16.gmra.mxu3 %v6945_v16  ;;  %2766 = vmatmul.bf16.gmra.mxu1 %v6943_v15 }
 0x306   : > { %v2307_v43 = vpop.f32.mrf.mxu2 }
 0x307   : > { %v7796_v42 = vpop.f32.mrf.mxu3  ;;  %v2308_v59 = vadd.f32 %v2307_v43, %v2259_v44  ;;  %v2197_v28 = vpop.f32.mrf.mxu0  ;;  %v7810_v44 = vperm.slane %v7803_v31, 0  ;;  %v6094_v43 = vld [vmem:[%s6692_s15 + $0x448] sm:$0xf0] }
 0x308   : > { %v2198_v1 = vadd.f32 %v2197_v28, %v2149_v30  ;;  %v5616_v30 = vld [vmem:[%s6692_s15 + $0x440] sm:$0xf] }
 0x309   : > { %v2246_v47 = vpop.f32.mrf.mxu1 }
 0x30a   : > { %v7798_v12 = vadd.f32 %v2246_v47, %v2198_v1  ;;  %v5617_v1 = vor.u32 %v6094_v43, %v5616_v30 }
 0x30c   : > { %3019 = vmatpush.bf16.msra.mxu2 %v5617_v1 }
 0x30e   : > { %v2309_v10 = vpop.f32.mrf.mxu2 }
 0x30f   : > { %v7807_v27 = vpop.f32.mrf.mxu3  ;;  %v2310_v13 = vadd.f32 %v2309_v10, %v2261_v49  ;;  %v2356_v14 = vpop.f32.mrf.mxu0 }
 0x310   : > { %v7814_v28 = vadd.f32 %v2356_v14, %v2308_v59  ;;  %v2264_v14 = vadd.f32 %v7640_v63, %v7783_v11  ;;  %v2266_v63 = vadd.f32 %v7649_v35, %v7783_v11  ;;  %v2269_v35 = vadd.f32 %v7661_v7, %v7783_v11 }
 0x311   : > { %v2732_v47 = vpop.f32.mrf.mxu1  ;;  %v2271_v7 = vadd.f32 %v7668_v22, %v7783_v11 }
 0x312   : > { %9346 = vst [vmem:[#allocation88_spill] sm:$0xff] %v7814_v28  ;;  %2878 = vmatmul.bf16.vlgmr.msrb.gmra.mxu0 %v6774_v38  ;;  %v2733_v48 = vadd.f32 %v2732_v47, %v7810_v44 }
 0x313   : > { %5787 = vmatmul.msk.bf16.gmra.mxu2 %vm1162_vm0, %v6776_v39 }
 0x314   : > { %5794 = vmatmul.msk.bf16.vlgmr.msra.gmra.mxu3 %vm1162_vm0, %v6740_v56  ;;  %2927 = vmatmul.bf16.vlgmr.msra.gmra.mxu1 %v6778_v40 }
 0x315   : > { %3216 = vmatpush.bf16.xpose.msra.mxu3 %v9347_v0  ;;  %v9349_v0 = vpack.c.bf16 %v7590_v41, %v7584_v60  ;;  %v9351_v41 = vpack.c.bf16 %v7565_v53, %v7547_v23 }
 0x316   : > { %v2312_v59 = vpop.f32.mrf.mxu2 }
 0x317   : > { %v2781_v49 = vpop.f32.mrf.mxu3  ;;  %v2313_v10 = vadd.f32 %v2312_v59, %v2264_v14  ;;  %v2358_v43 = vpop.f32.mrf.mxu0 }
 0x318   : > { %v7828_v30 = vadd.f32 %v2781_v49, %v2733_v48  ;;  %v7830_v1 = vadd.f32 %v2358_v43, %v2310_v13  ;;  %v5604_v49 = vld [vmem:[%s6692_s15 + $0x428] sm:$0xf]  ;;  %v6091_v43 = vld [vmem:[%s6692_s15 + $0x430] sm:$0xf0] }
 0x319   : > { %v2734_v47 = vpop.f32.mrf.mxu1  ;;  %v5605_v45 = vor.u32 %v6091_v43, %v5604_v49 }
 0x31a   : > { %9348 = vst [vmem:[#allocation89_spill] sm:$0xff] %v7830_v1  ;;  %v2735_v46 = vadd.f32 %v2734_v47, %v7810_v44 }
 0x31b   : > { %3020 = vmatpush.bf16.msra.mxu2 %v5605_v45 }
 0x31d   : > { %3217 = vmatpush.bf16.xpose.msra.mxu3 %v9349_v0 }
 0x31e   : > { %v2314_v26 = vpop.f32.mrf.mxu2 }
 0x31f   : > { %v2783_v14 = vpop.f32.mrf.mxu3  ;;  %v2315_v48 = vadd.f32 %v2314_v26, %v2266_v63  ;;  %v2361_v13 = vpop.f32.mrf.mxu0  ;;  %v9353_v63 = vpack.c.bf16 %v7522_v20, %v7508_v58  ;;  %v2274_v20 = vadd.f32 %v7678_v55, %v7783_v11 }
 0x320   : > { %v7840_v59 = vadd.f32 %v2783_v14, %v2735_v46  ;;  %v7844_v56 = vadd.f32 %v2361_v13, %v2313_v10 }
 0x321   : > { %v2737_v28 = vpop.f32.mrf.mxu1 }
 0x322   : > { %9350 = vst [vmem:[#allocation90_spill] sm:$0xff] %v7844_v56  ;;  %2883 = vmatmul.bf16.gmra.mxu0 %v6793_v50  ;;  %v2738_v60 = vadd.f32 %v2737_v28, %v7810_v44 }
 0x323   : > { %5788 = vmatmul.msk.bf16.gmra.mxu2 %vm1162_vm0, %v6795_v51 }
 0x324   : > { %5795 = vmatmul.msk.bf16.gmra.mxu3 %vm1162_vm0, %v6776_v39  ;;  %2932 = vmatmul.bf16.gmra.mxu1 %v6797_v52 }
 0x325   : > { %3218 = vmatpush.bf16.xpose.msra.mxu3 %v9351_v41  ;;  %v6088_v41 = vld [vmem:[%s6692_s15 + $0x418] sm:$0xf0] }
 0x326   : > { %v2317_v26 = vpop.f32.mrf.mxu2 }
 0x327   : > { %v2786_v10 = vpop.f32.mrf.mxu3  ;;  %v2318_v28 = vadd.f32 %v2317_v26, %v2269_v35  ;;  %v2363_v45 = vpop.f32.mrf.mxu0 }
 0x328   : > { %v7858_v47 = vadd.f32 %v2786_v10, %v2738_v60  ;;  %v7860_v46 = vadd.f32 %v2363_v45, %v2315_v48  ;;  %v5592_v60 = vld [vmem:[%s6692_s15 + $0x410] sm:$0xf] }
 0x329   : > { %v2739_v0 = vpop.f32.mrf.mxu1  ;;  %v5593_v26 = vor.u32 %v6088_v41, %v5592_v60 }
 0x32a   : > { %9352 = vst [vmem:[#allocation91_spill] sm:$0xff] %v7860_v46  ;;  %v2740_v53 = vadd.f32 %v2739_v0, %v7810_v44  ;;  %v5556_v46 = vld [vmem:[%s6692_s15 + $0x3c8] sm:$0xf] }
 0x32b   : > { %3021 = vmatpush.bf16.msra.mxu2 %v5593_v26 }
 0x32d   : > { %3219 = vmatpush.bf16.xpose.msra.mxu3 %v9353_v63 }
 0x32e   : > { %v2319_v14 = vpop.f32.mrf.mxu2 }
 0x32f   : > { %v2788_v13 = vpop.f32.mrf.mxu3  ;;  %v2320_v49 = vadd.f32 %v2319_v14, %v2271_v7  ;;  %v2366_v48 = vpop.f32.mrf.mxu0 }
 0x330   : > { %v7870_v43 = vadd.f32 %v2788_v13, %v2740_v53  ;;  %v7874_v35 = vadd.f32 %v2366_v48, %v2318_v28  ;;  %v2276_v48 = vadd.f32 %v7687_v54, %v7783_v11  ;;  %v2279_v54 = vadd.f32 %v7705_v29, %v7783_v11 }
 0x331   : > { %v2742_v10 = vpop.f32.mrf.mxu1  ;;  %v2281_v29 = vadd.f32 %v7720_v24, %v7783_v11 }
 0x332   : > { %9354 = vst [vmem:[#allocation92_spill] sm:$0xff] %v7874_v35  ;;  %2888 = vmatmul.bf16.gmra.mxu0 %v6814_v2  ;;  %v2743_v58 = vadd.f32 %v2742_v10, %v7810_v44  ;;  %v6115_v35 = vld [vmem:[%s6692_s15 + $0x4f0] sm:$0xf0] }
 0x333   : > { %5789 = vmatmul.msk.bf16.gmra.mxu2 %vm1162_vm0, %v6816_v3 }
 0x334   : > { %5796 = vmatmul.msk.bf16.gmra.mxu3 %vm1162_vm0, %v6795_v51  ;;  %2937 = vmatmul.bf16.gmra.mxu1 %v6818_v4 }
 0x336   : > { %v2322_v22 = vpop.f32.mrf.mxu2 }
 0x337   : > { %v2791_v28 = vpop.f32.mrf.mxu3  ;;  %v2323_v45 = vadd.f32 %v2322_v22, %v2274_v20  ;;  %v2368_v53 = vpop.f32.mrf.mxu0  ;;  %v6085_v20 = vld [vmem:[%s6692_s15 + $0x400] sm:$0xf0] }
 0x338   : > { %v7885_v0 = vadd.f32 %v2791_v28, %v2743_v58  ;;  %v7887_v63 = vadd.f32 %v2368_v53, %v2320_v49  ;;  %v5580_v58 = vld [vmem:[%s6692_s15 + $0x3f8] sm:$0xf] }
 0x339   : > { %v2744_v7 = vpop.f32.mrf.mxu1  ;;  %v5581_v49 = vor.u32 %v6085_v20, %v5580_v58  ;;  %v6124_v58 = vld [vmem:[%s6692_s15 + $0x538] sm:$0xf0] }
 0x33a   : > { %9355 = vst [vmem:[#allocation93_spill] sm:$0xff] %v7887_v63  ;;  %v2745_v13 = vadd.f32 %v2744_v7, %v7810_v44 }
 0x33b   : > { %3022 = vmatpush.bf16.msra.mxu2 %v5581_v49 }
 0x33e   : > { %v2324_v55 = vpop.f32.mrf.mxu2 }
 0x33f   : > { %v2793_v60 = vpop.f32.mrf.mxu3  ;;  %v2325_v41 = vadd.f32 %v2324_v55, %v2276_v48  ;;  %v2371_v10 = vpop.f32.mrf.mxu0 }
 0x340   : > { %v7894_v26 = vadd.f32 %v2793_v60, %v2745_v13  ;;  %v7898_v22 = vadd.f32 %v2371_v10, %v2323_v45 }
 0x341   : > { %v2747_v28 = vpop.f32.mrf.mxu1 }
 0x342   : > { %9356 = vst [vmem:[#allocation94_spill] sm:$0xff] %v7898_v22  ;;  %2893 = vmatmul.bf16.gmra.mxu0 %v6835_v17  ;;  %v2748_v53 = vadd.f32 %v2747_v28, %v7810_v44 }
 0x343   : > { %5790 = vmatmul.msk.bf16.gmra.mxu2 %vm1162_vm0, %v6837_v18 }
 0x344   : > { %5797 = vmatmul.msk.bf16.gmra.mxu3 %vm1162_vm0, %v6816_v3  ;;  %2942 = vmatmul.bf16.gmra.mxu1 %v6839_v19 }
 0x346   : > { %v2327_v45 = vpop.f32.mrf.mxu2 }
 0x347   : > { %v2796_v7 = vpop.f32.mrf.mxu3  ;;  %v2328_v13 = vadd.f32 %v2327_v45, %v2279_v54  ;;  %v2373_v55 = vpop.f32.mrf.mxu0  ;;  %v5568_v45 = vld [vmem:[%s6692_s15 + $0x3e0] sm:$0xf] }
 0x348   : > { %v7909_v48 = vadd.f32 %v2796_v7, %v2748_v53  ;;  %v7911_v60 = vadd.f32 %v2373_v55, %v2325_v41  ;;  %v6082_v41 = vld [vmem:[%s6692_s15 + $0x3e8] sm:$0xf0] }
 0x349   : > { %v2749_v10 = vpop.f32.mrf.mxu1  ;;  %v5569_v55 = vor.u32 %v6082_v41, %v5568_v45 }
 0x34a   : > { %9357 = vst [vmem:[#allocation95_spill] sm:$0xff] %v7911_v60  ;;  %v2750_v20 = vadd.f32 %v2749_v10, %v7810_v44  ;;  %v5736_v10 = vld [vmem:[%s6692_s15 + $0x530] sm:$0xf]  ;;  %v5676_v60 = vld [vmem:[%s6692_s15 + $0x4b8] sm:$0xf] }
 0x34b   : > { %3023 = vmatpush.bf16.msra.mxu2 %v5569_v55 }
 0x34e   : > { %v2329_v49 = vpop.f32.mrf.mxu2 }
 0x34f   : > { %v2798_v28 = vpop.f32.mrf.mxu3  ;;  %v2330_v23 = vadd.f32 %v2329_v49, %v2281_v29  ;;  %v2376_v53 = vpop.f32.mrf.mxu0  ;;  %v5724_v49 = vld [vmem:[%s6692_s15 + $0x518] sm:$0xf] }
 0x350   : > { %v7918_v54 = vadd.f32 %v2798_v28, %v2750_v20  ;;  %v7922_v7 = vadd.f32 %v2376_v53, %v2328_v13  ;;  %v5737_v13 = vor.u32 %v6124_v58, %v5736_v10  ;;  %v6121_v28 = vld [vmem:[%s6692_s15 + $0x520] sm:$0xf0]  ;;  %v5712_v58 = vld [vmem:[%s6692_s15 + $0x500] sm:$0xf]  ;;  %v6118_v10 = vld [vmem:[%s6692_s15 + $0x508] sm:$0xf0] }
 0x351   : > { %v2752_v14 = vpop.f32.mrf.mxu1  ;;  %v5725_v45 = vor.u32 %v6121_v28, %v5724_v49  ;;  %v5713_v56 = vor.u32 %v6118_v10, %v5712_v58  ;;  %v6079_v49 = vld [vmem:[%s6692_s15 + $0x3d0] sm:$0xf0]  ;;  %v6112_v58 = vld [vmem:[%s6692_s15 + $0x4d8] sm:$0xf0]  ;;  %v5784_v10 = vld [vmem:[%s6692_s15 + $0x590] sm:$0xf] }
 0x352   : > { %2898 = vmatmul.bf16.gmra.mxu0 %v6856_v32  ;;  %v2753_v24 = vadd.f32 %v2752_v14, %v7810_v44 }
 0x353   : > { %5791 = vmatmul.msk.bf16.gmra.mxu2 %vm1162_vm0, %v6858_v33  ;;  %3066 = vmatpush.bf16.msra.mxu0 %v5737_v13 }
 0x354   : > { %5798 = vmatmul.msk.bf16.gmra.mxu3 %vm1162_vm0, %v6837_v18  ;;  %2947 = vmatmul.bf16.gmra.mxu1 %v6860_v34 }
 0x356   : > { %v2332_v20 = vpop.f32.mrf.mxu2 }
 0x357   : > { %v2801_v29 = vpop.f32.mrf.mxu3  ;;  %v2378_v14 = vpop.f32.mrf.mxu0  ;;  %3067 = vmatpush.bf16.msra.mxu0 %v5725_v45  ;;  %v5557_v45 = vor.u32 %v6079_v49, %v5556_v46  ;;  %v2286_v46 = vadd.f32 %v7757_v36, %v7783_v11 }
 0x358   : > { %v7935_v53 = vadd.f32 %v2801_v29, %v2753_v24  ;;  %v7937_v41 = vadd.f32 %v2378_v14, %v2330_v23  ;;  %v5700_v23 = vld [vmem:[%s6692_s15 + $0x4e8] sm:$0xf] }
 0x359   : > { %v2754_v55 = vpop.f32.mrf.mxu1  ;;  %v5701_v63 = vor.u32 %v6115_v35, %v5700_v23  ;;  %3024 = vmatpush.bf16.msra.mxu2 %v5557_v45 }
 0x35a   : > { %v2755_v1 = vadd.f32 %v2754_v55, %v7810_v44  ;;  %v5688_v55 = vld [vmem:[%s6692_s15 + $0x4d0] sm:$0xf] }
 0x35b   : > { %3068 = vmatpush.bf16.msra.mxu0 %v5713_v56  ;;  %v5689_v35 = vor.u32 %v6112_v58, %v5688_v55 }
 0x35e   : > { %v2334_v24 = vpop.f32.mrf.mxu2 }
 0x35f   : > { %v2803_v29 = vpop.f32.mrf.mxu3  ;;  %v2381_v14 = vpop.f32.mrf.mxu0  ;;  %3069 = vmatpush.bf16.msra.mxu0 %v5701_v63  ;;  %v2335_v23 = vadd.f32 %v2334_v24, %v2286_v46  ;;  %v6133_v24 = vld [vmem:[%s6692_s15 + $0x580] sm:$0xf0] }
 0x360   : > { %v7947_v28 = vadd.f32 %v2803_v29, %v2755_v1  ;;  %v2284_v1 = vadd.f32 %v7738_v61, %v7783_v11  ;;  %v6109_v61 = vld [vmem:[%s6692_s15 + $0x4c0] sm:$0xf0] }
 0x361   : > { %v2757_v13 = vpop.f32.mrf.mxu1  ;;  %v5677_v58 = vor.u32 %v6109_v61, %v5676_v60  ;;  %v6130_v60 = vld [vmem:[%s6692_s15 + $0x568] sm:$0xf0]  ;;  %v5652_v61 = vld [vmem:[%s6692_s15 + $0x488] sm:$0xf] }
 0x362   : > { %2903 = vmatmul.bf16.gmra.mxu0 %v6885_v5  ;;  %v2758_v56 = vadd.f32 %v2757_v13, %v7810_v44  ;;  %v6136_v13 = vld [vmem:[%s6692_s15 + $0x598] sm:$0xf0]  ;;  %v2333_v49 = vadd.f32 %v2332_v20, %v2284_v1  ;;  %v5772_v20 = vld [vmem:[%s6692_s15 + $0x578] sm:$0xf] }
 0x363   : > { %5792 = vmatmul.msk.bf16.gmra.mxu2 %vm1162_vm0, %v6889_v8  ;;  %v5785_v29 = vor.u32 %v6136_v13, %v5784_v10  ;;  %3070 = vmatpush.bf16.msra.mxu0 %v5689_v35  ;;  %v5773_v46 = vor.u32 %v6133_v24, %v5772_v20  ;;  %v5664_v10 = vld [vmem:[%s6692_s15 + $0x4a0] sm:$0xf]  ;;  %v6106_v13 = vld [vmem:[%s6692_s15 + $0x4a8] sm:$0xf0] }
 0x364   : > { %5799 = vmatmul.msk.bf16.gmra.mxu3 %vm1162_vm0, %v6858_v33  ;;  %2952 = vmatmul.bf16.gmra.mxu1 %v6891_v9  ;;  %v7969_v63 = vadd.f32 %v2381_v14, %v2333_v49  ;;  %v5665_v14 = vor.u32 %v6106_v13, %v5664_v10  ;;  %v5760_v35 = vld [vmem:[%s6692_s15 + $0x560] sm:$0xf]  ;;  %v5748_v9 = vld [vmem:[%s6692_s15 + $0x548] sm:$0xf]  ;;  %v2289_v10 = vadd.f32 %v7771_v25, %v7783_v11 }
 0x365   : > { %3119 = vmatpush.bf16.msra.mxu1 %v5785_v29  ;;  %v5761_v29 = vor.u32 %v6130_v60, %v5760_v35  ;;  %v2291_v13 = vadd.f32 %v7778_v21, %v7783_v11 }
 0x366   : > { %v2337_v45 = vpop.f32.mrf.mxu2 }
 0x367   : > { %v2806_v22 = vpop.f32.mrf.mxu3  ;;  %v2383_v36 = vpop.f32.mrf.mxu0  ;;  %3071 = vmatpush.bf16.msra.mxu0 %v5677_v58 }
 0x368   : > { %v7967_v33 = vadd.f32 %v2806_v22, %v2758_v56  ;;  %v7971_v55 = vadd.f32 %v2383_v36, %v2335_v23  ;;  %v6103_v36 = vld [vmem:[%s6692_s15 + $0x490] sm:$0xf0] }
 0x369   : > { %v2759_v1 = vpop.f32.mrf.mxu1  ;;  %3120 = vmatpush.bf16.msra.mxu1 %v5773_v46  ;;  %v5653_v22 = vor.u32 %v6103_v36, %v5652_v61 }
 0x36a   : > { %9358 = vst [vmem:[#allocation96_spill] sm:$0xff] %v7967_v33  ;;  %v2760_v56 = vadd.f32 %v2759_v1, %v7810_v44  ;;  %v6127_v1 = vld [vmem:[%s6692_s15 + $0x550] sm:$0xf0] }
 0x36b   : > { %3072 = vmatpush.bf16.msra.mxu0 %v5665_v14  ;;  %v5749_v46 = vor.u32 %v6127_v1, %v5748_v9  ;;  %v2338_v9 = vadd.f32 %v2337_v45, %v2289_v10 }
 0x36d   : > { %3121 = vmatpush.bf16.msra.mxu1 %v5761_v29 }
 0x36e   : > { %v2339_v49 = vpop.f32.mrf.mxu2 }
 0x36f   : > { %v2808_v23 = vpop.f32.mrf.mxu3  ;;  %v2386_v24 = vpop.f32.mrf.mxu0  ;;  %3073 = vmatpush.bf16.msra.mxu0 %v5653_v22 }
 0x370   : > { %v7984_v20 = vadd.f32 %v2808_v23, %v2760_v56  ;;  %v2340_v56 = vadd.f32 %v2339_v49, %v2291_v13  ;;  %v2387_v29 = vadd.f32 %v2386_v24, %v2338_v9  ;;  %v2294_v49 = vadd.f32 %v7796_v42, %v7783_v11 }
 0x371   : > { %v2762_v33 = vpop.f32.mrf.mxu1  ;;  %3122 = vmatpush.bf16.msra.mxu1 %v5749_v46  ;;  %v2296_v24 = vadd.f32 %v7807_v27, %v7783_v11  ;;  %v8022_v27 = vperm.slane %v7803_v31, 1 }
 0x372   : > { %2908 = vmatmul.bf16.gmra.mxu0 %v6923_v57  ;;  %v2763_v58 = vadd.f32 %v2762_v33, %v7810_v44 }
 0x373   : > { %5793 = vmatmul.msk.bf16.gmra.mxu2 %vm1162_vm0, %v6928_v62 }
 0x374   : > { %5800 = vmatmul.msk.bf16.gmra.mxu3 %vm1162_vm0, %v6889_v8  ;;  %2957 = vmatmul.bf16.gmra.mxu1 %v6931_v6 }
 0x376   : > { %v2342_v14 = vpop.f32.mrf.mxu2 }
 0x377   : > { %v2811_v33 = vpop.f32.mrf.mxu3  ;;  %v2388_v60 = vpop.f32.mrf.mxu0 }
 0x378   : > { %v7999_v35 = vadd.f32 %v2811_v33, %v2763_v58  ;;  %v2389_v23 = vadd.f32 %v2388_v60, %v2340_v56 }
 0x379   : > { %v2764_v61 = vpop.f32.mrf.mxu1 }
 0x37a   : > { %v3184_v36 = vpack.c.bf16 %v2389_v23, %v2387_v29  ;;  %v2765_v25 = vadd.f32 %v2764_v61, %v7810_v44 }
 0x37e   : > { %v2344_v1 = vpop.f32.mrf.mxu2 }
 0x37f   : > { %v2813_v8 = vpop.f32.mrf.mxu3  ;;  %v2391_v6 = vpop.f32.mrf.mxu0  ;;  %v2345_v46 = vadd.f32 %v2344_v1, %v2296_v24 }
 0x380   : > { %v8002_v21 = vadd.f32 %v2813_v8, %v2765_v25  ;;  %v2343_v8 = vadd.f32 %v2342_v14, %v2294_v49  ;;  %v9360_v49 = vld [vmem:[#allocation18_spill] sm:$0xff] }
 0x381   : > { %v2767_v22 = vpop.f32.mrf.mxu1 }
 0x382   : > { %2913 = vmatmul.bf16.gmra.mxu0 %v6943_v15  ;;  %v2768_v45 = vadd.f32 %v2767_v22, %v7810_v44  ;;  %v2392_v33 = vadd.f32 %v2391_v6, %v2343_v8  ;;  %v9363_v8 = vld [vmem:[#allocation13_spill] sm:$0xff] }
 0x383   : > { %3025 = vmatmul.bf16.vlgmr.msra.gmra.mxu2 %v6774_v38 }
 0x384   : > { %5801 = vmatmul.msk.bf16.gmra.mxu3 %vm1162_vm0, %v6928_v62  ;;  %2962 = vmatmul.bf16.gmra.mxu1 %v6945_v16 }
 0x386   : > { %v2830_v10 = vpop.f32.mrf.mxu2 }
 0x387   : > { %v2816_v58 = vpop.f32.mrf.mxu3  ;;  %v8017_v9 = vadd.f32 %v2830_v10, %v7828_v30  ;;  %v2393_v56 = vpop.f32.mrf.mxu0 }
 0x388   : > { %v8014_v13 = vadd.f32 %v2816_v58, %v2768_v45  ;;  %v2394_v38 = vadd.f32 %v2393_v56, %v2345_v46  ;;  %v9359_v45 = vld [vmem:[#allocation19_spill] sm:$0xff]  ;;  %v3207_v46 = vsel %vm1162_vm0, %v3184_v36, 0  ;;  %v9367_v36 = vpack.c.bf16 %v7971_v55, %v7969_v63 }
 0x389   : > { %v2769_v60 = vpop.f32.mrf.mxu1  ;;  %v9361_v24 = vpack.c.bf16 %v9359_v45, %v9360_v49  ;;  %v9368_v45 = vld [vmem:[#allocation21_spill] sm:$0xff] }
 0x38a   : > { %v3187_v29 = vpack.c.bf16 %v2394_v38, %v2392_v33  ;;  %v2770_v42 = vadd.f32 %v2769_v60, %v7810_v44 }
 0x38c   : > { %v3210_v11 = vsel %vm1162_vm0, %v3187_v29, 0 }
 0x38d   : > { %3274 = vmatpush.bf16.xpose.msrb.mxu2 %v3210_v11 }
 0x38e   : > { %v2832_v23 = vpop.f32.mrf.mxu2 }
 0x38f   : > { %v2818_v14 = vpop.f32.mrf.mxu3  ;;  %v8027_v30 = vadd.f32 %v2832_v23, %v7840_v59  ;;  %v2879_v25 = vpop.f32.mrf.mxu0  ;;  %v9362_v59 = vpack.c.bf16 %v7798_v12, %v7785_v37  ;;  %v9364_v37 = vld [vmem:[#allocation87_spill] sm:$0xff]  ;;  %v9365_v12 = vld [vmem:[#allocation86_spill] sm:$0xff] }
 0x390   : > { %v8024_v61 = vadd.f32 %v2818_v14, %v2770_v42  ;;  %v2880_v6 = vadd.f32 %v2879_v25, %v8022_v27  ;;  %v9366_v29 = vpack.c.bf16 %v9364_v37, %v9365_v12  ;;  %v3204_v42 = vsel %vm1162_vm0, %v9367_v36, 0 }
 0x391   : > { %v2928_v44 = vpop.f32.mrf.mxu1 }
 0x392   : > { %v2929_v22 = vadd.f32 %v2928_v44, %v2880_v6  ;;  %3074 = vmatmul.bf16.vlgmr.msra.gmra.mxu0 %v6778_v40 }
 0x393   : > { %3030 = vmatmul.bf16.gmra.mxu2 %v6793_v50 }
 0x394   : > { %3220 = vmatmul.bf16.vlgmr.msra.gmra.mxu3 %v9361_v24  ;;  %5802 = vmatmul.msk.bf16.vlgmr.msra.gmra.mxu1 %vm1162_vm0, %v9363_v8  ;;  %v9371_v24 = vld [vmem:[#allocation85_spill] sm:$0xff] }
 0x395   : > { %3245 = vmatpush.bf16.xpose.msra.mxu3 %v9362_v59  ;;  %3275 = vmatpush.bf16.xpose.msrb.mxu2 %v3207_v46  ;;  %v9372_v59 = vld [vmem:[#allocation84_spill] sm:$0xff]  ;;  %v9374_v46 = vpack.c.bf16 %v7937_v41, %v7922_v7  ;;  %v9378_v7 = vld [vmem:[#allocation83_spill] sm:$0xff]  ;;  %v9379_v41 = vld [vmem:[#allocation82_spill] sm:$0xff] }
 0x396   : > { %v2835_v58 = vpop.f32.mrf.mxu2  ;;  %v9373_v8 = vpack.c.bf16 %v9371_v24, %v9372_v59  ;;  %v9380_v36 = vpack.c.bf16 %v9378_v7, %v9379_v41  ;;  %v9390_v41 = vld [vmem:[#allocation55_spill] sm:$0xff] }
 0x397   : > { %v2977_v10 = vpop.f32.mrf.mxu3  ;;  %v8044_v40 = vadd.f32 %v2835_v58, %v7858_v47  ;;  %v2881_v56 = vpop.f32.mrf.mxu0  ;;  %v3201_v58 = vsel %vm1162_vm0, %v9374_v46, 0 }
 0x398   : > { %v8046_v50 = vadd.f32 %v2977_v10, %v2929_v22  ;;  %v2882_v33 = vadd.f32 %v2881_v56, %v8022_v27  ;;  %v9376_v56 = vld [vmem:[#allocation65_spill] sm:$0xff] }
 0x399   : > { %v2930_v38 = vpop.f32.mrf.mxu1 }
 0x39a   : > { %v2931_v60 = vadd.f32 %v2930_v38, %v2882_v33 }
 0x39d   : > { %3246 = vmatpush.bf16.xpose.msra.mxu3 %v9366_v29  ;;  %3276 = vmatpush.bf16.xpose.msrb.mxu2 %v3204_v42 }
 0x39e   : > { %v2837_v11 = vpop.f32.mrf.mxu2 }
 0x39f   : > { %v2979_v47 = vpop.f32.mrf.mxu3  ;;  %v8057_v14 = vadd.f32 %v2837_v11, %v7870_v43  ;;  %v2884_v25 = vpop.f32.mrf.mxu0  ;;  %v9369_v43 = vld [vmem:[#allocation20_spill] sm:$0xff] }
 0x3a0   : > { %v8059_v23 = vadd.f32 %v2979_v47, %v2931_v60  ;;  %v2885_v6 = vadd.f32 %v2884_v25, %v8022_v27  ;;  %v9370_v49 = vpack.c.bf16 %v9368_v45, %v9369_v43  ;;  %v9381_v47 = vld [vmem:[#allocation63_spill] sm:$0xff]  ;;  %v9382_v25 = vld [vmem:[#allocation61_spill] sm:$0xff] }
 0x3a1   : > { %v2933_v63 = vpop.f32.mrf.mxu1 }
 0x3a2   : > { %v2934_v55 = vadd.f32 %v2933_v63, %v2885_v6  ;;  %3079 = vmatmul.bf16.gmra.mxu0 %v6797_v52  ;;  %v9383_v6 = vpack.c.bf16 %v9381_v47, %v9382_v25  ;;  %v9411_v47 = vld [vmem:[#allocation40_spill] sm:$0xff] }
 0x3a3   : > { %3035 = vmatmul.bf16.gmra.mxu2 %v6814_v2  ;;  %v9375_v2 = vld [vmem:[#allocation67_spill] sm:$0xff] }
 0x3a4   : > { %3225 = vmatmul.bf16.gmra.mxu3 %v9370_v49  ;;  %5803 = vmatmul.msk.bf16.gmra.mxu1 %vm1162_vm0, %v6776_v39  ;;  %v9377_v33 = vpack.c.bf16 %v9375_v2, %v9376_v56  ;;  %v9388_v2 = vld [vmem:[#allocation57_spill] sm:$0xff] }
 0x3a5   : > { %3247 = vmatpush.bf16.xpose.msra.mxu3 %v9373_v8  ;;  %3277 = vmatpush.bf16.xpose.msrb.mxu2 %v3201_v58  ;;  %v9384_v8 = vld [vmem:[#allocation23_spill] sm:$0xff] }
 0x3a6   : > { %v2840_v52 = vpop.f32.mrf.mxu2 }
 0x3a7   : > { %v2982_v10 = vpop.f32.mrf.mxu3  ;;  %v8084_v38 = vadd.f32 %v2840_v52, %v7885_v0  ;;  %v2886_v37 = vpop.f32.mrf.mxu0 }
 0x3a8   : > { %v8086_v60 = vadd.f32 %v2982_v10, %v2934_v55  ;;  %v2887_v39 = vadd.f32 %v2886_v37, %v8022_v27  ;;  %v9387_v10 = vld [vmem:[#allocation59_spill] sm:$0xff] }
 0x3a9   : > { %v2935_v12 = vpop.f32.mrf.mxu1  ;;  %v9389_v56 = vpack.c.bf16 %v9387_v10, %v9388_v2 }
 0x3aa   : > { %v2936_v29 = vadd.f32 %v2935_v12, %v2887_v39 }
 0x3ad   : > { %3674 = vmatpush.bf16.xpose.msra.mxu2 %v9377_v33  ;;  %3248 = vmatpush.bf16.xpose.msra.mxu3 %v9380_v36 }
 0x3ae   : > { %v2842_v42 = vpop.f32.mrf.mxu2 }
 0x3af   : > { %v2984_v11 = vpop.f32.mrf.mxu3  ;;  %v8096_v0 = vadd.f32 %v2842_v42, %v7894_v26  ;;  %v2889_v55 = vpop.f32.mrf.mxu0  ;;  %v9385_v26 = vld [vmem:[#allocation22_spill] sm:$0xff] }
 0x3b0   : > { %v8098_v63 = vadd.f32 %v2984_v11, %v2936_v29  ;;  %v2890_v45 = vadd.f32 %v2889_v55, %v8022_v27  ;;  %v9386_v46 = vpack.c.bf16 %v9384_v8, %v9385_v26  ;;  %v9393_v55 = vld [vmem:[#allocation25_spill] sm:$0xff] }
 0x3b1   : > { %v2938_v24 = vpop.f32.mrf.mxu1 }
 0x3b2   : > { %v3837_v49 = vpack.c.bf16 %v8098_v63, %v8086_v60  ;;  %v2939_v59 = vadd.f32 %v2938_v24, %v2890_v45  ;;  %3084 = vmatmul.bf16.gmra.mxu0 %v6818_v4  ;;  %v9394_v45 = vld [vmem:[#allocation24_spill] sm:$0xff]  ;;  %v9416_v60 = vpack.c.bf16 %v8059_v23, %v8046_v50 }
 0x3b3   : > { %3040 = vmatmul.bf16.gmra.mxu2 %v6835_v17  ;;  %v9395_v24 = vpack.c.bf16 %v9393_v55, %v9394_v45  ;;  %v9421_v50 = vld [vmem:[#allocation52_spill] sm:$0xff] }
 0x3b4   : > { %3230 = vmatmul.bf16.gmra.mxu3 %v9386_v46  ;;  %5804 = vmatmul.msk.bf16.gmra.mxu1 %vm1162_vm0, %v6795_v51  ;;  %v9391_v51 = vld [vmem:[#allocation53_spill] sm:$0xff] }
 0x3b5   : > { %3675 = vmatpush.bf16.xpose.msra.mxu2 %v9383_v6  ;;  %v9392_v36 = vpack.c.bf16 %v9390_v41, %v9391_v51 }
 0x3b6   : > { %v2845_v58 = vpop.f32.mrf.mxu2 }
 0x3b7   : > { %v2987_v52 = vpop.f32.mrf.mxu3  ;;  %v8116_v33 = vadd.f32 %v2845_v58, %v7909_v48  ;;  %v2891_v4 = vpop.f32.mrf.mxu0 }
 0x3b8   : > { %v8118_v37 = vadd.f32 %v2987_v52, %v2939_v59  ;;  %v2892_v17 = vadd.f32 %v2891_v4, %v8022_v27  ;;  %v9397_v4 = vld [vmem:[#allocation34_spill] sm:$0xff] }
 0x3b9   : > { %v2940_v39 = vpop.f32.mrf.mxu1 }
 0x3ba   : > { %v2941_v12 = vadd.f32 %v2940_v39, %v2892_v17 }
 0x3bd   : > { %3676 = vmatpush.bf16.xpose.msra.mxu2 %v9389_v56 }
 0x3be   : > { %v2847_v29 = vpop.f32.mrf.mxu2 }
 0x3bf   : > { %v2989_v7 = vpop.f32.mrf.mxu3  ;;  %v8125_v42 = vadd.f32 %v2847_v29, %v7918_v54  ;;  %v2894_v48 = vpop.f32.mrf.mxu0 }
 0x3c0   : > { %v8127_v11 = vadd.f32 %v2989_v7, %v2941_v12 }
 0x3c1   : > { %v2943_v6 = vpop.f32.mrf.mxu1 }
 0x3c2   : > { %v3840_v25 = vpack.c.bf16 %v8127_v11, %v8118_v37  ;;  %3089 = vmatmul.bf16.gmra.mxu0 %v6839_v19 }
 0x3c3   : > { %3045 = vmatmul.bf16.gmra.mxu2 %v6856_v32 }
 0x3c4   : > { %3235 = vmatmul.bf16.gmra.mxu3 %v9395_v24  ;;  %5805 = vmatmul.msk.bf16.gmra.mxu1 %vm1162_vm0, %v6816_v3  ;;  %v9400_v24 = vld [vmem:[#allocation16_spill] sm:$0xff] }
 0x3c5   : > { %3677 = vmatpush.bf16.xpose.msra.mxu2 %v9392_v36 }
 0x3c6   : > { %v2850_v54 = vpop.f32.mrf.mxu2 }
 0x3c7   : > { %v2992_v59 = vpop.f32.mrf.mxu3  ;;  %v8141_v8 = vadd.f32 %v2850_v54, %v7935_v53  ;;  %v2896_v26 = vpop.f32.mrf.mxu0  ;;  %v9396_v53 = vld [vmem:[#allocation35_spill] sm:$0xff]  ;;  %v9401_v54 = vld [vmem:[#allocation37_spill] sm:$0xff] }
 0x3c8   : > { %v9398_v17 = vpack.c.bf16 %v9396_v53, %v9397_v4 }
 0x3c9   : > { %v2945_v46 = vpop.f32.mrf.mxu1 }
 0x3ce   : > { %v2852_v58 = vpop.f32.mrf.mxu2 }
 0x3cf   : > { %v2994_v52 = vpop.f32.mrf.mxu3  ;;  %v8144_v19 = vadd.f32 %v2852_v58, %v7947_v28  ;;  %v2899_v32 = vpop.f32.mrf.mxu0  ;;  %v9402_v58 = vld [vmem:[#allocation36_spill] sm:$0xff] }
 0x3d0   : > { %v2900_v10 = vadd.f32 %v2899_v32, %v8022_v27  ;;  %v9403_v32 = vpack.c.bf16 %v9401_v54, %v9402_v58  ;;  %v9409_v58 = vld [vmem:[#allocation15_spill] sm:$0xff] }
 0x3d1   : > { %v3375_v2 = vpack.c.bf16 %v8144_v19, %v8141_v8  ;;  %v2948_v56 = vpop.f32.mrf.mxu1 }
 0x3d2   : > { %v2949_v3 = vadd.f32 %v2948_v56, %v2900_v10  ;;  %3094 = vmatmul.bf16.gmra.mxu0 %v6860_v34  ;;  %v9399_v34 = vld [vmem:[#allocation96_spill] sm:$0xff]  ;;  %v9404_v10 = vld [vmem:[#allocation14_spill] sm:$0xff] }
 0x3d3   : > { %3050 = vmatmul.bf16.gmra.mxu2 %v6885_v5 }
 0x3d4   : > { %3249 = vmatmul.bf16.vlgmr.msra.gmra.mxu3 %v9398_v17  ;;  %5806 = vmatmul.msk.bf16.gmra.mxu1 %vm1162_vm0, %v6837_v18 }
 0x3d6   : > { %v2855_v28 = vpop.f32.mrf.mxu2 }
 0x3d7   : > { %v2997_v39 = vpop.f32.mrf.mxu3  ;;  %v8158_v29 = vpop.f32.mrf.mxu0  ;;  %v8165_v5 = vadd.f32 %v2855_v28, %v9399_v34 }
 0x3d8   : > { %v8156_v12 = vadd.f32 %v2997_v39, %v2949_v3 }
 0x3d9   : > { %v8160_v7 = vpop.f32.mrf.mxu1 }
 0x3de   : > { %v2857_v41 = vpop.f32.mrf.mxu2 }
 0x3df   : > { %v8162_v51 = vpop.f32.mrf.mxu3  ;;  %v2858_v36 = vadd.f32 %v2857_v41, %v7984_v20  ;;  %v8168_v55 = vpop.f32.mrf.mxu0 }
 0x3e1   : > { %v3378_v18 = vpack.c.bf16 %v2858_v36, %v8165_v5  ;;  %v8171_v45 = vpop.f32.mrf.mxu1  ;;  %v9405_v5 = vld [vmem:[#allocation17_spill] sm:$0xff]  ;;  %v9406_v36 = vld [vmem:[#allocation39_spill] sm:$0xff] }
 0x3e2   : > { %3099 = vmatmul.bf16.gmra.mxu0 %v9400_v24  ;;  %v9407_v24 = vld [vmem:[#allocation38_spill] sm:$0xff] }
 0x3e3   : > { %3055 = vmatmul.bf16.gmra.mxu2 %v6923_v57  ;;  %v9408_v54 = vpack.c.bf16 %v9406_v36, %v9407_v24 }
 0x3e4   : > { %3254 = vmatmul.bf16.gmra.mxu3 %v9403_v32  ;;  %5807 = vmatmul.msk.bf16.gmra.mxu1 %vm1162_vm0, %v9404_v10  ;;  %v2895_v32 = vadd.f32 %v2894_v48, %v8022_v27 }
 0x3e6   : > { %v2860_v56 = vpop.f32.mrf.mxu2 }
 0x3e7   : > { %v8180_v3 = vpop.f32.mrf.mxu3  ;;  %v2906_v20 = vpop.f32.mrf.mxu0  ;;  %v2861_v28 = vadd.f32 %v2860_v56, %v7999_v35  ;;  %v2897_v35 = vadd.f32 %v2896_v26, %v8022_v27  ;;  %v9410_v26 = vld [vmem:[#allocation41_spill] sm:$0xff] }
 0x3e8   : > { %v9412_v22 = vpack.c.bf16 %v9410_v26, %v9411_v47  ;;  %v2907_v37 = vadd.f32 %v2906_v20, %v8022_v27  ;;  %v9423_v26 = vld [vmem:[#allocation79_spill] sm:$0xff] }
 0x3e9   : > { %v8182_v53 = vpop.f32.mrf.mxu1 }
 0x3ee   : > { %v2862_v4 = vpop.f32.mrf.mxu2 }
 0x3ef   : > { %v8184_v17 = vpop.f32.mrf.mxu3  ;;  %v2863_v57 = vadd.f32 %v2862_v4, %v8002_v21  ;;  %v2909_v39 = vpop.f32.mrf.mxu0 }
 0x3f1   : > { %v3381_v41 = vpack.c.bf16 %v2863_v57, %v2861_v28  ;;  %v2958_v34 = vpop.f32.mrf.mxu1  ;;  %v2944_v28 = vadd.f32 %v2943_v6, %v2895_v32  ;;  %v2946_v57 = vadd.f32 %v2945_v46, %v2897_v35  ;;  %v9413_v6 = vld [vmem:[#allocation51_spill] sm:$0xff]  ;;  %v9414_v46 = vld [vmem:[#allocation49_spill] sm:$0xff] }
 0x3f2   : > { %3104 = vmatmul.bf16.gmra.mxu0 %v9405_v5 }
 0x3f3   : > { %3060 = vmatmul.bf16.gmra.mxu2 %v6943_v15  ;;  %v2993_v5 = vadd.f32 %v2992_v59, %v2944_v28  ;;  %v2995_v1 = vadd.f32 %v2994_v52, %v2946_v57  ;;  %v9415_v59 = vpack.c.bf16 %v9413_v6, %v9414_v46  ;;  %v9424_v6 = vld [vmem:[#allocation78_spill] sm:$0xff] }
 0x3f4   : > { %3259 = vmatmul.bf16.gmra.mxu3 %v9408_v54  ;;  %5808 = vmatmul.msk.bf16.gmra.mxu1 %vm1162_vm0, %v9409_v58  ;;  %v9425_v46 = vpack.c.bf16 %v9423_v26, %v9424_v6  ;;  %v9438_v6 = vld [vmem:[#allocation27_spill] sm:$0xff] }
 0x3f5   : > { %v3843_v48 = vpack.c.bf16 %v2995_v1, %v2993_v5 }
 0x3f6   : > { %v2865_v10 = vpop.f32.mrf.mxu2 }
 0x3f7   : > { %v3007_v21 = vpop.f32.mrf.mxu3  ;;  %v2911_v56 = vpop.f32.mrf.mxu0  ;;  %v2866_v36 = vadd.f32 %v2865_v10, %v8014_v13  ;;  %v8217_v10 = vperm.slane %v7803_v31, 2 }
 0x3f8   : > { %v2912_v52 = vadd.f32 %v2911_v56, %v8022_v27 }
 0x3f9   : > { %v2960_v4 = vpop.f32.mrf.mxu1 }
 0x3fa   : > { %v2961_v28 = vadd.f32 %v2960_v4, %v2912_v52  ;;  %v9427_v52 = vld [vmem:[#allocation76_spill] sm:$0xff] }
 0x3fe   : > { %v2867_v15 = vpop.f32.mrf.mxu2 }
 0x3ff   : > { %v3009_v44 = vpop.f32.mrf.mxu3  ;;  %v2868_v24 = vadd.f32 %v2867_v15, %v8024_v61  ;;  %v2914_v54 = vpop.f32.mrf.mxu0 }
 0x400   : > { %v2915_v13 = vadd.f32 %v2914_v54, %v8022_v27  ;;  %v3010_v56 = vadd.f32 %v3009_v44, %v2961_v28  ;;  %v9417_v44 = vld [vmem:[#allocation81_spill] sm:$0xff] }
 0x401   : > { %v3384_v58 = vpack.c.bf16 %v2868_v24, %v2866_v36  ;;  %v2963_v43 = vpop.f32.mrf.mxu1 }
 0x402   : > { %3109 = vmatmul.bf16.gmra.mxu0 %v6945_v16  ;;  %v2910_v16 = vadd.f32 %v2909_v39, %v8022_v27  ;;  %v2964_v32 = vadd.f32 %v2963_v43, %v2915_v13  ;;  %v2905_v39 = vadd.f32 %v8168_v55, %v8022_v27 }
 0x403   : > { %5810 = vmatmul.msk.bf16.vlgmr.msrb.gmra.mxu2 %vm1162_vm0, %v9415_v59  ;;  %3403 = vmatpush.bf16.msrb.mxu0 %v3384_v58 }
 0x404   : > { %3264 = vmatmul.bf16.gmra.mxu3 %v9412_v22  ;;  %3890 = vmatpush.bf16.msrb.mxu2 %v3843_v48  ;;  %v2954_v55 = vadd.f32 %v8171_v45, %v2905_v39 }
 0x405   : > { %5809 = vmatmul.msk.bf16.gmra.mxu1 %vm1162_vm0, %v6928_v62  ;;  %v2959_v62 = vadd.f32 %v2958_v34, %v2910_v16  ;;  %v9426_v16 = vld [vmem:[#allocation77_spill] sm:$0xff] }
 0x406   : > { %v3026_v1 = vpop.f32.mrf.mxu2 }
 0x407   : > { %v3012_v61 = vpop.f32.mrf.mxu3  ;;  %v2916_v47 = vpop.f32.mrf.mxu0  ;;  %3404 = vmatpush.bf16.msrb.mxu0 %v3381_v41  ;;  %v3027_v43 = vadd.f32 %v3026_v1, %v8217_v10  ;;  %v3008_v31 = vadd.f32 %v3007_v21, %v2959_v62  ;;  %v9418_v21 = vld [vmem:[#allocation80_spill] sm:$0xff] }
 0x408   : > { %3891 = vmatpush.bf16.msrb.mxu2 %v3840_v25  ;;  %v2917_v22 = vadd.f32 %v2916_v47, %v8022_v27  ;;  %v3013_v11 = vadd.f32 %v3012_v61, %v2964_v32  ;;  %v9419_v5 = vpack.c.bf16 %v9417_v44, %v9418_v21  ;;  %v9428_v47 = vpack.c.bf16 %v9426_v16, %v9427_v52  ;;  %v9430_v62 = vld [vmem:[#allocation56_spill] sm:$0xff]  ;;  %v9435_v44 = vld [vmem:[#allocation62_spill] sm:$0xff] }
 0x409   : > { %v2965_v35 = vpop.f32.mrf.mxu1  ;;  %v3382_v19 = vpack.c.bf16 %v3010_v56, %v3008_v31  ;;  %v9436_v21 = vld [vmem:[#allocation60_spill] sm:$0xff] }
 0x40a   : > { %v2966_v57 = vadd.f32 %v2965_v35, %v2917_v22  ;;  %v9429_v35 = vld [vmem:[#allocation58_spill] sm:$0xff] }
 0x40b   : > { %3405 = vmatpush.bf16.msrb.mxu0 %v3378_v18  ;;  %v2956_v18 = vadd.f32 %v8182_v53, %v2907_v37  ;;  %v9431_v28 = vpack.c.bf16 %v9429_v35, %v9430_v62 }
 0x40c   : > { %3892 = vmatpush.bf16.msrb.mxu2 %v3837_v49  ;;  %v2902_v49 = vadd.f32 %v8158_v29, %v8022_v27  ;;  %v3003_v29 = vadd.f32 %v8180_v3, %v2954_v55 }
 0x40d   : > { %v3005_v45 = vadd.f32 %v8184_v17, %v2956_v18 }
 0x40e   : > { %v3028_v41 = vpop.f32.mrf.mxu2  ;;  %v2951_v27 = vadd.f32 %v8160_v7, %v2902_v49 }
 0x40f   : > { %v3014_v25 = vpop.f32.mrf.mxu3  ;;  %v3075_v4 = vpop.f32.mrf.mxu0  ;;  %3406 = vmatpush.bf16.msrb.mxu0 %v3375_v2  ;;  %v9420_v2 = vld [vmem:[#allocation54_spill] sm:$0xff]  ;;  %v3029_v53 = vadd.f32 %v3028_v41, %v8217_v10  ;;  %v3379_v48 = vpack.c.bf16 %v3005_v45, %v3003_v29 }
 0x410   : > { %v3015_v34 = vadd.f32 %v3014_v25, %v2966_v57  ;;  %3893 = vmatpush.bf16.msrb.mxu2 %v9416_v60  ;;  %v3076_v63 = vadd.f32 %v3075_v4, %v3027_v43  ;;  %v9422_v23 = vpack.c.bf16 %v9420_v2, %v9421_v50  ;;  %v3000_v58 = vadd.f32 %v8162_v51, %v2951_v27  ;;  %v9432_v43 = vld [vmem:[#allocation75_spill] sm:$0xff]  ;;  %v9433_v25 = vld [vmem:[#allocation74_spill] sm:$0xff] }
 0x411   : > { %v3124_v15 = vpop.f32.mrf.mxu1  ;;  %v9434_v41 = vpack.c.bf16 %v9432_v43, %v9433_v25 }
 0x412   : > { %v3385_v20 = vpack.c.bf16 %v3015_v34, %v3013_v11  ;;  %v8239_v8 = vadd.f32 %v3124_v15, %v3076_v63  ;;  %v3376_v3 = vpack.c.bf16 %v3000_v58, %v8156_v12 }
 0x413   : > { %3703 = vmatpush.bf16.xpose.msra.mxu0 %v9419_v5  ;;  %5811 = vmatmul.msk.bf16.gmra.mxu2 %vm1162_vm0, %v9422_v23  ;;  %v9437_v5 = vpack.c.bf16 %v9435_v44, %v9436_v21  ;;  %v9445_v44 = vld [vmem:[#allocation30_spill] sm:$0xff] }
 0x414   : > { %3432 = vmatpush.bf16.msra.mxu1 %v3385_v20 }
 0x416   : > { %v3031_v36 = vpop.f32.mrf.mxu2 }
 0x417   : > { %v3077_v24 = vpop.f32.mrf.mxu0  ;;  %v3032_v17 = vadd.f32 %v3031_v36, %v8217_v10  ;;  %v8268_v57 = vpop.f32.mrf.mxu3 }
 0x418   : > { %3433 = vmatpush.bf16.msra.mxu1 %v3382_v19  ;;  %v3078_v54 = vadd.f32 %v3077_v24, %v3029_v53 }
 0x419   : > { %v3126_v59 = vpop.f32.mrf.mxu1 }
 0x41a   : > { %v8253_v13 = vadd.f32 %v3126_v59, %v3078_v54 }
 0x41b   : > { %3704 = vmatpush.bf16.xpose.msra.mxu0 %v9425_v46  ;;  %v9439_v46 = vld [vmem:[#allocation26_spill] sm:$0xff] }
 0x41c   : > { %3434 = vmatpush.bf16.msra.mxu1 %v3379_v48  ;;  %v9440_v59 = vpack.c.bf16 %v9438_v6, %v9439_v46 }
 0x41e   : > { %v3033_v61 = vpop.f32.mrf.mxu2 }
 0x41f   : > { %v3080_v1 = vpop.f32.mrf.mxu0  ;;  %v3034_v12 = vadd.f32 %v3033_v61, %v8217_v10  ;;  %v8278_v4 = vpop.f32.mrf.mxu3 }
 0x420   : > { %3435 = vmatpush.bf16.msra.mxu1 %v3376_v3  ;;  %v3081_v51 = vadd.f32 %v3080_v1, %v3032_v17 }
 0x421   : > { %v3129_v22 = vpop.f32.mrf.mxu1 }
 0x422   : > { %v8262_v32 = vadd.f32 %v3129_v22, %v3081_v51 }
 0x423   : > { %3705 = vmatpush.bf16.xpose.msra.mxu0 %v9428_v47  ;;  %5812 = vmatmul.msk.bf16.gmra.mxu2 %vm1162_vm0, %v9431_v28 }
 0x426   : > { %v3036_v39 = vpop.f32.mrf.mxu2 }
 0x427   : > { %v3082_v37 = vpop.f32.mrf.mxu0  ;;  %v3037_v60 = vadd.f32 %v3036_v39, %v8217_v10  ;;  %v8288_v50 = vpop.f32.mrf.mxu3  ;;  %v9441_v39 = vld [vmem:[#allocation29_spill] sm:$0xff] }
 0x428   : > { %v3083_v11 = vadd.f32 %v3082_v37, %v3034_v12  ;;  %v9442_v37 = vld [vmem:[#allocation28_spill] sm:$0xff] }
 0x429   : > { %v3131_v31 = vpop.f32.mrf.mxu1 }
 0x42a   : > { %v8274_v56 = vadd.f32 %v3131_v31, %v3083_v11  ;;  %v9443_v11 = vpack.c.bf16 %v9441_v39, %v9442_v37 }
 0x42b   : > { %3706 = vmatpush.bf16.xpose.msra.mxu0 %v9434_v41 }
 0x42e   : > { %v3038_v63 = vpop.f32.mrf.mxu2 }
 0x42f   : > { %v3085_v49 = vpop.f32.mrf.mxu0  ;;  %v3039_v15 = vadd.f32 %v3038_v63, %v8217_v10  ;;  %v8295_v48 = vpop.f32.mrf.mxu3 }
 0x430   : > { %v3086_v55 = vadd.f32 %v3085_v49, %v3037_v60 }
 0x431   : > { %v3134_v18 = vpop.f32.mrf.mxu1 }
 0x432   : > { %v8281_v20 = vadd.f32 %v3134_v18, %v3086_v55  ;;  %v9444_v18 = vld [vmem:[#allocation31_spill] sm:$0xff] }
 0x433   : > { %5813 = vmatmul.msk.bf16.gmra.mxu2 %vm1162_vm0, %v9437_v5  ;;  %v9446_v21 = vpack.c.bf16 %v9444_v18, %v9445_v44 }
 0x436   : > { %v3041_v19 = vpop.f32.mrf.mxu2 }
 0x437   : > { %v3087_v2 = vpop.f32.mrf.mxu0  ;;  %v3042_v53 = vadd.f32 %v3041_v19, %v8217_v10  ;;  %v8305_v52 = vpop.f32.mrf.mxu3 }
 0x438   : > { %v3088_v23 = vadd.f32 %v3087_v2, %v3039_v15 }
 0x439   : > { %v3136_v27 = vpop.f32.mrf.mxu1 }
 0x43a   : > { %v8290_v29 = vadd.f32 %v3136_v27, %v3088_v23 }
 0x43e   : > { %v3043_v36 = vpop.f32.mrf.mxu2 }
 0x43f   : > { %v3090_v24 = vpop.f32.mrf.mxu0  ;;  %v3044_v3 = vadd.f32 %v3043_v36, %v8217_v10  ;;  %v8317_v43 = vpop.f32.mrf.mxu3  ;;  %v9447_v36 = vld [vmem:[#allocation33_spill] sm:$0xff] }
 0x440   : > { %v3091_v54 = vadd.f32 %v3090_v24, %v3042_v53  ;;  %v9448_v24 = vld [vmem:[#allocation32_spill] sm:$0xff] }
 0x441   : > { %v3139_v58 = vpop.f32.mrf.mxu1 }
 0x442   : > { %v8297_v26 = vadd.f32 %v3139_v58, %v3091_v54  ;;  %v9449_v54 = vpack.c.bf16 %v9447_v36, %v9448_v24 }
 0x443   : > { %3678 = vmatmul.bf16.vlgmr.msra.gmra.mxu2 %v9440_v59 }
 0x446   : > { %v3046_v17 = vpop.f32.mrf.mxu2 }
 0x447   : > { %v3092_v61 = vpop.f32.mrf.mxu0  ;;  %v3047_v22 = vadd.f32 %v3046_v17, %v8217_v10  ;;  %v8319_v49 = vpop.f32.mrf.mxu3 }
 0x448   : > { %v3093_v1 = vadd.f32 %v3092_v61, %v3044_v3 }
 0x449   : > { %v3141_v51 = vpop.f32.mrf.mxu1 }
 0x44a   : > { %v8303_v16 = vadd.f32 %v3141_v51, %v3093_v1 }
 0x44c   : > { %v3844_v47 = vpack.c.bf16 %v8303_v16, %v8297_v26  ;;  %v9459_v26 = vpack.c.bf16 %v8057_v14, %v8044_v40  ;;  %v9460_v16 = vpack.c.bf16 %v8274_v56, %v8262_v32  ;;  %v9463_v14 = vld [vmem:[#allocation91_spill] sm:$0xff]  ;;  %v9464_v32 = vld [vmem:[#allocation90_spill] sm:$0xff] }
 0x44d   : > { %v9465_v56 = vpack.c.bf16 %v9463_v14, %v9464_v32 }
 0x44e   : > { %v3048_v35 = vpop.f32.mrf.mxu2 }
 0x44f   : > { %v3095_v62 = vpop.f32.mrf.mxu0  ;;  %v8324_v2 = vpop.f32.mrf.mxu3 }
 0x450   : > { %v8310_v28 = vadd.f32 %v3095_v62, %v3047_v22 }
 0x451   : > { %v8312_v12 = vpop.f32.mrf.mxu1 }
 0x453   : > { %3683 = vmatmul.bf16.gmra.mxu2 %v9443_v11 }
 0x456   : > { %v3051_v25 = vpop.f32.mrf.mxu2 }
 0x457   : > { %v3097_v41 = vpop.f32.mrf.mxu0  ;;  %v3250_v58 = vpop.f32.mrf.mxu3 }
 0x458   : > { %v3251_v51 = vadd.f32 %v3250_v58, %v8268_v57 }
 0x459   : > { %v3146_v31 = vpop.f32.mrf.mxu1 }
 0x45e   : > { %v3053_v60 = vpop.f32.mrf.mxu2 }
 0x45f   : > { %v3100_v63 = vpop.f32.mrf.mxu0  ;;  %v3252_v3 = vpop.f32.mrf.mxu3  ;;  %v3054_v58 = vadd.f32 %v3053_v60, %v8217_v10 }
 0x461   : > { %v3149_v55 = vpop.f32.mrf.mxu1 }
 0x463   : > { %3688 = vmatmul.bf16.gmra.mxu2 %v9446_v21 }
 0x466   : > { %v3056_v5 = vpop.f32.mrf.mxu2 }
 0x467   : > { %v3102_v15 = vpop.f32.mrf.mxu0  ;;  %v3255_v21 = vpop.f32.mrf.mxu3  ;;  %v3057_v24 = vadd.f32 %v3056_v5, %v8217_v10  ;;  %v3049_v5 = vadd.f32 %v3048_v35, %v8217_v10 }
 0x469   : > { %v3151_v19 = vpop.f32.mrf.mxu1 }
 0x46e   : > { %v3058_v23 = vpop.f32.mrf.mxu2 }
 0x46f   : > { %v3105_v27 = vpop.f32.mrf.mxu0  ;;  %v3059_v37 = vadd.f32 %v3058_v23, %v8217_v10  ;;  %v3052_v23 = vadd.f32 %v3051_v25, %v8217_v10 }
 0x471   : > { %v3154_v53 = vpop.f32.mrf.mxu1 }
 0x473   : > { %3693 = vmatmul.bf16.gmra.mxu2 %v9449_v54 }
 0x476   : > { %v3061_v6 = vpop.f32.mrf.mxu2 }
 0x477   : > { %v3107_v46 = vpop.f32.mrf.mxu0  ;;  %v3062_v22 = vadd.f32 %v3061_v6, %v8217_v10  ;;  %v3106_v6 = vadd.f32 %v3105_v27, %v3057_v24 }
 0x478   : > { %v3108_v54 = vadd.f32 %v3107_v46, %v3059_v37  ;;  %v3101_v46 = vadd.f32 %v3100_v63, %v3052_v23 }
 0x479   : > { %v3156_v59 = vpop.f32.mrf.mxu1  ;;  %v3155_v37 = vadd.f32 %v3154_v53, %v3106_v6 }
 0x47a   : > { %v3150_v25 = vadd.f32 %v3149_v55, %v3101_v46 }
 0x47e   : > { %v3063_v17 = vpop.f32.mrf.mxu2 }
 0x47f   : > { %v3110_v61 = vpop.f32.mrf.mxu0  ;;  %v3064_v62 = vadd.f32 %v3063_v17, %v8217_v10  ;;  %v3145_v10 = vadd.f32 %v8312_v12, %v8310_v28 }
 0x480   : > { %v3111_v11 = vadd.f32 %v3110_v61, %v3062_v22  ;;  %v3253_v61 = vadd.f32 %v3252_v3, %v8278_v4  ;;  %v3157_v22 = vadd.f32 %v3156_v59, %v3108_v54 }
 0x482   : > { %v3159_v1 = vpop.f32.mrf.mxu1  ;;  %v3383_v60 = vpack.c.bf16 %v3157_v22, %v3155_v37 }
 0x483   : > { %v3160_v17 = vadd.f32 %v3159_v1, %v3111_v11  ;;  %v3257_v1 = vpop.f32.mrf.mxu3 }
 0x484   : > { %v3258_v53 = vadd.f32 %v3257_v1, %v8295_v48  ;;  %v9451_v1 = vld [vmem:[#allocation94_spill] sm:$0xff] }
 0x486   : > { %v3279_v39 = vpop.f32.mrf.mxu2 }
 0x487   : > { %v8333_v18 = vadd.f32 %v3279_v39, %v3251_v51  ;;  %v3112_v44 = vpop.f32.mrf.mxu0  ;;  %v3103_v51 = vadd.f32 %v3102_v15, %v3054_v58  ;;  %v3256_v15 = vadd.f32 %v3255_v21, %v8288_v50 }
 0x488   : > { %v3113_v36 = vadd.f32 %v3112_v44, %v3064_v62 }
 0x489   : > { %v3299_v7 = vsel %vm1162_vm0, %v8333_v18, -inf  ;;  %v3152_v45 = vadd.f32 %v3151_v19, %v3103_v51 }
 0x48a   : > { %v3161_v57 = vpop.f32.mrf.mxu1  ;;  %3300 = vmax.xlane.f32.xlu0 %v3299_v7  ;;  %v3098_v7 = vadd.f32 %v3097_v41, %v3049_v5 }
 0x48b   : > { %v3162_v34 = vadd.f32 %v3161_v57, %v3113_v36  ;;  %v3260_v19 = vpop.f32.mrf.mxu3 }
 0x48c   : > { %v3147_v4 = vadd.f32 %v3146_v31, %v3098_v7  ;;  %v3261_v50 = vadd.f32 %v3260_v19, %v8305_v52 }
 0x48d   : > { %v3386_v62 = vpack.c.bf16 %v3162_v34, %v3160_v17  ;;  %v3380_v34 = vpack.c.bf16 %v3152_v45, %v3150_v25 }
 0x48e   : > { %v3281_v39 = vpop.f32.mrf.mxu2  ;;  %v3377_v63 = vpack.c.bf16 %v3147_v4, %v3145_v10 }
 0x48f   : > { %v3282_v44 = vadd.f32 %v3281_v39, %v3253_v61  ;;  %3461 = vmatpush.bf16.msra.mxu3 %v3386_v62 }
 0x491   : > { %v3302_v27 = vsel %vm1162_vm0, %v3282_v44, -inf }
 0x492   : > { %3303 = vmax.xlane.f32.xlu0 %v3302_v27 }
 0x493   : > { %3462 = vmatpush.bf16.msra.mxu3 %v3383_v60  ;;  %v3262_v45 = vpop.f32.mrf.mxu3 }
 0x494   : > { %v3263_v21 = vadd.f32 %v3262_v45, %v8317_v43 }
 0x496   : > { %v3284_v59 = vpop.f32.mrf.mxu2 }
 0x497   : > { %v3285_v35 = vadd.f32 %v3284_v59, %v3256_v15  ;;  %3463 = vmatpush.bf16.msra.mxu3 %v3380_v34  ;;  %v9453_v15 = vpack.c.bf16 %v8125_v42, %v8116_v33  ;;  %v9457_v33 = vld [vmem:[#allocation92_spill] sm:$0xff] }
 0x499   : > { %v3305_v41 = vsel %vm1162_vm0, %v3285_v35, -inf }
 0x49a   : > { %3306 = vmax.xlane.f32.xlu1 %v3305_v41  ;;  %v9456_v41 = vld [vmem:[#allocation93_spill] sm:$0xff] }
 0x49b   : > { %3464 = vmatpush.bf16.msra.mxu3 %v3377_v63  ;;  %v3265_v48 = vpop.f32.mrf.mxu3  ;;  %v9455_v63 = vpack.c.bf16 %v8290_v29, %v8281_v20  ;;  %v9458_v42 = vpack.c.bf16 %v9456_v41, %v9457_v33 }
 0x49c   : > { %v3266_v57 = vadd.f32 %v3265_v48, %v8319_v49 }
 0x49d   : > { %v3665_v19 = vsel %vm1162_vm0, %v9458_v42, 0 }
 0x49e   : > { %v3286_v55 = vpop.f32.mrf.mxu2 }
 0x49f   : > { %v3287_v3 = vadd.f32 %v3286_v55, %v3258_v53  ;;  %v9462_v53 = vpack.c.bf16 %v8253_v13, %v8239_v8  ;;  %v3662_v55 = vsel %vm1162_vm0, %v9465_v56, 0  ;;  %v9466_v13 = vld [vmem:[#allocation89_spill] sm:$0xff] }
 0x4a1   : > { %v3308_v31 = vsel %vm1162_vm0, %v3287_v3, -inf }
 0x4a2   : > { %3309 = vmax.xlane.f32.xlu1 %v3308_v31  ;;  %v9467_v31 = vld [vmem:[#allocation88_spill] sm:$0xff] }
 0x4a3   : > { %v3267_v17 = vpop.f32.mrf.mxu3 }
 0x4a4   : > { %v3268_v23 = vadd.f32 %v3267_v17, %v8324_v2  ;;  %v9469_v17 = vld [vmem:[#allocation43_spill] sm:$0xff] }
 0x4a6   : > { %v3289_v11 = vpop.f32.mrf.mxu2 }
 0x4a7   : > { %v8350_v28 = vadd.f32 %v3289_v11, %v3261_v50  ;;  %v9468_v50 = vpack.c.bf16 %v9466_v13, %v9467_v31 }
 0x4a9   : > { %v3311_v12 = vsel %vm1162_vm0, %v8350_v28, -inf  ;;  %v3659_v45 = vsel %vm1162_vm0, %v9468_v50, 0 }
 0x4aa   : > { %3312 = vmax.xlane.f32.xlu2 %v3311_v12 }
 0x4ae   : > { %v3291_v36 = vpop.f32.mrf.mxu2 }
 0x4af   : > { %v3292_v24 = vadd.f32 %v3291_v36, %v3263_v21 }
 0x4b1   : > { %v3314_v54 = vsel %vm1162_vm0, %v3292_v24, -inf }
 0x4b2   : > { %3315 = vmax.xlane.f32.xlu2 %v3314_v54 }
 0x4b6   : > { %v3294_v58 = vpop.f32.mrf.mxu2 }
 0x4b7   : > { %v8357_v52 = vadd.f32 %v3294_v58, %v3266_v57 }
 0x4b9   : > { %v3317_v6 = vsel %vm1162_vm0, %v8357_v52, -inf }
 0x4ba   : > { %3318 = vmax.xlane.f32.xlu0 %v3317_v6 }
 0x4be   : > { %v3296_v61 = vpop.f32.mrf.mxu2 }
 0x4bf   : > { %v8362_v43 = vadd.f32 %v3296_v61, %v3268_v23  ;;  %v9470_v23 = vld [vmem:[#allocation42_spill] sm:$0xff] }
 0x4c0   : > { %v9471_v61 = vpack.c.bf16 %v9469_v17, %v9470_v23 }
 0x4c1   : > { %v3320_v51 = vsel %vm1162_vm0, %v8362_v43, -inf }
 0x4c2   : > { %3321 = vmax.xlane.f32.xlu1 %v3320_v51  ;;  %v9473_v51 = vld [vmem:[#allocation64_spill] sm:$0xff] }
 0x4c6   : > { %v3679_v56 = vpop.f32.mrf.mxu2 }
 0x4fd   : > { %v3301_v22 = vpop.xlane.xlu0 %3300 }
 0x4fe   : > { %v3323_v49 = vsub.f32 %v8333_v18, %v3301_v22  ;;  %v9450_v18 = vld [vmem:[#allocation95_spill] sm:$0xff] }
 0x4ff   : > { %v9452_v25 = vpack.c.bf16 %v9450_v18, %v9451_v1  ;;  %v9484_v1 = vld [vmem:[#allocation71_spill] sm:$0xff] }
 0x500   : > { %v3331_v62 = vmul.f32 1.442695, %v3323_v49  ;;  %v9475_v49 = vld [vmem:[#allocation45_spill] sm:$0xff] }
 0x502   : > { %6267 = vpow2.f32 %v3331_v62  ;;  %v9476_v62 = vld [vmem:[#allocation44_spill] sm:$0xff] }
 0x505   : > { %v3304_v39 = vpop.xlane.xlu0 %3303 }
 0x506   : > { %v3324_v5 = vsub.f32 %v3282_v44, %v3304_v39  ;;  %v3668_v44 = vsel %vm1162_vm0, %v9452_v25, 0  ;;  %v9477_v39 = vpack.c.bf16 %v9475_v49, %v9476_v62  ;;  %v9485_v25 = vld [vmem:[#allocation70_spill] sm:$0xff] }
 0x508   : > { %v3333_v46 = vmul.f32 1.442695, %v3324_v5  ;;  %v8367_v7 = vpop.eup %6267  ;;  %v9478_v5 = vld [vmem:[#allocation69_spill] sm:$0xff] }
 0x50a   : > { %6269 = vpow2.f32 %v3333_v46  ;;  %v9479_v46 = vld [vmem:[#allocation68_spill] sm:$0xff] }
 0x50d   : > { %v3307_v37 = vpop.xlane.xlu1 %3306 }
 0x50e   : > { %v3325_v27 = vsub.f32 %v3285_v35, %v3307_v37  ;;  %v9454_v35 = vpack.c.bf16 %v8096_v0, %v8084_v38  ;;  %v9480_v37 = vpack.c.bf16 %v9478_v5, %v9479_v46 }
 0x510   : > { %v8369_v2 = vpop.eup %6269  ;;  %v3335_v4 = vmul.f32 1.442695, %v3325_v27  ;;  %v9482_v27 = vld [vmem:[#allocation46_spill] sm:$0xff] }
 0x511   : > { %v3371_v60 = vpack.c.bf16 %v8369_v2, %v8367_v7 }
 0x512   : > { %6271 = vpow2.f32 %v3335_v4  ;;  %v9487_v4 = vld [vmem:[#allocation50_spill] sm:$0xff] }
 0x513   : > { %5814 = vmatmul.msk.bf16.vlgmr.msrb.gmra.mxu0 %vm1162_vm0, %v3371_v60  ;;  %5818 = vmatmul.msk.bf16.vlgmr.msra.gmra.mxu1 %vm1162_vm0, %v3371_v60 }
 0x514   : > { %5822 = vmatmul.msk.bf16.vlgmr.msra.gmra.mxu3 %vm1162_vm0, %v3371_v60  ;;  %3732 = vmatpush.bf16.xpose.msra.mxu1 %v3668_v44  ;;  %v9481_v60 = vld [vmem:[#allocation47_spill] sm:$0xff]  ;;  %v9486_v44 = vpack.c.bf16 %v9484_v1, %v9485_v25 }
 0x515   : > { %3861 = vmatpush.bf16.msra.mxu3 %v9453_v15  ;;  %3919 = vmatpush.bf16.msrb.mxu0 %v3844_v47  ;;  %v3310_v34 = vpop.xlane.xlu1 %3309  ;;  %v9461_v47 = vpack.c.bf16 %v8027_v30, %v8017_v9  ;;  %v9483_v18 = vpack.c.bf16 %v9481_v60, %v9482_v27  ;;  %v9488_v15 = vld [vmem:[#allocation48_spill] sm:$0xff] }
 0x516   : > { %v3326_v59 = vsub.f32 %v3287_v3, %v3310_v34  ;;  %v9489_v34 = vpack.c.bf16 %v9487_v4, %v9488_v15 }
 0x518   : > { %v3337_v10 = vmul.f32 1.442695, %v3326_v59  ;;  %v8402_v0 = vpop.eup %6271  ;;  %v9490_v59 = vld [vmem:[#allocation73_spill] sm:$0xff] }
 0x519   : > { %3862 = vmatpush.bf16.msra.mxu3 %v9454_v35  ;;  %3920 = vmatpush.bf16.msrb.mxu0 %v9455_v63 }
 0x51a   : > { %6273 = vpow2.f32 %v3337_v10  ;;  %v9491_v10 = vld [vmem:[#allocation72_spill] sm:$0xff] }
 0x51b   : > { %v9492_v35 = vpack.c.bf16 %v9490_v59, %v9491_v10 }
 0x51c   : > { %3733 = vmatpush.bf16.xpose.msra.mxu1 %v3665_v19 }
 0x51d   : > { %3863 = vmatpush.bf16.msra.mxu3 %v9459_v26  ;;  %3921 = vmatpush.bf16.msrb.mxu0 %v9460_v16  ;;  %v3313_v38 = vpop.xlane.xlu2 %3312 }
 0x51e   : > { %v3327_v29 = vsub.f32 %v8350_v28, %v3313_v38 }
 0x520   : > { %v8404_v20 = vpop.eup %6273  ;;  %v3339_v9 = vmul.f32 1.442695, %v3327_v29 }
 0x521   : > { %3864 = vmatpush.bf16.msra.mxu3 %v9461_v47  ;;  %3922 = vmatpush.bf16.msrb.mxu0 %v9462_v53  ;;  %v3372_v40 = vpack.c.bf16 %v8404_v20, %v8402_v0 }
 0x522   : > { %6275 = vpow2.f32 %v3339_v9 }
 0x523   : > { %5815 = vmatmul.msk.bf16.gmra.mxu0 %vm1162_vm0, %v3372_v40  ;;  %5819 = vmatmul.msk.bf16.gmra.mxu1 %vm1162_vm0, %v3372_v40 }
 0x524   : > { %5823 = vmatmul.msk.bf16.gmra.mxu3 %vm1162_vm0, %v3372_v40  ;;  %3734 = vmatpush.bf16.xpose.msra.mxu1 %v3662_v55 }
 0x525   : > { %v3316_v30 = vpop.xlane.xlu2 %3315 }
 0x526   : > { %v3328_v3 = vsub.f32 %v3292_v24, %v3316_v30  ;;  %v3681_v30 = vpop.f32.mrf.mxu2 }
 0x528   : > { %v3341_v8 = vmul.f32 1.442695, %v3328_v3  ;;  %v8426_v28 = vpop.eup %6275 }
 0x52a   : > { %6277 = vpow2.f32 %v3341_v8 }
 0x52c   : > { %3735 = vmatpush.bf16.xpose.msra.mxu1 %v3659_v45 }
 0x52d   : > { %v3319_v11 = vpop.xlane.xlu0 %3318 }
 0x52e   : > { %v3329_v21 = vsub.f32 %v8357_v52, %v3319_v11  ;;  %v3684_v50 = vpop.f32.mrf.mxu2 }
 0x530   : > { %v8428_v12 = vpop.eup %6277  ;;  %v3343_v24 = vmul.f32 1.442695, %v3329_v21 }
 0x531   : > { %v3373_v36 = vpack.c.bf16 %v8428_v12, %v8426_v28 }
 0x532   : > { %6279 = vpow2.f32 %v3343_v24 }
 0x533   : > { %5816 = vmatmul.msk.bf16.gmra.mxu0 %vm1162_vm0, %v3373_v36  ;;  %5820 = vmatmul.msk.bf16.gmra.mxu1 %vm1162_vm0, %v3373_v36 }
 0x534   : > { %5824 = vmatmul.msk.bf16.gmra.mxu3 %vm1162_vm0, %v3373_v36 }
 0x535   : > { %v3322_v48 = vpop.xlane.xlu1 %3321 }
 0x536   : > { %v3330_v54 = vsub.f32 %v8362_v43, %v3322_v48  ;;  %v9472_v43 = vld [vmem:[#allocation66_spill] sm:$0xff] }
 0x537   : > { %v9474_v22 = vpack.c.bf16 %v9472_v43, %v9473_v51 }
 0x538   : > { %v3345_v57 = vmul.f32 1.442695, %v3330_v54  ;;  %v8437_v58 = vpop.eup %6279  ;;  %v3686_v54 = vpop.f32.mrf.mxu2 }
 0x53a   : > { %6281 = vpow2.f32 %v3345_v57 }
 0x540   : > { %v8439_v6 = vpop.eup %6281  ;;  %v3689_v49 = vpop.f32.mrf.mxu2 }
 0x541   : > { %v3374_v52 = vpack.c.bf16 %v8439_v6, %v8437_v58 }
 0x543   : > { %5817 = vmatmul.msk.bf16.gmra.mxu0 %vm1162_vm0, %v3374_v52  ;;  %5821 = vmatmul.msk.bf16.gmra.mxu1 %vm1162_vm0, %v3374_v52 }
 0x544   : > { %5825 = vmatmul.msk.bf16.gmra.mxu3 %vm1162_vm0, %v3374_v52 }
 0x548   : > { %v3691_v27 = vpop.f32.mrf.mxu2 }
 0x553   : > { %3707 = vmatmul.bf16.vlgmr.msra.gmra.mxu0 %v9471_v61  ;;  %5826 = vmatmul.msk.bf16.vlgmr.msra.gmra.mxu1 %vm1162_vm0, %v9474_v22 }
 0x563   : > { %3712 = vmatmul.bf16.gmra.mxu0 %v9477_v39  ;;  %5827 = vmatmul.msk.bf16.gmra.mxu1 %vm1162_vm0, %v9480_v37 }
 0x573   : > { %3717 = vmatmul.bf16.gmra.mxu0 %v9483_v18  ;;  %5828 = vmatmul.msk.bf16.gmra.mxu1 %vm1162_vm0, %v9486_v44 }
 0x583   : > { %3722 = vmatmul.bf16.gmra.mxu0 %v9489_v34  ;;  %5829 = vmatmul.msk.bf16.gmra.mxu1 %vm1162_vm0, %v9492_v35  ;;  %v3694_v34 = vpop.f32.mrf.mxu2 }
 0x590   : > { %v8474_v63 = vpop.f32.mrf.mxu0  ;;  %v8476_v41 = vpop.f32.mrf.mxu1 }
 0x598   : > { %v8478_v33 = vpop.f32.mrf.mxu0  ;;  %v8480_v42 = vpop.f32.mrf.mxu1 }
 0x5a0   : > { %v8482_v19 = vpop.f32.mrf.mxu0  ;;  %v8484_v26 = vpop.f32.mrf.mxu1 }
 0x5a8   : > { %v8486_v16 = vpop.f32.mrf.mxu0  ;;  %v8488_v38 = vpop.f32.mrf.mxu1 }
 0x5b0   : > { %v8490_v29 = vpop.f32.mrf.mxu0  ;;  %v8492_v47 = vpop.f32.mrf.mxu1 }
 0x5b8   : > { %v8494_v53 = vpop.f32.mrf.mxu0  ;;  %v8496_v40 = vpop.f32.mrf.mxu1 }
 0x5c0   : > { %v8498_v14 = vpop.f32.mrf.mxu0  ;;  %v8500_v32 = vpop.f32.mrf.mxu1 }
 0x5c8   : > { %v8502_v55 = vpop.f32.mrf.mxu0  ;;  %v8504_v9 = vpop.f32.mrf.mxu1 }
 0x5d0   : > { %v3708_v3 = vpop.f32.mrf.mxu0  ;;  %v3737_v8 = vpop.f32.mrf.mxu1 }
 0x5d1   : > { %v3709_v13 = vadd.f32 %v3708_v3, %v3679_v56 }
 0x5d3   : > { %v8506_v31 = vadd.f32 %v3737_v8, %v3709_v13  ;;  %v3696_v8 = vpop.f32.mrf.mxu2 }
 0x5d5   : > { %v3757_v45 = vsel %vm1162_vm0, %v8506_v31, -inf }
 0x5d6   : > { %3758 = vmax.xlane.f32.xlu2 %v3757_v45 }
 0x5d8   : > { %v3710_v11 = vpop.f32.mrf.mxu0  ;;  %v3739_v21 = vpop.f32.mrf.mxu1 }
 0x5d9   : > { %v3711_v36 = vadd.f32 %v3710_v11, %v3681_v30  ;;  %v3347_v30 = vsel %vm1162_vm0, %v8367_v7, 0.0  ;;  %v3353_v7 = vsel %vm1162_vm0, %v8402_v0, 0.0 }
 0x5db   : > { %v8510_v24 = vadd.f32 %v3739_v21, %v3711_v36  ;;  %v3350_v36 = vsel %vm1162_vm0, %v8369_v2, 0.0 }
 0x5dd   : > { %v3760_v48 = vsel %vm1162_vm0, %v8510_v24, -inf }
 0x5de   : > { %3761 = vmax.xlane.f32.xlu0 %v3760_v48  ;;  %v4186_v48 = vld [vmem:[%s8552_s12 + $0xf0] sm:$0xff] }
 0x5e0   : > { %v3713_v57 = vpop.f32.mrf.mxu0  ;;  %v3742_v52 = vpop.f32.mrf.mxu1 }
 0x5e1   : > { %v3714_v17 = vadd.f32 %v3713_v57, %v3684_v50 }
 0x5e3   : > { %v8514_v23 = vadd.f32 %v3742_v52, %v3714_v17  ;;  %v4184_v17 = vld [vmem:[%s8552_s12 + $0xe0] sm:$0xff] }
 0x5e5   : > { %v3763_v61 = vsel %vm1162_vm0, %v8514_v23, -inf }
 0x5e6   : > { %3764 = vmax.xlane.f32.xlu1 %v3763_v61  ;;  %v4185_v61 = vld [vmem:[%s8552_s12 + $0xe8] sm:$0xff] }
 0x5e8   : > { %v3715_v43 = vpop.f32.mrf.mxu0  ;;  %v3744_v51 = vpop.f32.mrf.mxu1 }
 0x5e9   : > { %v3716_v22 = vadd.f32 %v3715_v43, %v3686_v54  ;;  %v4187_v54 = vld [vmem:[%s8552_s12 + $0xf8] sm:$0xff]  ;;  %v4210_v43 = vpack.c.bf16 %v4185_v61, %v4184_v17  ;;  %v4162_v61 = vld [vmem:[%s8552_s12 + $0x30] sm:$0xff] }
 0x5ea   : > { %v4211_v52 = vpack.c.bf16 %v4187_v54, %v4186_v48  ;;  %v4164_v48 = vld [vmem:[%s8552_s12 + $0x40] sm:$0xff] }
 0x5eb   : > { %v8518_v62 = vadd.f32 %v3744_v51, %v3716_v22  ;;  %v4170_v22 = vld [vmem:[%s8552_s12 + $0x70] sm:$0xff] }
 0x5ec   : > { %6180 = vmatpush.lsf.bf16.msrb.mxu3 %v4211_v52  ;;  %v4177_v52 = vld [vmem:[%s8552_s12 + $0xa8] sm:$0xff] }
 0x5ed   : > { %v3766_v39 = vsel %vm1162_vm0, %v8518_v62, -inf }
 0x5ee   : > { %3767 = vmax.xlane.f32.xlu2 %v3766_v39 }
 0x5f0   : > { %v3718_v5 = vpop.f32.mrf.mxu0  ;;  %v3747_v46 = vpop.f32.mrf.mxu1  ;;  %6181 = vmatpush.lsf.bf16.msrb.mxu3 %v4210_v43  ;;  %v4163_v43 = vld [vmem:[%s8552_s12 + $0x38] sm:$0xff] }
 0x5f1   : > { %v3719_v37 = vadd.f32 %v3718_v5, %v3689_v49  ;;  %v4171_v49 = vld [vmem:[%s8552_s12 + $0x78] sm:$0xff]  ;;  %v4182_v5 = vld [vmem:[%s8552_s12 + $0xd0] sm:$0xff] }
 0x5f3   : > { %v8522_v60 = vadd.f32 %v3747_v46, %v3719_v37  ;;  %v4183_v46 = vld [vmem:[%s8552_s12 + $0xd8] sm:$0xff] }
 0x5f5   : > { %v3769_v18 = vsel %vm1162_vm0, %v8522_v60, -inf }
 0x5f6   : > { %3770 = vmax.xlane.f32.xlu0 %v3769_v18  ;;  %v4209_v18 = vpack.c.bf16 %v4183_v46, %v4182_v5 }
 0x5f8   : > { %v3720_v1 = vpop.f32.mrf.mxu0  ;;  %v3749_v25 = vpop.f32.mrf.mxu1  ;;  %6182 = vmatpush.lsf.bf16.msrb.mxu3 %v4209_v18  ;;  %v4160_v18 = vld [vmem:[%s8552_s12 + $0x20] sm:$0xff] }
 0x5f9   : > { %v3721_v44 = vadd.f32 %v3720_v1, %v3691_v27 }
 0x5fb   : > { %v8526_v4 = vadd.f32 %v3749_v25, %v3721_v44  ;;  %v4168_v25 = vld [vmem:[%s8552_s12 + $0x60] sm:$0xff]  ;;  %v4169_v44 = vld [vmem:[%s8552_s12 + $0x68] sm:$0xff] }
 0x5fd   : > { %v3772_v15 = vsel %vm1162_vm0, %v8526_v4, -inf }
 0x5fe   : > { %3773 = vmax.xlane.f32.xlu1 %v3772_v15  ;;  %v4180_v15 = vld [vmem:[%s8552_s12 + $0xc0] sm:$0xff] }
 0x600   : > { %v3723_v59 = vpop.f32.mrf.mxu0  ;;  %v3752_v10 = vpop.f32.mrf.mxu1 }
 0x601   : > { %v3724_v35 = vadd.f32 %v3723_v59, %v3694_v34  ;;  %v4181_v34 = vld [vmem:[%s8552_s12 + $0xc8] sm:$0xff] }
 0x602   : > { %v4208_v59 = vpack.c.bf16 %v4181_v34, %v4180_v15  ;;  %v4158_v34 = vld [vmem:[%s8552_s12 + $0x10] sm:$0xff] }
 0x603   : > { %v8530_v56 = vadd.f32 %v3752_v10, %v3724_v35  ;;  %v4166_v35 = vld [vmem:[%s8552_s12 + $0x50] sm:$0xff] }
 0x604   : > { %6183 = vmatpush.lsf.bf16.msrb.mxu3 %v4208_v59  ;;  %v4159_v59 = vld [vmem:[%s8552_s12 + $0x18] sm:$0xff] }
 0x605   : > { %v3775_v3 = vsel %vm1162_vm0, %v8530_v56, -inf }
 0x606   : > { %3348 = vadd.xlane.f32.xlu1 %v3347_v30  ;;  %3776 = vmax.xlane.f32.xlu2 %v3775_v3  ;;  %v4167_v30 = vld [vmem:[%s8552_s12 + $0x58] sm:$0xff] }
 0x608   : > { %v3725_v13 = vpop.f32.mrf.mxu0  ;;  %v3754_v45 = vpop.f32.mrf.mxu1 }
 0x609   : > { %v3726_v50 = vadd.f32 %v3725_v13, %v3696_v8  ;;  %v4201_v8 = vpack.c.bf16 %v4167_v30, %v4166_v35  ;;  %v4178_v13 = vld [vmem:[%s8552_s12 + $0xb0] sm:$0xff] }
 0x60b   : > { %v8536_v11 = vadd.f32 %v3754_v45, %v3726_v50  ;;  %v4179_v50 = vld [vmem:[%s8552_s12 + $0xb8] sm:$0xff] }
 0x60d   : > { %v3778_v21 = vsel %vm1162_vm0, %v8536_v11, -inf }
 0x60e   : > { %3779 = vmax.xlane.f32.xlu0 %v3778_v21  ;;  %3351 = vadd.xlane.f32.xlu2 %v3350_v36  ;;  %v4207_v36 = vpack.c.bf16 %v4179_v50, %v4178_v13  ;;  %v8609_v50 = vld [vmem:[%s8603_s8 + $0x78] sm:$0xff] }
 0x610   : > { %6184 = vmatpush.lsf.bf16.msrb.mxu3 %v4207_v36  ;;  %v8618_v36 = vld [vmem:[%s8603_s8 + $0x70] sm:$0xff] }
 0x616   : > { %3354 = vadd.xlane.f32.xlu2 %v3353_v7 }
 0x649   : > { %v3759_v2 = vpop.xlane.xlu2 %3758 }
 0x64a   : > { %v3781_v0 = vsub.f32 %v8506_v31, %v3759_v2  ;;  %v4203_v31 = vpack.c.bf16 %v4171_v49, %v4170_v22  ;;  %v4199_v22 = vpack.c.bf16 %v4163_v43, %v4162_v61  ;;  %v4174_v49 = vld [vmem:[%s8552_s12 + $0x90] sm:$0xff]  ;;  %v6141_v43 = vld [vmem:[%s8603_s8 + $0x20] sm:$0xff] }
 0x64c   : > { %v3789_v57 = vmul.f32 1.442695, %v3781_v0  ;;  %6160 = vmatpush.lsf.bf16.msrb.mxu1 %v4203_v31  ;;  %v3356_v0 = vsel %vm1162_vm0, %v8404_v20, 0.0 }
 0x64e   : > { %6283 = vpow2.f32 %v3789_v57  ;;  %v4176_v57 = vld [vmem:[%s8552_s12 + $0xa0] sm:$0xff] }
 0x64f   : > { %v4206_v20 = vpack.c.bf16 %v4177_v52, %v4176_v57  ;;  %v6143_v57 = vld [vmem:[%s8603_s8 + $0x30] sm:$0xff] }
 0x651   : > { %v3762_v51 = vpop.xlane.xlu0 %3761  ;;  %6185 = vmatpush.lsf.bf16.msrb.mxu3 %v4206_v20  ;;  %v8631_v20 = vld [vmem:[%s8603_s8 + $0x60] sm:$0xff] }
 0x652   : > { %v3782_v39 = vsub.f32 %v8510_v24, %v3762_v51  ;;  %v4202_v24 = vpack.c.bf16 %v4169_v44, %v4168_v25  ;;  %v4172_v25 = vld [vmem:[%s8552_s12 + $0x80] sm:$0xff]  ;;  %v4173_v44 = vld [vmem:[%s8552_s12 + $0x88] sm:$0xff] }
 0x654   : > { %v6284_v37 = vpop.eup %6283  ;;  %v3791_v27 = vmul.f32 1.442695, %v3782_v39  ;;  %6161 = vmatpush.lsf.bf16.msrb.mxu1 %v4202_v24  ;;  %v4175_v39 = vld [vmem:[%s8552_s12 + $0x98] sm:$0xff]  ;;  %v4204_v24 = vpack.c.bf16 %v4173_v44, %v4172_v25  ;;  %v6138_v44 = vld [vmem:[%s8603_s8 + $0x8] sm:$0xff] }
 0x655   : > { %v3805_v1 = vsel %vm1162_vm0, %v6284_v37, 0.0  ;;  %v4205_v46 = vpack.c.bf16 %v4175_v39, %v4174_v49  ;;  %v3365_v49 = vsel %vm1162_vm0, %v8437_v58, 0.0  ;;  %v6147_v58 = vld [vmem:[%s8603_s8 + $0x50] sm:$0xff] }
 0x656   : > { %6285 = vpow2.f32 %v3791_v27  ;;  %3806 = vadd.xlane.f32.xlu0 %v3805_v1  ;;  %v3359_v27 = vsel %vm1162_vm0, %v8426_v28, 0.0 }
 0x657   : > { %6186 = vmatpush.lsf.bf16.msrb.mxu3 %v4205_v46 }
 0x658   : > { %6162 = vmatpush.lsf.bf16.msrb.mxu1 %v4201_v8 }
 0x659   : > { %v3765_v10 = vpop.xlane.xlu1 %3764 }
 0x65a   : > { %v3783_v3 = vsub.f32 %v8514_v23, %v3765_v10  ;;  %v4165_v23 = vld [vmem:[%s8552_s12 + $0x48] sm:$0xff]  ;;  %v4197_v10 = vpack.c.bf16 %v4159_v59, %v4158_v34 }
 0x65b   : > { %v4200_v54 = vpack.c.bf16 %v4165_v23, %v4164_v48  ;;  %6187 = vmatpush.lsf.bf16.msrb.mxu3 %v4204_v24 }
 0x65c   : > { %v6286_v45 = vpop.eup %6285  ;;  %v3793_v21 = vmul.f32 1.442695, %v3783_v3  ;;  %v3362_v3 = vsel %vm1162_vm0, %v8428_v12, 0.0 }
 0x65d   : > { %v3829_v7 = vpack.c.bf16 %v6286_v45, %v6284_v37  ;;  %v3808_v2 = vsel %vm1162_vm0, %v6286_v45, 0.0  ;;  %6163 = vmatpush.lsf.bf16.msrb.mxu1 %v4200_v54  ;;  %v4157_v45 = vld [vmem:[%s8552_s12 + $0x8] sm:$0xff] }
 0x65e   : > { %6287 = vpow2.f32 %v3793_v21  ;;  %3809 = vadd.xlane.f32.xlu1 %v3808_v2  ;;  %3357 = vadd.xlane.f32.xlu0 %v3356_v0  ;;  %v6144_v2 = vld [vmem:[%s8603_s8 + $0x38] sm:$0xff]  ;;  %v8625_v54 = vld [vmem:[%s8603_s8 + $0x68] sm:$0xff] }
 0x65f   : > { %5830 = vmatmul.msk.bf16.vlgmr.msra.gmra.mxu3 %vm1162_vm0, %v3829_v7  ;;  %5834 = vmatmul.msk.bf16.vlgmr.msrb.gmra.mxu2 %vm1162_vm0, %v3829_v7 }
 0x660   : > { %5838 = vmatmul.msk.bf16.vlgmr.msrb.gmra.mxu0 %vm1162_vm0, %v3829_v7  ;;  %4425 = vmatpush.bf16.msra.mxu3 %v8609_v50 }
 0x661   : > { %v3768_v17 = vpop.xlane.xlu2 %3767  ;;  %6164 = vmatpush.lsf.bf16.msrb.mxu1 %v4199_v22  ;;  %4495 = vmatpush.bf16.msra.mxu0 %v6144_v2 }
 0x662   : > { %v3784_v51 = vsub.f32 %v8518_v62, %v3768_v17  ;;  %v4161_v62 = vld [vmem:[%s8552_s12 + $0x28] sm:$0xff] }
 0x663   : > { %v4198_v1 = vpack.c.bf16 %v4161_v62, %v4160_v18  ;;  %v3368_v62 = vsel %vm1162_vm0, %v8439_v6, 0.0  ;;  %v8658_v6 = vpop.f32.mrf.mxu3 }
 0x664   : > { %v6288_v31 = vpop.eup %6287  ;;  %v3795_v5 = vmul.f32 1.442695, %v3784_v51  ;;  %4426 = vmatpush.bf16.msra.mxu3 %v8618_v36 }
 0x665   : > { %v3811_v37 = vsel %vm1162_vm0, %v6288_v31, 0.0  ;;  %6165 = vmatpush.lsf.bf16.msrb.mxu1 %v4198_v1  ;;  %4496 = vmatpush.bf16.msra.mxu0 %v6143_v57  ;;  %v6146_v1 = vld [vmem:[%s8603_s8 + $0x48] sm:$0xff] }
 0x666   : > { %6289 = vpow2.f32 %v3795_v5  ;;  %3812 = vadd.xlane.f32.xlu1 %v3811_v37  ;;  %3360 = vadd.xlane.f32.xlu0 %v3359_v27  ;;  %v6139_v27 = vld [vmem:[%s8603_s8 + $0x10] sm:$0xff] }
 0x668   : > { %4427 = vmatpush.bf16.msra.mxu3 %v8625_v54 }
 0x669   : > { %v3771_v15 = vpop.xlane.xlu0 %3770  ;;  %6166 = vmatpush.lsf.bf16.msrb.mxu1 %v4197_v10  ;;  %v4188_v10 = vld [vmem:[%s8552_s12 + $0x100] sm:$0xff] }
 0x66a   : > { %v3785_v28 = vsub.f32 %v8522_v60, %v3771_v15  ;;  %v4156_v60 = vld [vmem:[%s8552_s12] sm:$0xff] }
 0x66b   : > { %v4196_v21 = vpack.c.bf16 %v4157_v45, %v4156_v60  ;;  %v6137_v15 = vld [vmem:[%s8603_s8] sm:$0xff] }
 0x66c   : > { %v6290_v35 = vpop.eup %6289  ;;  %v3797_v30 = vmul.f32 1.442695, %v3785_v28  ;;  %4428 = vmatpush.bf16.msra.mxu3 %v8631_v20  ;;  %v8663_v28 = vpop.f32.mrf.mxu3 }
 0x66d   : > { %v3814_v8 = vsel %vm1162_vm0, %v6290_v35, 0.0  ;;  %v3830_v13 = vpack.c.bf16 %v6290_v35, %v6288_v31  ;;  %6167 = vmatpush.lsf.bf16.msrb.mxu1 %v4196_v21  ;;  %v6148_v31 = vld [vmem:[%s8603_s8 + $0x58] sm:$0xff]  ;;  %v4189_v35 = vld [vmem:[%s8552_s12 + $0x108] sm:$0xff] }
 0x66e   : > { %6291 = vpow2.f32 %v3797_v30  ;;  %3363 = vadd.xlane.f32.xlu1 %v3362_v3  ;;  %3815 = vadd.xlane.f32.xlu2 %v3814_v8  ;;  %v4212_v30 = vpack.c.bf16 %v4189_v35, %v4188_v10  ;;  %v4190_v8 = vld [vmem:[%s8552_s12 + $0x110] sm:$0xff] }
 0x66f   : > { %5831 = vmatmul.msk.bf16.gmra.mxu3 %vm1162_vm0, %v3830_v13  ;;  %5835 = vmatmul.msk.bf16.gmra.mxu2 %vm1162_vm0, %v3830_v13 }
 0x670   : > { %5839 = vmatmul.msk.bf16.gmra.mxu0 %vm1162_vm0, %v3830_v13  ;;  %6168 = vllmr.8.mxu1  ;;  %v4191_v13 = vld [vmem:[%s8552_s12 + $0x118] sm:$0xff] }
 0x671   : > { %v3774_v12 = vpop.xlane.xlu1 %3773  ;;  %4396 = vmatpush.bf16.msra.mxu1 %v6144_v2  ;;  %4429 = vmatpush.bf16.msra.mxu3 %v6148_v31  ;;  %v4213_v60 = vpack.c.bf16 %v4191_v13, %v4190_v8  ;;  %v4192_v2 = vld [vmem:[%s8552_s12 + $0x120] sm:$0xff] }
 0x672   : > { %v3786_v7 = vsub.f32 %v8526_v4, %v3774_v12  ;;  %v6142_v4 = vld [vmem:[%s8603_s8 + $0x28] sm:$0xff] }
 0x673   : > { %4497 = vmatpush.bf16.msra.mxu0 %v6142_v4 }
 0x674   : > { %v6292_v0 = vpop.eup %6291  ;;  %v3799_v48 = vmul.f32 1.442695, %v3786_v7  ;;  %v8668_v3 = vpop.f32.mrf.mxu3  ;;  %v6155_v7 = vld [vmem:[%s8603_s8 + $0x90] sm:$0xff] }
 0x675   : > { %v3817_v23 = vsel %vm1162_vm0, %v6292_v0, 0.0  ;;  %4397 = vmatpush.bf16.msra.mxu1 %v6143_v57  ;;  %4430 = vmatpush.bf16.msra.mxu3 %v6147_v58  ;;  %v6154_v57 = vld [vmem:[%s8603_s8 + $0x88] sm:$0xff] }
 0x676   : > { %6293 = vpow2.f32 %v3799_v48  ;;  %3818 = vadd.xlane.f32.xlu2 %v3817_v23 }
 0x677   : > { %4498 = vmatpush.bf16.msra.mxu0 %v6141_v43 }
 0x679   : > { %v3777_v52 = vpop.xlane.xlu2 %3776  ;;  %4398 = vmatpush.bf16.msra.mxu1 %v6142_v4  ;;  %4431 = vmatpush.bf16.msra.mxu3 %v6146_v1  ;;  %v8676_v21 = vpop.xlane.xlu1 %3348 }
 0x67a   : > { %v3787_v17 = vsub.f32 %v8530_v56, %v3777_v52  ;;  %v6140_v56 = vld [vmem:[%s8603_s8 + $0x18] sm:$0xff]  ;;  %vm3491_vm2 = vweird.f32 %v8676_v21 }
 0x67b   : > { %4499 = vmatpush.bf16.msra.mxu0 %v6140_v56 }
 0x67c   : > { %v6294_v61 = vpop.eup %6293  ;;  %v3801_v51 = vmul.f32 1.442695, %v3787_v17  ;;  %v6153_v17 = vld [vmem:[%s8603_s8 + $0x80] sm:$0xff] }
 0x67d   : > { %v3820_v22 = vsel %vm1162_vm0, %v6294_v61, 0.0  ;;  %v3831_v39 = vpack.c.bf16 %v6294_v61, %v6292_v0  ;;  %4399 = vmatpush.bf16.msra.mxu1 %v6141_v43  ;;  %v4193_v0 = vld [vmem:[%s8552_s12 + $0x128] sm:$0xff] }
 0x67e   : > { %6188 = vllmr.8.mxu3  ;;  %3821 = vadd.xlane.f32.xlu0 %v3820_v22  ;;  %6295 = vpow2.f32 %v3801_v51 }
 0x67f   : > { %3366 = vadd.xlane.f32.xlu2 %v3365_v49  ;;  %5832 = vmatmul.msk.bf16.gmra.mxu3 %vm1162_vm0, %v3831_v39 }
 0x680   : > { %5836 = vmatmul.msk.bf16.gmra.mxu2 %vm1162_vm0, %v3831_v39  ;;  %5840 = vmatmul.msk.bf16.gmra.mxu0 %vm1162_vm0, %v3831_v39 }
 0x681   : > { %v3780_v5 = vpop.xlane.xlu0 %3779  ;;  %4400 = vmatpush.bf16.msra.mxu1 %v6140_v56  ;;  %4500 = vmatpush.bf16.msra.mxu0 %v6139_v27  ;;  %v8674_v45 = vpop.xlane.xlu2 %3351 }
 0x682   : > { %v3788_v46 = vsub.f32 %v8536_v11, %v3780_v5  ;;  %v6145_v11 = vld [vmem:[%s8603_s8 + $0x40] sm:$0xff]  ;;  %v3514_v10 = vand.u32 2147483648, %v8674_v45  ;;  %vm3508_vm5 = vweird.f32 %v8674_v45 }
 0x683   : > { %4432 = vmatpush.bf16.msra.mxu3 %v6145_v11 }
 0x684   : > { %v3803_v37 = vmul.f32 1.442695, %v3788_v46  ;;  %v6296_v18 = vpop.eup %6295 }
 0x685   : > { %v3823_v25 = vsel %vm1162_vm0, %v6296_v18, 0.0  ;;  %4401 = vmatpush.bf16.msra.mxu1 %v6139_v27  ;;  %4501 = vmatpush.bf16.msra.mxu0 %v6138_v44  ;;  %v4194_v27 = vld [vmem:[%s8552_s12 + $0x130] sm:$0xff] }
 0x686   : > { %6297 = vpow2.f32 %v3803_v37  ;;  %3369 = vadd.xlane.f32.xlu0 %v3368_v62 }
 0x687   : > { %3824 = vadd.xlane.f32.xlu2 %v3823_v25  ;;  %6299 = vrcp.f32 %v8676_v21 }
 0x688   : > { %6301 = vrcp.f32 %v8674_v45 }
 0x689   : > { %4402 = vmatpush.bf16.msra.mxu1 %v6138_v44  ;;  %4502 = vmatpush.bf16.msra.mxu0 %v6137_v15  ;;  %v8686_v48 = vpop.xlane.xlu2 %3354  ;;  %v3497_v44 = vand.u32 2147483648, %v8676_v21 }
 0x68a   : > { %6303 = vrcp.f32 %v8686_v48  ;;  %vm3525_vm11 = vweird.f32 %v8686_v48 }
 0x68b   : > { %v3498_v13 = vor.u32 1.1754944e-38, %v3497_v44 }
 0x68c   : > { %v6298_v24 = vpop.eup %6297 }
 0x68d   : > { %v3826_v34 = vsel %vm1162_vm0, %v6298_v24, 0.0  ;;  %v3832_v59 = vpack.c.bf16 %v6298_v24, %v6296_v18  ;;  %4403 = vmatpush.bf16.msra.mxu1 %v6137_v15  ;;  %v8688_v23 = vpop.eup %6299  ;;  %v4195_v18 = vld [vmem:[%s8552_s12 + $0x138] sm:$0xff]  ;;  %v3495_v24 = vand.u32 2147483647, %v8676_v21 }
 0x68e   : > { %3827 = vadd.xlane.f32.xlu0 %v3826_v34  ;;  %v3487_v52 = vmul.f32 %v8688_v23, %v8676_v21  ;;  %vm3492_vm1 = vweird.f32 %v8688_v23  ;;  %v4215_v15 = vpack.c.bf16 %v4195_v18, %v4194_v27 }
 0x68f   : > { %5833 = vmatmul.msk.bf16.gmra.mxu3 %vm1162_vm0, %v3832_v59  ;;  %vm8730_vm3 = vmor %vm3491_vm2, %vm3492_vm1  ;;  %vm3496_vm6 = vcmp.eq.f32.partialorder %v3495_v24, 8.507059e+37 }
 0x690   : > { %5837 = vmatmul.msk.bf16.gmra.mxu2 %vm1162_vm0, %v3832_v59  ;;  %5841 = vmatmul.msk.bf16.gmra.mxu0 %vm1162_vm0, %v3832_v59  ;;  %v3488_v43 = vsub.f32 1.0, %v3487_v52  ;;  %v3512_v59 = vand.u32 2147483647, %v8674_v45 }
 0x691   : > { %6169 = vmatmul.lmr.bf16.vlgmr.msra.gmra.8.mxu1 }
 0x692   : > { %4524 = vmatpush.bf16.msra.mxu1 %v8609_v50  ;;  %v8672_v50 = vpop.f32.mrf.mxu3  ;;  %v3489_v49 = vmul.f32 %v8688_v23, %v3488_v43  ;;  %vm8760_vm8 = vcmp.eq.f32.partialorder %v3512_v59, 8.507059e+37 }
 0x694   : > { %v3490_v62 = vadd.f32 %v8688_v23, %v3489_v49 }
 0x696   : > { %4525 = vmatpush.bf16.msra.mxu1 %v8618_v36  ;;  %v6156_v36 = vld [vmem:[%s8603_s8 + $0x98] sm:$0xff]  ;;  %v3494_v8 = vsel %vm8730_vm3, %v8688_v23, %v3490_v62 }
 0x697   : > { %4458 = vmatpush.bf16.msra.mxu2 %v6156_v36 }
 0x699   : > { %6170 = vmatmul.lmr.bf16.gmra.8.mxu1 }
 0x69a   : > { %4526 = vmatpush.bf16.msra.mxu1 %v8625_v54  ;;  %v8678_v12 = vpop.f32.mrf.mxu3  ;;  %v4214_v54 = vpack.c.bf16 %v4193_v0, %v4192_v2  ;;  %v3515_v2 = vor.u32 1.1754944e-38, %v3514_v10 }
 0x69b   : > { %4459 = vmatpush.bf16.msra.mxu2 %v6155_v7 }
 0x69e   : > { %4527 = vmatpush.bf16.msra.mxu1 %v8631_v20  ;;  %v8696_v20 = vpop.eup %6301 }
 0x69f   : > { %6189 = vmatmul.lmr.bf16.vlgmr.msra.gmra.8.mxu3  ;;  %4460 = vmatpush.bf16.msra.mxu2 %v6154_v57  ;;  %v3504_v51 = vmul.f32 %v8696_v20, %v8674_v45  ;;  %v8704_v22 = vpop.eup %6303  ;;  %vm3509_vm4 = vweird.f32 %v8696_v20 }
 0x6a0   : > { %4557 = vmatpush.bf16.msra.mxu3 %v6156_v36  ;;  %v3531_v36 = vand.u32 2147483648, %v8686_v48  ;;  %vm8750_vm7 = vmor %vm3508_vm5, %vm3509_vm4  ;;  %vm3526_vm9 = vweird.f32 %v8704_v22 }
 0x6a1   : > { %6171 = vmatmul.lmr.bf16.gmra.8.mxu1  ;;  %v3505_v39 = vsub.f32 1.0, %v3504_v51  ;;  %vm8780_vm12 = vmor %vm3525_vm11, %vm3526_vm9 }
 0x6a2   : > { %4528 = vmatpush.bf16.msra.mxu1 %v6148_v31  ;;  %v8692_v4 = vpop.f32.mrf.mxu3  ;;  %v3521_v31 = vmul.f32 %v8704_v22, %v8686_v48 }
 0x6a3   : > { %4461 = vmatpush.bf16.msra.mxu2 %v6153_v17 }
 0x6a4   : > { %4558 = vmatpush.bf16.msra.mxu3 %v6155_v7  ;;  %v3522_v25 = vsub.f32 1.0, %v3521_v31  ;;  %v3529_v31 = vand.u32 2147483647, %v8686_v48 }
 0x6a6   : > { %4529 = vmatpush.bf16.msra.mxu1 %v6147_v58  ;;  %vm3530_vm4 = vcmp.eq.f32.partialorder %v3529_v31, 8.507059e+37 }
 0x6a7   : > { %6190 = vmatmul.lmr.bf16.gmra.8.mxu3 }
 0x6a8   : > { %4248 = vxpose.xlu1.c.b16.start [1/4] (short) (narrow) %v4212_v30, 64  ;;  %4559 = vmatpush.bf16.msra.mxu3 %v6154_v57  ;;  %v3523_v30 = vmul.f32 %v8704_v22, %v3522_v25  ;;  %v3499_v57 = vsel %vm3496_vm6, %v3498_v13, %v3494_v8 }
 0x6a9   : > { %6172 = vmatmul.lmr.bf16.gmra.8.mxu1  ;;  %v3502_v62 = vmul.f32 %v3499_v57, %v8658_v6  ;;  %v8793_v48 = vmul.f32 %v3499_v57, %v8474_v63  ;;  %v8811_v10 = vmul.f32 %v3499_v57, %v8476_v41 }
 0x6aa   : > { %4530 = vmatpush.bf16.msra.mxu1 %v6146_v1  ;;  %v8711_v5 = vpop.f32.mrf.mxu3  ;;  %v3506_v1 = vmul.f32 %v8696_v20, %v3505_v39 }
 0x6ac   : > { %4560 = vmatpush.bf16.msra.mxu3 %v6153_v17  ;;  %v3507_v35 = vadd.f32 %v8696_v20, %v3506_v1  ;;  %v3524_v17 = vadd.f32 %v8704_v22, %v3523_v30 }
 0x6ae   : > { %4531 = vmatpush.bf16.msra.mxu1 %v6145_v11  ;;  %v3511_v43 = vsel %vm8750_vm7, %v8696_v20, %v3507_v35  ;;  %v3528_v6 = vsel %vm8780_vm12, %v8704_v22, %v3524_v17 }
 0x6af   : > { %6191 = vmatmul.lmr.bf16.gmra.8.mxu3 }
 0x6b1   : > { %6173 = vmatmul.lmr.bf16.gmra.8.mxu1 }
 0x6b2   : > { %v8764_v52 = vpop.f32.mrf.mxu3 }
 0x6b7   : > { %6192 = vmatmul.lmr.bf16.gmra.8.mxu3 }
 0x6b8   : > { %4249 = vxpose.xlu1.c.b16.cont [2/4] (short) (narrow) %v4213_v60, 64 }
 0x6b9   : > { %6174 = vmatmul.lmr.bf16.gmra.8.mxu1 }
 0x6bf   : > { %6193 = vmatmul.lmr.bf16.gmra.8.mxu3 }
 0x6c1   : > { %6175 = vmatmul.lmr.bf16.gmra.8.mxu1 }
 0x6c7   : > { %6194 = vmatmul.lmr.bf16.gmra.8.mxu3 }
 0x6c8   : > { %4250 = vxpose.xlu1.c.b16.cont [3/4] (short) (narrow) %v4214_v54, 64 }
 0x6c9   : > { %v8699_v61 = vpop.xlane.xlu0 %3806  ;;  %6176 = vmatmul.lmr.bf16.gmra.8.mxu1 }
 0x6ca   : > { %6305 = vrcp.f32 %v8699_v61  ;;  %v3955_v27 = vand.u32 2147483648, %v8699_v61  ;;  %vm3949_vm13 = vweird.f32 %v8699_v61  ;;  %v3953_v25 = vand.u32 2147483647, %v8699_v61 }
 0x6cc   : > { %v3956_v59 = vor.u32 1.1754944e-38, %v3955_v27  ;;  %vm3954_vm2 = vcmp.eq.f32.partialorder %v3953_v25, 8.507059e+37 }
 0x6cf   : > { %6195 = vmatmul.lmr.bf16.gmra.8.mxu3 }
 0x6d0   : > { %v8709_v56 = vpop.eup %6305 }
 0x6d1   : > { %v3945_v58 = vmul.f32 %v8709_v56, %v8699_v61  ;;  %v8716_v46 = vpop.xlane.xlu1 %3809  ;;  %v8718_v37 = vpop.xlane.xlu0 %3357  ;;  %vm3950_vm10 = vweird.f32 %v8709_v56 }
 0x6d2   : > { %6307 = vrcp.f32 %v8716_v46  ;;  %vm8788_vm14 = vmor %vm3949_vm13, %vm3950_vm10  ;;  %v3972_v63 = vand.u32 2147483648, %v8716_v46  ;;  %vm3966_vm1 = vweird.f32 %v8716_v46  ;;  %v3970_v22 = vand.u32 2147483647, %v8716_v46 }
 0x6d3   : > { %v3946_v11 = vsub.f32 1.0, %v3945_v58  ;;  %6309 = vrcp.f32 %v8718_v37  ;;  %v3532_v58 = vor.u32 1.1754944e-38, %v3531_v36  ;;  %vm3542_vm6 = vweird.f32 %v8718_v37 }
 0x6d4   : > { %vm3971_vm5 = vcmp.eq.f32.partialorder %v3970_v22, 8.507059e+37 }
 0x6d5   : > { %v3947_v60 = vmul.f32 %v8709_v56, %v3946_v11  ;;  %v3516_v11 = vsel %vm8760_vm8, %v3515_v2, %v3511_v43 }
 0x6d6   : > { %v3519_v13 = vmul.f32 %v3516_v11, %v8663_v28  ;;  %v3973_v28 = vor.u32 1.1754944e-38, %v3972_v63  ;;  %v3517_v31 = vmul.f32 %v3516_v11, %v8478_v33  ;;  %v3518_v27 = vmul.f32 %v3516_v11, %v8480_v42 }
 0x6d7   : > { %6196 = vmatmul.lmr.bf16.gmra.8.mxu3  ;;  %v3948_v49 = vadd.f32 %v8709_v56, %v3947_v60 }
 0x6d8   : > { %v8744_v21 = vpop.eup %6307  ;;  %4251 = vxpose.xlu1.c.b16.end [4/4] (short) (narrow) %v4215_v15, 64 }
 0x6d9   : > { %v3962_v0 = vmul.f32 %v8744_v21, %v8716_v46  ;;  %v8756_v23 = vpop.xlane.xlu1 %3812  ;;  %v8758_v54 = vpop.xlane.xlu0 %3360  ;;  %vm3967_vm15 = vweird.f32 %v8744_v21  ;;  %v3952_v61 = vsel %vm8788_vm14, %v8709_v56, %v3948_v49  ;;  %v3548_v46 = vand.u32 2147483648, %v8718_v37 }
 0x6da   : > { %6311 = vrcp.f32 %v8756_v23  ;;  %v8775_v39 = vpop.eup %6309  ;;  %vm8826_vm3 = vmor %vm3966_vm1, %vm3967_vm15  ;;  %v3957_v60 = vsel %vm3954_vm2, %v3956_v59, %v3952_v61  ;;  %vm3559_vm9 = vweird.f32 %v8758_v54  ;;  %vm3983_vm12 = vweird.f32 %v8756_v23 }
 0x6db   : > { %v3963_v51 = vsub.f32 1.0, %v3962_v0  ;;  %6313 = vrcp.f32 %v8758_v54  ;;  %v3538_v24 = vmul.f32 %v8775_v39, %v8718_v37  ;;  %v3533_v0 = vsel %vm3530_vm4, %v3532_v58, %v3528_v6 }
 0x6dc   : > { %v3546_v58 = vand.u32 2147483647, %v8718_v37  ;;  %v8852_v44 = vor.u32 1.1754944e-38, %v3548_v46  ;;  %vm3543_vm7 = vweird.f32 %v8775_v39 }
 0x6dd   : > { %v3964_v20 = vmul.f32 %v8744_v21, %v3963_v51  ;;  %v3924_v1 = vpop.f32.mrf.mxu0  ;;  %v3539_v57 = vsub.f32 1.0, %v3538_v24  ;;  %vm8886_vm11 = vmor %vm3542_vm6, %vm3543_vm7 }
 0x6de   : > { %v3960_v45 = vmul.f32 %v3957_v60, %v3924_v1  ;;  %v8848_v1 = vmul.f32 %v3533_v0, %v8484_v26  ;;  %v3565_v26 = vand.u32 2147483648, %v8758_v54  ;;  %vm8868_vm8 = vcmp.eq.f32.partialorder %v3546_v58, 8.507059e+37 }
 0x6df   : > { %v3965_v15 = vadd.f32 %v8744_v21, %v3964_v20  ;;  %v8845_v20 = vmul.f32 %v3533_v0, %v8482_v19  ;;  %v3540_v25 = vmul.f32 %v8775_v39, %v3539_v57  ;;  %v3563_v19 = vand.u32 2147483647, %v8758_v54 }
 0x6e0   : > { %v8808_v34 = vpop.eup %6311  ;;  %v4082_v33 = vadd.f32 %v3960_v45, %v3502_v62  ;;  %v3987_v58 = vand.u32 2147483647, %v8756_v23 }
 0x6e1   : > { %v8815_v35 = vpop.eup %6313  ;;  %v3979_v30 = vmul.f32 %v8808_v34, %v8756_v23  ;;  %v8819_v56 = vpop.xlane.xlu1 %3363  ;;  %v3969_v2 = vsel %vm8826_vm3, %v8744_v21, %v3965_v15  ;;  %v8841_v21 = vmul.f32 %v3533_v0, %v8668_v3  ;;  %v3541_v46 = vadd.f32 %v8775_v39, %v3540_v25 }
 0x6e2   : > { %v8821_v8 = vpop.xlane.xlu2 %3815  ;;  %v3866_v36 = vpop.f32.mrf.mxu3  ;;  %v3555_v43 = vmul.f32 %v8815_v35, %v8758_v54  ;;  %v3974_v49 = vsel %vm3971_vm5, %v3973_v28, %v3969_v2  ;;  %vm3984_vm10 = vweird.f32 %v8808_v34  ;;  %vm3560_vm15 = vweird.f32 %v8815_v35 }
 0x6e3   : > { %v3895_v7 = vpop.f32.mrf.mxu2  ;;  %6315 = vrcp.f32 %v8821_v8  ;;  %v3980_v17 = vsub.f32 1.0, %v3979_v30  ;;  %v3958_v11 = vmul.f32 %v3957_v60, %v3866_v36  ;;  %vm8895_vm13 = vmor %vm3983_vm12, %vm3984_vm10  ;;  %v3545_v37 = vsel %vm8886_vm11, %v8775_v39, %v3541_v46 }
 0x6e4   : > { %6317 = vrcp.f32 %v8819_v56  ;;  %v3556_v3 = vsub.f32 1.0, %v3555_v43  ;;  %v3959_v61 = vmul.f32 %v3957_v60, %v3895_v7  ;;  %vm3988_vm1 = vcmp.eq.f32.partialorder %v3987_v58, 8.507059e+37  ;;  %vm8931_vm4 = vmor %vm3559_vm9, %vm3560_vm15 }
 0x6e5   : > { %v3926_v51 = vpop.f32.mrf.mxu0  ;;  %v3981_v42 = vmul.f32 %v8808_v34, %v3980_v17  ;;  %v4080_v0 = vadd.f32 %v3958_v11, %v8793_v48  ;;  %vm4000_vm2 = vweird.f32 %v8821_v8  ;;  %v3550_v46 = vsel %vm8868_vm8, %v8852_v44, %v3545_v37 }
 0x6e6   : > { %v3977_v18 = vmul.f32 %v3974_v49, %v3926_v51  ;;  %v3557_v7 = vmul.f32 %v8815_v35, %v3556_v3  ;;  %v4081_v28 = vadd.f32 %v3959_v61, %v8811_v10  ;;  %v4004_v3 = vand.u32 2147483647, %v8821_v8 }
 0x6e7   : > { %v3982_v57 = vadd.f32 %v8808_v34, %v3981_v42  ;;  %vm3564_vm6 = vcmp.eq.f32.partialorder %v3563_v19, 8.507059e+37  ;;  %vm3576_vm7 = vweird.f32 %v8819_v56  ;;  %v3552_v58 = vmul.f32 %v3550_v46, %v8488_v38 }
 0x6e8   : > { %v4085_v6 = vadd.f32 %v3977_v18, %v3519_v13  ;;  %v3989_v13 = vand.u32 2147483648, %v8756_v23  ;;  %v3558_v11 = vadd.f32 %v8815_v35, %v3557_v7  ;;  %vm4005_vm5 = vcmp.eq.f32.partialorder %v4004_v3, 8.507059e+37 }
 0x6e9   : > { %v8855_v24 = vpop.eup %6315  ;;  %v3986_v23 = vsel %vm8895_vm13, %v8808_v34, %v3982_v57  ;;  %v3566_v34 = vor.u32 1.1754944e-38, %v3565_v26  ;;  %v3553_v57 = vmul.f32 %v3550_v46, %v8672_v50 }
 0x6ea   : > { %v8860_v15 = vpop.xlane.xlu2 %3818  ;;  %v8862_v63 = vpop.eup %6317  ;;  %v3996_v62 = vmul.f32 %v8855_v24, %v8821_v8  ;;  %v4146_v59 = vpack.c.bf16 %v4085_v6, %v4082_v33  ;;  %v3990_v18 = vor.u32 1.1754944e-38, %v3989_v13  ;;  %vm4001_vm14 = vweird.f32 %v8855_v24 }
 0x6eb   : > { %6319 = vrcp.f32 %v8860_v15  ;;  %v3868_v22 = vpop.f32.mrf.mxu3  ;;  %v3897_v30 = vpop.f32.mrf.mxu2  ;;  %v3572_v45 = vmul.f32 %v8862_v63, %v8819_v56  ;;  %vm4002_vm3 = vmor %vm4000_vm2, %vm4001_vm14  ;;  %vm3577_vm8 = vweird.f32 %v8862_v63  ;;  %vm4017_vm9 = vweird.f32 %v8860_v15 }
 0x6ec   : > { %v3975_v60 = vmul.f32 %v3974_v49, %v3868_v22  ;;  %v3976_v36 = vmul.f32 %v3974_v49, %v3897_v30  ;;  %v3997_v2 = vsub.f32 1.0, %v3996_v62  ;;  %5926 = vmatmul.msk.bf16.vlgmr.msra.gmra.mxu3 %vm1162_vm0, %v4146_v59  ;;  %v3582_v30 = vand.u32 2147483648, %v8819_v56  ;;  %vm8980_vm11 = vmor %vm3576_vm7, %vm3577_vm8 }
 0x6ed   : > { %v3929_v51 = vpop.f32.mrf.mxu0  ;;  %v3573_v6 = vsub.f32 1.0, %v3572_v45  ;;  %v3991_v13 = vsel %vm3988_vm1, %v3990_v18, %v3986_v23  ;;  %v4021_v18 = vand.u32 2147483647, %v8860_v15 }
 0x6ee   : > { %v4083_v17 = vadd.f32 %v3975_v60, %v3517_v31  ;;  %v4084_v43 = vadd.f32 %v3976_v36, %v3518_v27  ;;  %v3998_v48 = vmul.f32 %v8855_v24, %v3997_v2  ;;  %v4006_v27 = vand.u32 2147483648, %v8821_v8 }
 0x6ef   : > { %v3994_v36 = vmul.f32 %v3991_v13, %v3929_v51  ;;  %v3574_v41 = vmul.f32 %v8862_v63, %v3573_v6  ;;  %vm8985_vm12 = vcmp.eq.f32.partialorder %v4021_v18, 8.507059e+37 }
 0x6f0   : > { %v4144_v25 = vpack.c.bf16 %v4083_v17, %v4080_v0  ;;  %v4145_v10 = vpack.c.bf16 %v4084_v43, %v4081_v28  ;;  %v3999_v42 = vadd.f32 %v8855_v24, %v3998_v48  ;;  %v4007_v60 = vor.u32 1.1754944e-38, %v4006_v27 }
 0x6f1   : > { %v8903_v33 = vpop.eup %6319  ;;  %v8915_v61 = vpop.xlane.xlu0 %3821  ;;  %v3562_v0 = vsel %vm8931_vm4, %v8815_v35, %v3558_v11  ;;  %v3583_v28 = vor.u32 1.1754944e-38, %v3582_v30  ;;  %v3551_v17 = vmul.f32 %v3550_v46, %v8486_v16  ;;  %v4088_v54 = vadd.f32 %v3994_v36, %v8841_v21 }
 0x6f2   : > { %v4013_v39 = vmul.f32 %v8903_v33, %v8860_v15  ;;  %4503 = vmatmul.bf16.vlgmr.msra.gmra.mxu0 %v4144_v25  ;;  %4532 = vmatmul.bf16.vlgmr.msra.gmra.mxu1 %v4145_v10  ;;  %v8917_v62 = vpop.xlane.xlu2 %3366  ;;  %6321 = vrcp.f32 %v8915_v61  ;;  %v4003_v7 = vsel %vm4002_vm3, %v8855_v24, %v3999_v42  ;;  %v3580_v24 = vand.u32 2147483647, %v8819_v56 }
 0x6f3   : > { %v3871_v59 = vpop.f32.mrf.mxu3  ;;  %v3900_v22 = vpop.f32.mrf.mxu2  ;;  %v4008_v2 = vsel %vm4005_vm5, %v4007_v60, %v4003_v7  ;;  %6323 = vrcp.f32 %v8917_v62  ;;  %v3567_v51 = vsel %vm3564_vm6, %v3566_v34, %v3562_v0  ;;  %v3575_v49 = vadd.f32 %v8862_v63, %v3574_v41 }
 0x6f4   : > { %v4014_v8 = vsub.f32 1.0, %v4013_v39  ;;  %v3992_v16 = vmul.f32 %v3991_v13, %v3871_v59  ;;  %v3993_v25 = vmul.f32 %v3991_v13, %v3900_v22  ;;  %v8963_v23 = vmul.f32 %v3567_v51, %v8678_v12 }
 0x6f5   : > { %v3931_v44 = vpop.f32.mrf.mxu0  ;;  %v4023_v42 = vand.u32 2147483648, %v8860_v15  ;;  %vm4018_vm10 = vweird.f32 %v8903_v33  ;;  %v8974_v11 = vmul.f32 %v3567_v51, %v8490_v29  ;;  %v8992_v13 = vmul.f32 %v3567_v51, %v8492_v47 }
 0x6f6   : > { %v4011_v45 = vmul.f32 %v4008_v2, %v3931_v44  ;;  %v4015_v35 = vmul.f32 %v8903_v33, %v4014_v8  ;;  %v4086_v29 = vadd.f32 %v3992_v16, %v8845_v20  ;;  %v4087_v30 = vadd.f32 %v3993_v25, %v8848_v1  ;;  %vm9003_vm13 = vmor %vm4017_vm9, %vm4018_vm10 }
 0x6f7   : > { %v3579_v56 = vsel %vm8980_vm11, %v8862_v63, %v3575_v49  ;;  %v4040_v47 = vand.u32 2147483648, %v8915_v61  ;;  %v4038_v36 = vand.u32 2147483647, %v8915_v61  ;;  %v4024_v7 = vor.u32 1.1754944e-38, %v4023_v42 }
 0x6f8   : > { %v8948_v43 = vpop.eup %6321  ;;  %v4091_v19 = vadd.f32 %v4011_v45, %v3553_v57  ;;  %v4016_v3 = vadd.f32 %v8903_v33, %v4015_v35  ;;  %vm3581_vm15 = vcmp.eq.f32.partialorder %v3580_v24, 8.507059e+37  ;;  %vm4034_vm1 = vweird.f32 %v8915_v61 }
 0x6f9   : > { %v4030_v50 = vmul.f32 %v8948_v43, %v8915_v61  ;;  %v8955_v48 = vpop.xlane.xlu0 %3369  ;;  %v8967_v38 = vpop.eup %6323  ;;  %vm4035_vm14 = vweird.f32 %v8948_v43  ;;  %v3584_v57 = vsel %vm3581_vm15, %v3583_v28, %v3579_v56  ;;  %v4041_v24 = vor.u32 1.1754944e-38, %v4040_v47 }
 0x6fa   : > { %v4149_v10 = vpack.c.bf16 %v4091_v19, %v4088_v54  ;;  %6325 = vrcp.f32 %v8955_v48  ;;  %v8960_v31 = vpop.xlane.xlu2 %3824  ;;  %v3589_v46 = vmul.f32 %v8967_v38, %v8917_v62  ;;  %v4020_v63 = vsel %vm9003_vm13, %v8903_v33, %v4016_v3  ;;  %vm4036_vm2 = vmor %vm4034_vm1, %vm4035_vm14 }
 0x6fb   : > { %v3873_v21 = vpop.f32.mrf.mxu3  ;;  %v4031_v37 = vsub.f32 1.0, %v4030_v50  ;;  %v3902_v27 = vpop.f32.mrf.mxu2  ;;  %6327 = vrcp.f32 %v8960_v31  ;;  %v4025_v35 = vsel %vm8985_vm12, %v4024_v7, %v4020_v63  ;;  %vm4039_vm3 = vcmp.eq.f32.partialorder %v4038_v36, 8.507059e+37 }
 0x6fc   : > { %5927 = vmatmul.msk.bf16.gmra.mxu3 %vm1162_vm0, %v4149_v10  ;;  %v4009_v39 = vmul.f32 %v4008_v2, %v3873_v21  ;;  %v4010_v34 = vmul.f32 %v4008_v2, %v3902_v27  ;;  %v3590_v45 = vsub.f32 1.0, %v3589_v46  ;;  %vm3593_vm4 = vweird.f32 %v8917_v62 }
 0x6fd   : > { %v4032_v6 = vmul.f32 %v8948_v43, %v4031_v37  ;;  %v3934_v59 = vpop.f32.mrf.mxu0  ;;  %v3597_v61 = vand.u32 2147483647, %v8917_v62  ;;  %v3599_v18 = vand.u32 2147483648, %v8917_v62  ;;  %v3587_v16 = vmul.f32 %v3584_v57, %v8692_v4 }
 0x6fe   : > { %v4089_v60 = vadd.f32 %v4009_v39, %v3551_v17  ;;  %v4090_v26 = vadd.f32 %v4010_v34, %v3552_v58  ;;  %v4028_v51 = vmul.f32 %v4025_v35, %v3934_v59  ;;  %v3585_v10 = vmul.f32 %v3584_v57, %v8494_v53 }
 0x6ff   : > { %v4033_v8 = vadd.f32 %v8948_v43, %v4032_v6  ;;  %v3591_v21 = vmul.f32 %v8967_v38, %v3590_v45  ;;  %vm3594_vm5 = vweird.f32 %v8967_v38  ;;  %vm3610_vm6 = vweird.f32 %v8955_v48 }
 0x700   : > { %v9008_v1 = vpop.eup %6325  ;;  %v4147_v44 = vpack.c.bf16 %v4089_v60, %v4086_v29  ;;  %v4148_v0 = vpack.c.bf16 %v4090_v26, %v4087_v30  ;;  %v4094_v3 = vadd.f32 %v4028_v51, %v8963_v23  ;;  %v3616_v12 = vand.u32 2147483648, %v8955_v48  ;;  %vm9061_vm10 = vmor %vm3593_vm4, %vm3594_vm5 }
 0x701   : > { %v3606_v15 = vmul.f32 %v9008_v1, %v8955_v48  ;;  %v9018_v41 = vpop.xlane.xlu0 %3827  ;;  %v9020_v2 = vpop.eup %6327  ;;  %v4037_v28 = vsel %vm4036_vm2, %v8948_v43, %v4033_v8  ;;  %v3614_v43 = vand.u32 2147483647, %v8955_v48  ;;  %vm4051_vm7 = vweird.f32 %v8960_v31 }
 0x702   : > { %6329 = vrcp.f32 %v9018_v41  ;;  %v4047_v17 = vmul.f32 %v9020_v2, %v8960_v31  ;;  %4508 = vmatmul.bf16.gmra.mxu0 %v4147_v44  ;;  %4537 = vmatmul.bf16.gmra.mxu1 %v4148_v0  ;;  %v4042_v58 = vsel %vm4039_vm3, %v4041_v24, %v4037_v28  ;;  %v4057_v39 = vand.u32 2147483648, %v8960_v31 }
 0x703   : > { %v3876_v33 = vpop.f32.mrf.mxu3  ;;  %v3905_v54 = vpop.f32.mrf.mxu2  ;;  %v3607_v19 = vsub.f32 1.0, %v3606_v15  ;;  %v3586_v29 = vmul.f32 %v3584_v57, %v8496_v40  ;;  %v3592_v30 = vadd.f32 %v8967_v38, %v3591_v21  ;;  %vm3611_vm8 = vweird.f32 %v9008_v1 }
 0x704   : > { %v4048_v49 = vsub.f32 1.0, %v4047_v17  ;;  %v4026_v6 = vmul.f32 %v4025_v35, %v3876_v33  ;;  %v4027_v34 = vmul.f32 %v4025_v35, %v3905_v54  ;;  %vm4052_vm9 = vweird.f32 %v9020_v2  ;;  %vm9072_vm11 = vmor %vm3610_vm6, %vm3611_vm8 }
 0x705   : > { %v3936_v50 = vpop.f32.mrf.mxu0  ;;  %v3608_v27 = vmul.f32 %v9008_v1, %v3607_v19  ;;  %v4055_v15 = vand.u32 2147483647, %v8960_v31  ;;  %vm4068_vm12 = vweird.f32 %v9018_v41  ;;  %vm9083_vm14 = vmor %vm4051_vm7, %vm4052_vm9  ;;  %v4074_v48 = vand.u32 2147483648, %v9018_v41 }
 0x706   : > { %v4045_v25 = vmul.f32 %v4042_v58, %v3936_v50  ;;  %v4049_v42 = vmul.f32 %v9020_v2, %v4048_v49  ;;  %v4092_v63 = vadd.f32 %v4026_v6, %v8974_v11  ;;  %v4093_v62 = vadd.f32 %v4027_v34, %v8992_v13 }
 0x707   : > { %v3609_v60 = vadd.f32 %v9008_v1, %v3608_v27  ;;  %v3596_v0 = vsel %vm9061_vm10, %v8967_v38, %v3592_v30  ;;  %v4072_v17 = vand.u32 2147483647, %v9018_v41  ;;  %v3600_v35 = vor.u32 1.1754944e-38, %v3599_v18 }
 0x708   : > { %v9040_v37 = vpop.eup %6329  ;;  %v4097_v4 = vadd.f32 %v4045_v25, %v3587_v16  ;;  %v4050_v20 = vadd.f32 %v9020_v2, %v4049_v42  ;;  %v3617_v54 = vor.u32 1.1754944e-38, %v3616_v12  ;;  %v4058_v24 = vor.u32 1.1754944e-38, %v4057_v39 }
 0x709   : > { %v4064_v53 = vmul.f32 %v9040_v37, %v9018_v41  ;;  %vm4069_vm13 = vweird.f32 %v9040_v37  ;;  %v3613_v31 = vsel %vm9072_vm11, %v9008_v1, %v3609_v60  ;;  %vm3598_vm1 = vcmp.eq.f32.partialorder %v3597_v61, 8.507059e+37 }
 0x70a   : > { %v4152_v59 = vpack.c.bf16 %v4097_v4, %v4094_v3  ;;  %v4054_v13 = vsel %vm9083_vm14, %v9020_v2, %v4050_v20  ;;  %vm9103_vm15 = vmor %vm4068_vm12, %vm4069_vm13  ;;  %vm4056_vm2 = vcmp.eq.f32.partialorder %v4055_v15, 8.507059e+37  ;;  %vm3615_vm3 = vcmp.eq.f32.partialorder %v3614_v43, 8.507059e+37 }
 0x70b   : > { %v3878_v22 = vpop.f32.mrf.mxu3  ;;  %v4065_v23 = vsub.f32 1.0, %v4064_v53  ;;  %v3907_v46 = vpop.f32.mrf.mxu2  ;;  %v4075_v19 = vor.u32 1.1754944e-38, %v4074_v48  ;;  %v3601_v51 = vsel %vm3598_vm1, %v3600_v35, %v3596_v0  ;;  %v4059_v28 = vsel %vm4056_vm2, %v4058_v24, %v4054_v13 }
 0x70c   : > { %v4043_v56 = vmul.f32 %v4042_v58, %v3878_v22  ;;  %v4044_v26 = vmul.f32 %v4042_v58, %v3907_v46  ;;  %5928 = vmatmul.msk.bf16.gmra.mxu3 %vm1162_vm0, %v4152_v59  ;;  %v3618_v50 = vsel %vm3615_vm3, %v3617_v54, %v3613_v31  ;;  %vm4073_vm4 = vcmp.eq.f32.partialorder %v4072_v17, 8.507059e+37 }
 0x70d   : > { %v4066_v47 = vmul.f32 %v9040_v37, %v4065_v23  ;;  %v3939_v36 = vpop.f32.mrf.mxu0  ;;  %v3604_v61 = vmul.f32 %v3601_v51, %v8711_v5  ;;  %v3621_v16 = vmul.f32 %v3618_v50, %v8764_v52  ;;  %v3602_v3 = vmul.f32 %v3601_v51, %v8498_v14 }
 0x70e   : > { %v4095_v8 = vadd.f32 %v4043_v56, %v3585_v10  ;;  %v4096_v44 = vadd.f32 %v4044_v26, %v3586_v29  ;;  %v4062_v58 = vmul.f32 %v4059_v28, %v3939_v36  ;;  %v3619_v4 = vmul.f32 %v3618_v50, %v8502_v55 }
 0x70f   : > { %v4067_v57 = vadd.f32 %v9040_v37, %v4066_v47  ;;  %v3603_v6 = vmul.f32 %v3601_v51, %v8500_v32  ;;  %v3620_v39 = vmul.f32 %v3618_v50, %v8504_v9  ;;  %v4405_v9 = vpop.f32.mrf.mxu1 }
 0x710   : > { %v4150_v33 = vpack.c.bf16 %v4095_v8, %v4092_v63  ;;  %v4151_v45 = vpack.c.bf16 %v4096_v44, %v4093_v62  ;;  %v4100_v10 = vadd.f32 %v4062_v58, %v3604_v61 }
 0x711   : > { %v4071_v1 = vsel %vm9103_vm15, %v9040_v37, %v4067_v57 }
 0x712   : > { %4513 = vmatmul.bf16.gmra.mxu0 %v4150_v33  ;;  %4542 = vmatmul.bf16.gmra.mxu1 %v4151_v45  ;;  %v4076_v18 = vsel %vm4073_vm4, %v4075_v19, %v4071_v1 }
 0x713   : > { %v3881_v2 = vpop.f32.mrf.mxu3  ;;  %v3910_v49 = vpop.f32.mrf.mxu2 }
 0x714   : > { %v4060_v43 = vmul.f32 %v4059_v28, %v3881_v2  ;;  %v4061_v37 = vmul.f32 %v4059_v28, %v3910_v49 }
 0x715   : > { %v3941_v41 = vpop.f32.mrf.mxu0 }
 0x716   : > { %v4079_v25 = vmul.f32 %v4076_v18, %v3941_v41  ;;  %v4098_v52 = vadd.f32 %v4060_v43, %v3602_v3  ;;  %v4099_v59 = vadd.f32 %v4061_v37, %v3603_v6 }
 0x717   : > { %v4407_v46 = vpop.f32.mrf.mxu1 }
 0x718   : > { %v4103_v21 = vadd.f32 %v4079_v25, %v3621_v16 }
 0x71a   : > { %v4155_v27 = vpack.c.bf16 %v4103_v21, %v4100_v10 }
 0x71b   : > { %v3883_v42 = vpop.f32.mrf.mxu3  ;;  %v3912_v53 = vpop.f32.mrf.mxu2 }
 0x71c   : > { %v4077_v12 = vmul.f32 %v4076_v18, %v3883_v42  ;;  %v4078_v5 = vmul.f32 %v4076_v18, %v3912_v53  ;;  %5929 = vmatmul.msk.bf16.gmra.mxu3 %vm1162_vm0, %v4155_v27 }
 0x71e   : > { %v4101_v34 = vadd.f32 %v4077_v12, %v3619_v4  ;;  %v4102_v22 = vadd.f32 %v4078_v5, %v3620_v39 }
 0x71f   : > { %v4410_v26 = vpop.f32.mrf.mxu1 }
 0x720   : > { %v4153_v29 = vpack.c.bf16 %v4101_v34, %v4098_v52  ;;  %v4154_v30 = vpack.c.bf16 %v4102_v22, %v4099_v59 }
 0x722   : > { %4518 = vmatmul.bf16.gmra.mxu0 %v4153_v29  ;;  %4547 = vmatmul.bf16.gmra.mxu1 %v4154_v30 }
 0x723   : > { %v4434_v23 = vpop.f32.mrf.mxu3 }
 0x724   : > { %v4435_v13 = vadd.f32 %v4434_v23, %v4405_v9 }
 0x727   : > { %v4412_v40 = vpop.f32.mrf.mxu1 }
 0x72b   : > { %v4436_v60 = vpop.f32.mrf.mxu3 }
 0x72c   : > { %v4437_v38 = vadd.f32 %v4436_v60, %v4407_v46 }
 0x72f   : > { %v4415_v63 = vpop.f32.mrf.mxu1 }
 0x733   : > { %v4439_v20 = vpop.f32.mrf.mxu3 }
 0x734   : > { %v4440_v41 = vadd.f32 %v4439_v20, %v4410_v26 }
 0x737   : > { %v4417_v36 = vpop.f32.mrf.mxu1 }
 0x73b   : > { %v4441_v47 = vpop.f32.mrf.mxu3 }
 0x73c   : > { %v4442_v27 = vadd.f32 %v4441_v47, %v4412_v40 }
 0x73f   : > { %v9121_v7 = vpop.f32.mrf.mxu1 }
 0x743   : > { %v4444_v8 = vpop.f32.mrf.mxu3 }
 0x744   : > { %v4445_v5 = vadd.f32 %v4444_v8, %v4415_v63 }
 0x747   : > { %v9125_v44 = vpop.f32.mrf.mxu1 }
 0x74b   : > { %v4446_v15 = vpop.f32.mrf.mxu3 }
 0x753   : > { %v9123_v62 = vpop.f32.mrf.mxu3 }
 0x754   : > { %v4256_v14 = vpop.trf.xlu1  ;;  %v4450_v20 = vadd.f32 %v9123_v62, %v9121_v7 }
 0x755   : > { %5922 = vmatmul.msk.bf16.vlgmr.msra.gmra.mxu2 %vm1162_vm0, %v4256_v14 }
 0x75b   : > { %v9127_v11 = vpop.f32.mrf.mxu3 }
 0x764   : > { %v4257_v55 = vpop.trf.xlu1 }
 0x765   : > { %5923 = vmatmul.msk.bf16.gmra.mxu2 %vm1162_vm0, %v4257_v55  ;;  %v4447_v55 = vadd.f32 %v4446_v15, %v4417_v36 }
 0x76f   : > { %v4504_v48 = vpop.f32.mrf.mxu0  ;;  %v4533_v0 = vpop.f32.mrf.mxu1 }
 0x770   : > { %v4562_v33 = vpop.f32.mrf.mxu3 }
 0x774   : > { %v4258_v32 = vpop.trf.xlu1 }
 0x775   : > { %5924 = vmatmul.msk.bf16.gmra.mxu2 %vm1162_vm0, %v4258_v32 }
 0x777   : > { %v4506_v57 = vpop.f32.mrf.mxu0  ;;  %v4535_v45 = vpop.f32.mrf.mxu1 }
 0x778   : > { %v4564_v35 = vpop.f32.mrf.mxu3 }
 0x77f   : > { %v4509_v1 = vpop.f32.mrf.mxu0  ;;  %v4538_v28 = vpop.f32.mrf.mxu1 }
 0x780   : > { %v4567_v50 = vpop.f32.mrf.mxu3 }
 0x784   : > { %v4259_v56 = vpop.trf.xlu1 }
 0x785   : > { %5925 = vmatmul.msk.bf16.gmra.mxu2 %vm1162_vm0, %v4259_v56  ;;  %vm4582_vm0 = vcmask 39936  }
 0x787   : > { %v4511_v25 = vpop.f32.mrf.mxu0  ;;  %v4540_v21 = vpop.f32.mrf.mxu1 }
 0x788   : > { %v4569_v37 = vpop.f32.mrf.mxu3 }
 0x78f   : > { %v4514_v53 = vpop.f32.mrf.mxu0  ;;  %v4543_v39 = vpop.f32.mrf.mxu1 }
 0x790   : > { %v4572_v34 = vpop.f32.mrf.mxu3 }
 0x797   : > { %v4516_v14 = vpop.f32.mrf.mxu0  ;;  %v4545_v9 = vpop.f32.mrf.mxu1 }
 0x798   : > { %v4574_v46 = vpop.f32.mrf.mxu3 }
 0x79f   : > { %v4519_v47 = vpop.f32.mrf.mxu0  ;;  %v4548_v36 = vpop.f32.mrf.mxu1 }
 0x7a7   : > { %v4521_v7 = vpop.f32.mrf.mxu0 }
 0x7d8   : > { %v4463_v31 = vpop.f32.mrf.mxu2 }
 0x7d9   : > { %v4464_v17 = vadd.f32 %v4463_v31, %v4435_v13  ;;  %v4550_v31 = vpop.f32.mrf.mxu1 }
 0x7db   : > { %v4505_v54 = vadd.f32 %v4504_v48, %v4464_v17  ;;  %v4577_v48 = vpop.f32.mrf.mxu3 }
 0x7dd   : > { %v4534_v24 = vadd.f32 %v4533_v0, %v4505_v54 }
 0x7df   : > { %v4563_v2 = vadd.f32 %v4562_v33, %v4534_v24  ;;  %v4452_v33 = vadd.f32 %v9127_v11, %v9125_v44 }
 0x7e0   : > { %v4465_v19 = vpop.f32.mrf.mxu2 }
 0x7e1   : > { %4583 = vst.msk [vmem:[%s9133_s20] sm:$0xff] %vm4582_vm0, %v4563_v2  ;;  %v4466_v51 = vadd.f32 %v4465_v19, %v4437_v38 }
 0x7e3   : > { %v4507_v49 = vadd.f32 %v4506_v57, %v4466_v51 }
 0x7e5   : > { %v4536_v58 = vadd.f32 %v4535_v45, %v4507_v49 }
 0x7e7   : > { %v4565_v18 = vadd.f32 %v4564_v35, %v4536_v58  ;;  %v4579_v35 = vpop.f32.mrf.mxu3 }
 0x7e8   : > { %v4468_v61 = vpop.f32.mrf.mxu2 }
 0x7e9   : > { %4584 = vst.msk [vmem:[%s9133_s20 + $0x8] sm:$0xff] %vm4582_vm0, %v4565_v18  ;;  %v4469_v16 = vadd.f32 %v4468_v61, %v4440_v41 }
 0x7eb   : > { %v4510_v10 = vadd.f32 %v4509_v1, %v4469_v16 }
 0x7ed   : > { %v4539_v43 = vadd.f32 %v4538_v28, %v4510_v10 }
 0x7ef   : > { %v4568_v42 = vadd.f32 %v4567_v50, %v4539_v43 }
 0x7f0   : > { %v4470_v3 = vpop.f32.mrf.mxu2 }
 0x7f1   : > { %4585 = vst.msk [vmem:[%s9133_s20 + $0x10] sm:$0xff] %vm4582_vm0, %v4568_v42  ;;  %v4471_v4 = vadd.f32 %v4470_v3, %v4442_v27 }
 0x7f3   : > { %v4512_v12 = vadd.f32 %v4511_v25, %v4471_v4 }
 0x7f5   : > { %v4541_v6 = vadd.f32 %v4540_v21, %v4512_v12 }
 0x7f7   : > { %v4570_v52 = vadd.f32 %v4569_v37, %v4541_v6 }
 0x7f8   : > { %v4473_v59 = vpop.f32.mrf.mxu2 }
 0x7f9   : > { %4586 = vst.msk [vmem:[%s9133_s20 + $0x18] sm:$0xff] %vm4582_vm0, %v4570_v52  ;;  %v4474_v22 = vadd.f32 %v4473_v59, %v4445_v5 }
 0x7fb   : > { %v4515_v29 = vadd.f32 %v4514_v53, %v4474_v22 }
 0x7fd   : > { %v4544_v30 = vadd.f32 %v4543_v39, %v4515_v29 }
 0x7ff   : > { %v4573_v32 = vadd.f32 %v4572_v34, %v4544_v30 }
 0x800   : > { %v4475_v23 = vpop.f32.mrf.mxu2 }
 0x801   : > { %4587 = vst.msk [vmem:[%s9133_s20 + $0x20] sm:$0xff] %vm4582_vm0, %v4573_v32  ;;  %v4476_v56 = vadd.f32 %v4475_v23, %v4447_v55 }
 0x803   : > { %v4517_v60 = vadd.f32 %v4516_v14, %v4476_v56 }
 0x805   : > { %v4546_v26 = vadd.f32 %v4545_v9, %v4517_v60 }
 0x807   : > { %v4575_v40 = vadd.f32 %v4574_v46, %v4546_v26 }
 0x808   : > { %v4478_v63 = vpop.f32.mrf.mxu2 }
 0x809   : > { %4588 = vst.msk [vmem:[%s9133_s20 + $0x28] sm:$0xff] %vm4582_vm0, %v4575_v40  ;;  %v4479_v8 = vadd.f32 %v4478_v63, %v4450_v20 }
 0x80b   : > { %v4520_v15 = vadd.f32 %v4519_v47, %v4479_v8 }
 0x80d   : > { %v4549_v0 = vadd.f32 %v4548_v36, %v4520_v15 }
 0x80f   : > { %v4578_v57 = vadd.f32 %v4577_v48, %v4549_v0 }
 0x810   : > { %v4480_v13 = vpop.f32.mrf.mxu2 }
 0x811   : > { %4589 = vst.msk [vmem:[%s9133_s20 + $0x30] sm:$0xff] %vm4582_vm0, %v4578_v57  ;;  %v4481_v45 = vadd.f32 %v4480_v13, %v4452_v33 }
 0x813   : > { %v4522_v62 = vadd.f32 %v4521_v7, %v4481_v45 }
 0x815   : > { %v4551_v17 = vadd.f32 %v4550_v31, %v4522_v62 }
 0x817   : > { %v4580_v54 = vadd.f32 %v4579_v35, %v4551_v17 }
 0x819   : > { %4590 = vst.msk [vmem:[%s9133_s20 + $0x38] sm:$0xff] %vm4582_vm0, %v4580_v54 }
 0x81a PF: > { %s9527_s25 = sld [smem:[#allocation12_spill]]  ;;  %p22_p8 = scmp.ge.s32.totalorder %s6557_s26, 5  }
 0x81b   : > { %s9528_s21 = smov %s6486_s22  ;;  %s9529_s22 = smov %s6490_s23 }
 0x81c   : > { %s9531_s24 = smov %s6557_s26  ;;  %24 = sbr.rel (!%p22_p8) target bundleno = 10 (0xa), region = 131 }
 0x820   : > { %s9530_s23 = smov %s9527_s25 }
 0x821   :  { %4612 = vsyncpa [#allocation3], 1 }
 0x822   :  { %4614 = vsyncpa [#allocation3 + $0x1], 1 }
 0x823   :  { %4615 = vsyncpa [#allocation5], 1 }
 0x824   :  { %4617 = vsyncpa [#allocation5 + $0x1], 1 }
 0x825   :  { %4618 = vsyncpa [#allocation8], 1 }
 0x826   :  { %4620 = vsyncpa [#allocation8 + $0x1], 1 }

</bundles_post_ra>
